<compile_context>
chip_gen: v7x
topology: tpu7x:2x2x1
jax: 0.10.0
libtpu: 0.0.40
codegen_flags: <defaults>
</compile_context>

<pallas_src>
import jax
import jax.numpy as jnp
from jax import lax
from jax.experimental import pallas as pl
from jax.experimental.pallas import tpu as pltpu


# ----------------------------- Pallas kernel --------------------------------

def _bottleneck_kernel(x_ref, w1_ref, b1_ref, w2_ref, b2_ref, w3_ref, b3_ref,
                       o_ref):
    # x_ref : (1, H, W, Cin) bf16   unpadded NHWC image
    # w1_ref: (Cin, P)  bf16 (BN1 folded)   b1_ref: (1, P)  f32
    # w2_ref: (9P, P)   bf16 (BN2 folded)   b2_ref: (1, P)  f32
    # w3_ref: (P, 4P)   bf16 (BN3 folded)   b3_ref: (1, 4P) f32
    # o_ref : (1, H, W, 4P)
    _, H, W, Cin = x_ref.shape
    P = w1_ref.shape[1]
    Cout = w3_ref.shape[1]
    Wp2 = W + 2

    x2d = x_ref[0].reshape(H * W, Cin)                       # bf16, reused for residual

    # ---- conv1 (1x1) + folded BN1 + ReLU, interior pixels only -------------
    h1 = jnp.dot(x2d, w1_ref[...], preferred_element_type=jnp.float32)
    h1 = jnp.maximum(h1 + b1_ref[...], 0.0)                  # (H*W, P) f32

    # ---- build the zero-padded h1 slab in VMEM (this IS conv2's padding=1) -
    # Stored row layout: [W interior columns | 2 zero columns]; two zero rows
    # above and below.  In this layout the flat (row-major) index of the true
    # padded pixel (i+dy, j+dx) is (i*Wp2 + j) + (dy+1)*Wp2 + (dx-1), and
    # every out-of-image tap lands on a zero column/row, so the 9 conv2 taps
    # become plain shifted row-windows of the flat slab.  The axis=1 concat is
    # tile-aligned (W % 8 == 0 in the demo config); the axis=0 concat is on an
    # untiled leading dim, i.e. free.
    zrows = jnp.zeros((2, Wp2, P), jnp.float32)
    band = jnp.concatenate(
        [h1.reshape(H, W, P), jnp.zeros((H, 2, P), jnp.float32)], axis=1)
    padded = jnp.concatenate([zrows, band, zrows], axis=0)   # (H+4, Wp2, P)
    flat = padded.reshape((H + 4) * Wp2, P)

    # ---- conv2 (3x3, stride 1, pad 1) as ONE K=9P GEMM ---------------------
    M = H * Wp2          # covers every valid output row (+2 junk cols/row, dropped below)
    taps = []
    for dy in range(3):
        for dx in range(3):
            s = (dy + 1) * Wp2 + (dx - 1)
            taps.append(flat[s:s + M, :].astype(jnp.bfloat16))
    lhs = jnp.concatenate(taps, axis=1)                      # (M, 9P) bf16, in VMEM only
    h2 = jnp.dot(lhs, w2_ref[...], preferred_element_type=jnp.float32)
    h2 = jnp.maximum(h2 + b2_ref[...], 0.0)                  # (M, P) f32
    h2 = h2.reshape(H, Wp2, P)[:, :W, :].reshape(H * W, P).astype(jnp.bfloat16)

    # ---- conv3 (1x1) + folded BN3 + residual add + ReLU --------------------
    y = jnp.dot(h2, w3_ref[...], preferred_element_type=jnp.float32)
    y = jnp.maximum(y + b3_ref[...] + x2d.astype(jnp.float32), 0.0)
    o_ref[0] = y.reshape(H, W, Cout).astype(o_ref.dtype)


# ------------------------------- glue helpers --------------------------------

def _fold_bn(gamma, beta, mean, var, eps=1e-5):
    scale = gamma / jnp.sqrt(var + eps)
    return scale, beta - mean * scale


def _pick_vmem_limit(step_footprint_bytes):
    """Generation-aware VMEM limit: real footprint vs. the chip's capacity."""
    cap = None
    try:
        cap = getattr(pltpu.get_tpu_info(), "vmem_capacity_bytes", None)
    except Exception:
        cap = None
    if not cap:
        cap = 64 * 1024 * 1024                     # conservative (v7x-class VMEM)
    want = max(2 * int(step_footprint_bytes), 32 * 1024 * 1024)
    return int(min(want, (3 * int(cap)) // 4))     # leave 25% headroom


def bottleneck_pallas_nhwc(x_nhwc, p, *, out_dtype=None):
    """Fused Bottleneck forward on an NHWC activation.

    Preferred entry point: avoids any NCHW<->NHWC HBM passes around the kernel.
    """
    N, H, W, Cin = x_nhwc.shape
    planes = p["w1"].shape[0]
    Cout = 4 * planes
    assert Cin == Cout, "no-downsample residual path requires inplanes == 4*planes"
    out_dtype = x_nhwc.dtype if out_dtype is None else out_dtype

    s1, b1 = _fold_bn(*p["bn1"])
    s2, b2 = _fold_bn(*p["bn2"])
    s3, b3 = _fold_bn(*p["bn3"])

    # Fold BN scales into the weights; pre-cast MXU operands to bf16 once.
    w1 = (p["w1"][:, :, 0, 0].T * s1[None, :]).astype(jnp.bfloat16)       # (Cin, P)
    w2 = jnp.transpose(p["w2"], (2, 3, 1, 0)) * s2[None, None, None, :]   # (dy,dx,ci,co)
    w2 = w2.reshape(9 * planes, planes).astype(jnp.bfloat16)              # (9P, P) lane-dense slab
    w3 = (p["w3"][:, :, 0, 0].T * s3[None, :]).astype(jnp.bfloat16)       # (P, 4P)
    b1 = b1.reshape(1, planes).astype(jnp.float32)
    b2 = b2.reshape(1, planes).astype(jnp.float32)
    b3 = b3.reshape(1, Cout).astype(jnp.float32)

    # Activations travel to the kernel in bf16 (halves HBM read bytes); the
    # residual add and all epilogues stay in f32 inside the kernel.
    x_bf16 = x_nhwc.astype(jnp.bfloat16)

    m2 = H * (W + 2)                    # conv2 GEMM rows (incl. 2 junk cols/row)
    flops = 2 * N * (H * W * Cin * planes
                     + m2 * 9 * planes * planes
                     + H * W * planes * Cout)
    out_isize = jnp.dtype(out_dtype).itemsize
    bytes_accessed = int(N * H * W * Cin * 2 + N * H * W * Cout * out_isize
                         + (w1.size + w2.size + w3.size) * 2
                         + (b1.size + b2.size + b3.size) * 4)

    # Rough per-grid-step VMEM footprint: double-buffered I/O blocks, resident
    # weights (x2), padded h1 slab, im2col slab (f32 + bf16), f32 epilogues.
    step_bytes = (2 * (H * W * Cin * 2 + H * W * Cout * out_isize)
                  + 2 * ((w1.size + w2.size + w3.size) * 2
                         + (b1.size + b2.size + b3.size) * 4)
                  + 2 * (H + 4) * (W + 2) * planes * 4
                  + 2 * m2 * 9 * planes * 2
                  + m2 * planes * 4
                  + H * W * Cout * 4)

    out = pl.pallas_call(
        _bottleneck_kernel,
        out_shape=jax.ShapeDtypeStruct((N, H, W, Cout), out_dtype),
        grid_spec=pltpu.PrefetchScalarGridSpec(
            num_scalar_prefetch=0,
            grid=(N,),
            in_specs=[
                pl.BlockSpec((1, H, W, Cin), lambda n: (n, 0, 0, 0)),      # x image
                pl.BlockSpec((Cin, planes), lambda n: (0, 0)),             # w1 (resident)
                pl.BlockSpec((1, planes), lambda n: (0, 0)),               # b1
                pl.BlockSpec((9 * planes, planes), lambda n: (0, 0)),      # w2 slab
                pl.BlockSpec((1, planes), lambda n: (0, 0)),               # b2
                pl.BlockSpec((planes, Cout), lambda n: (0, 0)),            # w3
                pl.BlockSpec((1, Cout), lambda n: (0, 0)),                 # b3
            ],
            out_specs=pl.BlockSpec((1, H, W, Cout), lambda n: (n, 0, 0, 0)),
        ),
        compiler_params=pltpu.CompilerParams(
            dimension_semantics=("parallel",),
            vmem_limit_bytes=_pick_vmem_limit(step_bytes)),
        cost_estimate=pl.CostEstimate(
            flops=int(flops), transcendentals=0, bytes_accessed=bytes_accessed),
    )(x_bf16, w1, b1, w2, b2, w3, b3)
    return out


def bottleneck_pallas(x_nchw, p):
    # NCHW compatibility wrapper (matches the PyTorch module's layout).  The
    # transpose + bf16 cast fuse into a single XLA pass over x; NHWC callers
    # should use bottleneck_pallas_nhwc directly and skip these passes.
    x = jnp.transpose(x_nchw, (0, 2, 3, 1))
    out = bottleneck_pallas_nhwc(x, p, out_dtype=x_nchw.dtype)
    return jnp.transpose(out, (0, 3, 1, 2))


# ------------------------------ pure-JAX reference ---------------------------

def bottleneck_ref(x_nchw, p, eps=1e-5):
    x = jnp.transpose(x_nchw, (0, 2, 3, 1))

    def conv(y, w_oihw, padding=0):
        w_hwio = jnp.transpose(w_oihw, (2, 3, 1, 0))
        return lax.conv_general_dilated(
            y, w_hwio, (1, 1), [(padding, padding)] * 2,
            dimension_numbers=("NHWC", "HWIO", "NHWC"))

    def bn(y, params):
        g, b, m, v = params
        return (y - m) * (g / jnp.sqrt(v + eps)) + b

    out = jax.nn.relu(bn(conv(x, p["w1"]), p["bn1"]))
    out = jax.nn.relu(bn(conv(out, p["w2"], padding=1), p["bn2"]))
    out = bn(conv(out, p["w3"]), p["bn3"])
    out = jax.nn.relu(out + x)
    return jnp.transpose(out, (0, 3, 1, 2))


# --------------------------------- params ------------------------------------

def init_params(key, inplanes, planes):
    ks = jax.random.split(key, 6)

    def w(k, shape, scale=0.1):
        return jax.random.normal(k, shape, jnp.float32) * scale

    def bn_params(k, c):
        k1, k2, k3, k4 = jax.random.split(k, 4)
        gamma = jax.random.uniform(k1, (c,), jnp.float32, 0.5, 1.5)
        beta = jax.random.normal(k2, (c,), jnp.float32) * 0.1
        mean = jax.random.normal(k3, (c,), jnp.float32) * 0.1
        var = jax.random.uniform(k4, (c,), jnp.float32, 0.5, 1.5)
        return gamma, beta, mean, var

    return {
        "w1": w(ks[0], (planes, inplanes, 1, 1)),        # conv1: OIHW
        "bn1": bn_params(ks[1], planes),
        "w2": w(ks[2], (planes, planes, 3, 3)),          # conv2: OIHW
        "bn2": bn_params(ks[3], planes),
        "w3": w(ks[4], (planes * 4, planes, 1, 1)),      # conv3: OIHW
        "bn3": bn_params(ks[5], planes * 4),
    }


if __name__ == "__main__":
    key = jax.random.PRNGKey(0)
    kx, kp = jax.random.split(key)

    # inplanes == 4*planes is required by the no-downsample residual path;
    # 128 channels keep the HBM-facing arrays lane-dense, W=16 keeps the
    # in-kernel padding concat sublane-tile aligned.
    N, inplanes, H, W = 2, 128, 16, 16
    planes = inplanes // 4                               # expansion = 4

    x = jax.random.normal(kx, (N, inplanes, H, W), jnp.float32)
    params = init_params(kp, inplanes, planes)

    out = jax.block_until_ready(bottleneck_pallas(x, params))
    ref = bottleneck_ref(x, params)

    assert out.shape == ref.shape == (N, inplanes, H, W), (out.shape, ref.shape)
    err = float(jnp.max(jnp.abs(out - ref)))
    scale = float(jnp.max(jnp.abs(ref)))
    if err > 2e-2 * scale + 1e-3:                        # bf16-operand tolerance
        raise AssertionError(
            f"mismatch vs reference: max abs err {err}, ref max {scale}")

    print("KERNEL_OK")
</pallas_src>

<mosaic_0001>
module attributes {stable_mosaic.version = 11 : i64} {
  func.func @_bottleneck_kernel(%arg0: i32, %arg1: memref<1x16x16x128xbf16, #tpu.memory_space<vmem>>, %arg2: memref<128x32xbf16, #tpu.memory_space<vmem>>, %arg3: memref<1x32xf32, #tpu.memory_space<vmem>>, %arg4: memref<288x32xbf16, #tpu.memory_space<vmem>>, %arg5: memref<1x32xf32, #tpu.memory_space<vmem>>, %arg6: memref<32x128xbf16, #tpu.memory_space<vmem>>, %arg7: memref<1x128xf32, #tpu.memory_space<vmem>>, %arg8: memref<1x16x16x128xf32, #tpu.memory_space<vmem>>) attributes {dimension_semantics = [#tpu.dimension_semantics<parallel>], iteration_bounds = array<i64: 2>, scalar_prefetch = 0 : i64, scratch_operands = 0 : i64, tpu.core_type = #tpu.core_type<tc>, window_params = [{transform_indices = @transform_0, window_bounds = array<i64: 1, 16, 16, 128>}, {pipeline_mode = #tpu.pipeline_mode<synchronous>, transform_indices = @transform_1, window_bounds = array<i64: 128, 32>}, {pipeline_mode = #tpu.pipeline_mode<synchronous>, transform_indices = @transform_2, window_bounds = array<i64: 1, 32>}, {pipeline_mode = #tpu.pipeline_mode<synchronous>, transform_indices = @transform_3, window_bounds = array<i64: 288, 32>}, {pipeline_mode = #tpu.pipeline_mode<synchronous>, transform_indices = @transform_4, window_bounds = array<i64: 1, 32>}, {pipeline_mode = #tpu.pipeline_mode<synchronous>, transform_indices = @transform_5, window_bounds = array<i64: 32, 128>}, {pipeline_mode = #tpu.pipeline_mode<synchronous>, transform_indices = @transform_6, window_bounds = array<i64: 1, 128>}, {transform_indices = @transform_7, window_bounds = array<i64: 1, 16, 16, 128>}]} {
    %c0 = arith.constant 0 : index
    %c0_0 = arith.constant 0 : index
    %c0_1 = arith.constant 0 : index
    %c0_2 = arith.constant 0 : index
    %0 = vector.load %arg1[%c0, %c0_0, %c0_1, %c0_2] : memref<1x16x16x128xbf16, #tpu.memory_space<vmem>>, vector<1x16x16x128xbf16>
    %1 = vector.shape_cast %0 : vector<1x16x16x128xbf16> to vector<16x16x128xbf16>
    %2 = vector.shape_cast %1 : vector<16x16x128xbf16> to vector<256x128xbf16>
    %c0_3 = arith.constant 0 : index
    %c0_4 = arith.constant 0 : index
    %3 = vector.load %arg2[%c0_3, %c0_4] : memref<128x32xbf16, #tpu.memory_space<vmem>>, vector<128x32xbf16>
    %cst = arith.constant dense<0.000000e+00> : vector<256x32xf32>
    %4 = tpu.matmul %2, %3, %cst {dimension_numbers = #tpu.dot_dimension_numbers<[1], [0], [0], [1], [0, 0, 1, 1], [], []>} : vector<256x128xbf16>, vector<128x32xbf16>, vector<256x32xf32> -> vector<256x32xf32>
    %c0_5 = arith.constant 0 : index
    %c0_6 = arith.constant 0 : index
    %5 = vector.load %arg3[%c0_5, %c0_6] : memref<1x32xf32, #tpu.memory_space<vmem>>, vector<1x32xf32>
    %6 = vector.broadcast %5 : vector<1x32xf32> to vector<256x32xf32>
    %7 = arith.addf %4, %6 : vector<256x32xf32>
    %cst_7 = arith.constant 0.000000e+00 : f32
    %8 = vector.broadcast %cst_7 : f32 to vector<256x32xf32>
    %9 = arith.maximumf %7, %8 : vector<256x32xf32>
    %cst_8 = arith.constant 0.000000e+00 : f32
    %10 = vector.broadcast %cst_8 : f32 to vector<2x18x32xf32>
    %11 = vector.shape_cast %9 : vector<256x32xf32> to vector<16x16x32xf32>
    %cst_9 = arith.constant 0.000000e+00 : f32
    %12 = vector.broadcast %cst_9 : f32 to vector<16x2x32xf32>
    %13 = tpu.concatenate %11, %12 in 1 : vector<16x16x32xf32>, vector<16x2x32xf32> -> vector<16x18x32xf32>
    %14 = tpu.concatenate %10, %13, %10 in 0 : vector<2x18x32xf32>, vector<16x18x32xf32>, vector<2x18x32xf32> -> vector<20x18x32xf32>
    %15 = vector.shape_cast %14 : vector<20x18x32xf32> to vector<360x32xf32>
    %16 = vector.extract_strided_slice %15 {offsets = [17, 0], sizes = [288, 32], strides = [1, 1]} : vector<360x32xf32> to vector<288x32xf32>
    %17 = arith.truncf %16 : vector<288x32xf32> to vector<288x32xbf16>
    %18 = vector.extract_strided_slice %15 {offsets = [18, 0], sizes = [288, 32], strides = [1, 1]} : vector<360x32xf32> to vector<288x32xf32>
    %19 = arith.truncf %18 : vector<288x32xf32> to vector<288x32xbf16>
    %20 = vector.extract_strided_slice %15 {offsets = [19, 0], sizes = [288, 32], strides = [1, 1]} : vector<360x32xf32> to vector<288x32xf32>
    %21 = arith.truncf %20 : vector<288x32xf32> to vector<288x32xbf16>
    %22 = vector.extract_strided_slice %15 {offsets = [35, 0], sizes = [288, 32], strides = [1, 1]} : vector<360x32xf32> to vector<288x32xf32>
    %23 = arith.truncf %22 : vector<288x32xf32> to vector<288x32xbf16>
    %24 = vector.extract_strided_slice %15 {offsets = [36, 0], sizes = [288, 32], strides = [1, 1]} : vector<360x32xf32> to vector<288x32xf32>
    %25 = arith.truncf %24 : vector<288x32xf32> to vector<288x32xbf16>
    %26 = vector.extract_strided_slice %15 {offsets = [37, 0], sizes = [288, 32], strides = [1, 1]} : vector<360x32xf32> to vector<288x32xf32>
    %27 = arith.truncf %26 : vector<288x32xf32> to vector<288x32xbf16>
    %28 = vector.extract_strided_slice %15 {offsets = [53, 0], sizes = [288, 32], strides = [1, 1]} : vector<360x32xf32> to vector<288x32xf32>
    %29 = arith.truncf %28 : vector<288x32xf32> to vector<288x32xbf16>
    %30 = vector.extract_strided_slice %15 {offsets = [54, 0], sizes = [288, 32], strides = [1, 1]} : vector<360x32xf32> to vector<288x32xf32>
    %31 = arith.truncf %30 : vector<288x32xf32> to vector<288x32xbf16>
    %32 = vector.extract_strided_slice %15 {offsets = [55, 0], sizes = [288, 32], strides = [1, 1]} : vector<360x32xf32> to vector<288x32xf32>
    %33 = arith.truncf %32 : vector<288x32xf32> to vector<288x32xbf16>
    %34 = tpu.concatenate %17, %19, %21, %23, %25, %27, %29, %31, %33 in 1 : vector<288x32xbf16>, vector<288x32xbf16>, vector<288x32xbf16>, vector<288x32xbf16>, vector<288x32xbf16>, vector<288x32xbf16>, vector<288x32xbf16>, vector<288x32xbf16>, vector<288x32xbf16> -> vector<288x288xbf16>
    %c0_10 = arith.constant 0 : index
    %c0_11 = arith.constant 0 : index
    %35 = vector.load %arg4[%c0_10, %c0_11] : memref<288x32xbf16, #tpu.memory_space<vmem>>, vector<288x32xbf16>
    %cst_12 = arith.constant dense<0.000000e+00> : vector<288x32xf32>
    %36 = tpu.matmul %34, %35, %cst_12 {dimension_numbers = #tpu.dot_dimension_numbers<[1], [0], [0], [1], [0, 0, 1, 1], [], []>} : vector<288x288xbf16>, vector<288x32xbf16>, vector<288x32xf32> -> vector<288x32xf32>
    %c0_13 = arith.constant 0 : index
    %c0_14 = arith.constant 0 : index
    %37 = vector.load %arg5[%c0_13, %c0_14] : memref<1x32xf32, #tpu.memory_space<vmem>>, vector<1x32xf32>
    %38 = vector.broadcast %37 : vector<1x32xf32> to vector<288x32xf32>
    %39 = arith.addf %36, %38 : vector<288x32xf32>
    %cst_15 = arith.constant 0.000000e+00 : f32
    %40 = vector.broadcast %cst_15 : f32 to vector<288x32xf32>
    %41 = arith.maximumf %39, %40 : vector<288x32xf32>
    %42 = vector.shape_cast %41 : vector<288x32xf32> to vector<16x18x32xf32>
    %43 = vector.extract_strided_slice %42 {offsets = [0, 0, 0], sizes = [16, 16, 32], strides = [1, 1, 1]} : vector<16x18x32xf32> to vector<16x16x32xf32>
    %44 = vector.shape_cast %43 : vector<16x16x32xf32> to vector<256x32xf32>
    %45 = arith.truncf %44 : vector<256x32xf32> to vector<256x32xbf16>
    %c0_16 = arith.constant 0 : index
    %c0_17 = arith.constant 0 : index
    %46 = vector.load %arg6[%c0_16, %c0_17] : memref<32x128xbf16, #tpu.memory_space<vmem>>, vector<32x128xbf16>
    %cst_18 = arith.constant dense<0.000000e+00> : vector<256x128xf32>
    %47 = tpu.matmul %45, %46, %cst_18 {dimension_numbers = #tpu.dot_dimension_numbers<[1], [0], [0], [1], [0, 0, 1, 1], [], []>} : vector<256x32xbf16>, vector<32x128xbf16>, vector<256x128xf32> -> vector<256x128xf32>
    %c0_19 = arith.constant 0 : index
    %c0_20 = arith.constant 0 : index
    %48 = vector.load %arg7[%c0_19, %c0_20] : memref<1x128xf32, #tpu.memory_space<vmem>>, vector<1x128xf32>
    %49 = vector.broadcast %48 : vector<1x128xf32> to vector<256x128xf32>
    %50 = arith.addf %47, %49 : vector<256x128xf32>
    %51 = arith.extf %2 : vector<256x128xbf16> to vector<256x128xf32>
    %52 = arith.addf %50, %51 : vector<256x128xf32>
    %cst_21 = arith.constant 0.000000e+00 : f32
    %53 = vector.broadcast %cst_21 : f32 to vector<256x128xf32>
    %54 = arith.maximumf %52, %53 : vector<256x128xf32>
    %55 = vector.shape_cast %54 : vector<256x128xf32> to vector<16x16x128xf32>
    %c0_22 = arith.constant 0 : index
    %c0_23 = arith.constant 0 : index
    %c0_24 = arith.constant 0 : index
    %c0_25 = arith.constant 0 : index
    %56 = vector.load %arg8[%c0_22, %c0_23, %c0_24, %c0_25] : memref<1x16x16x128xf32, #tpu.memory_space<vmem>>, vector<1x16x16x128xf32>
    %57 = vector.shape_cast %56 : vector<1x16x16x128xf32> to vector<16x16x128xf32>
    %58 = vector.shape_cast %55 : vector<16x16x128xf32> to vector<1x16x16x128xf32>
    tpu.vector_store %arg8[%c0_22, %c0_23, %c0_24, %c0_25], %58 {strides = array<i32>} : memref<1x16x16x128xf32, #tpu.memory_space<vmem>>, vector<1x16x16x128xf32>,
    return
  }
  func.func @transform_0(%arg0: i32) -> (i32, i32, i32, i32) {
    %c0_i32 = arith.constant 0 : i32
    %c0_i32_0 = arith.constant 0 : i32
    %c0_i32_1 = arith.constant 0 : i32
    %c0_i32_2 = arith.constant 0 : i32
    return %arg0, %c0_i32, %c0_i32_0, %c0_i32_1 : i32, i32, i32, i32
  }
  func.func @transform_1(%arg0: i32) -> (i32, i32) {
    %c0_i32 = arith.constant 0 : i32
    %c0_i32_0 = arith.constant 0 : i32
    %c0_i32_1 = arith.constant 0 : i32
    return %c0_i32, %c0_i32_0 : i32, i32
  }
  func.func @transform_2(%arg0: i32) -> (i32, i32) {
    %c0_i32 = arith.constant 0 : i32
    %c0_i32_0 = arith.constant 0 : i32
    %c0_i32_1 = arith.constant 0 : i32
    return %c0_i32, %c0_i32_0 : i32, i32
  }
  func.func @transform_3(%arg0: i32) -> (i32, i32) {
    %c0_i32 = arith.constant 0 : i32
    %c0_i32_0 = arith.constant 0 : i32
    %c0_i32_1 = arith.constant 0 : i32
    return %c0_i32, %c0_i32_0 : i32, i32
  }
  func.func @transform_4(%arg0: i32) -> (i32, i32) {
    %c0_i32 = arith.constant 0 : i32
    %c0_i32_0 = arith.constant 0 : i32
    %c0_i32_1 = arith.constant 0 : i32
    return %c0_i32, %c0_i32_0 : i32, i32
  }
  func.func @transform_5(%arg0: i32) -> (i32, i32) {
    %c0_i32 = arith.constant 0 : i32
    %c0_i32_0 = arith.constant 0 : i32
    %c0_i32_1 = arith.constant 0 : i32
    return %c0_i32, %c0_i32_0 : i32, i32
  }
  func.func @transform_6(%arg0: i32) -> (i32, i32) {
    %c0_i32 = arith.constant 0 : i32
    %c0_i32_0 = arith.constant 0 : i32
    %c0_i32_1 = arith.constant 0 : i32
    return %c0_i32, %c0_i32_0 : i32, i32
  }
  func.func @transform_7(%arg0: i32) -> (i32, i32, i32, i32) {
    %c0_i32 = arith.constant 0 : i32
    %c0_i32_0 = arith.constant 0 : i32
    %c0_i32_1 = arith.constant 0 : i32
    %c0_i32_2 = arith.constant 0 : i32
    return %arg0, %c0_i32, %c0_i32_0, %c0_i32_1 : i32, i32, i32, i32
  }
}

</mosaic_0001>

<bundles_post_ra>
// kernel: tpu_custom_call.1
= control target key start
LH: loop header
LB: loop body
LE: loop exit
PB: predicated region body
PF: predicated region fallthrough
CT: control target
= control target key end

     0   :  { %12 = vsyncpa [#allocation3], 0  ;;  %s10598_s0 = inlined_call_operand.vmem [shape: bf16[2,16,16,128], index: 0, kind: input, shape index: {}]   ;;  %s10599_s1 = inlined_call_operand.vmem [shape: bf16[128,32], index: 1, kind: input, shape index: {}]   ;;  %s10600_s2 = inlined_call_operand.vmem [shape: f32[1,32], index: 2, kind: input, shape index: {}]   ;;  %s10601_s3 = inlined_call_operand.vmem [shape: bf16[288,32], index: 3, kind: input, shape index: {}]   ;;  %s10602_s4 = inlined_call_operand.vmem [shape: f32[1,32], index: 4, kind: input, shape index: {}]   ;;  %s10603_s5 = inlined_call_operand.vmem [shape: bf16[32,128], index: 5, kind: input, shape index: {}]   ;;  %s10604_s6 = inlined_call_operand.vmem [shape: f32[1,128], index: 6, kind: input, shape index: {}]   ;;  %s10605_s7 = inlined_call_operand.hbm [shape: f32[2,16,16,128], index: 7, kind: output, shape index: {}]  }
   0x1   :  { %14 = vsyncpa [#allocation3 + $0x1], 0  ;;  %s6938_s24 = smov 0   ;;  %s6940_s25 = smov 0  }
   0x2   :  { %s6942_s26 = smov 0   ;;  %s6944_s27 = smov 0  }
   0x3 LB: > { %s6959_s28 = sadd.s32 4294967295, %s6887_s27   ;;  %s6413_s29 = sadd.s32 4294967294, %s6887_s27   ;;  %s6887_s27 = sphi %s6944_s27, %s11356_s27   ;;  %s6883_s26 = sphi %s6942_s26, %s11355_s26   ;;  %s6879_s25 = sphi %s6940_s25, %s11354_s25   ;;  %s6875_s24 = sphi %s6938_s24, %s11353_s24  }
   0x4   : > { %s6963_s30 = sadd.s32 1, %s6887_s27   ;;  %s179_s8 = sadd.s32 1, %s6883_s26 }
   0x5   : > { %s176_s9 = ssub.s32 %s6887_s27, %s6963_s30  ;;  %p189_p0 = scmp.ne.s32.totalorder %s6883_s26, %s6879_s25 }
   0x6   : > { %p177_p1 = scmp.eq.s32.totalorder %s176_s9, 0  ;;  %p190_p2 = scmp.eq.s32.totalorder %s6959_s28, 1 }
   0x7   : > { %p195_p3 = scmp.ne.s32.totalorder %s6879_s25, %s6875_s24  ;;  %p196_p4 = scmp.eq.s32.totalorder %s6413_s29, 1 }
   0x8   : > { %s6974_s10 = scalar_select %p177_p1, %s6883_s26, %s179_s8  }
   0x9   : > { %p6976_p5 = por %p190_p2, %p189_p0  ;;  %p6980_p6 = por %p196_p4, %p195_p3 }
   0xa   : > { %p6416_p7 = scmp.ge.s32.totalorder %s6887_s27, 1  ;;  %p240_p8 = scmp.lt.s32.totalorder %s6887_s27, 3 }
   0xc   : > { %p241_p9 = pnand %p6416_p7, %p240_p8 }
   0xe   : > { %244 = sbr.rel (%p241_p9) target bundleno = 1177 (0x499), region = 48 }
  0x15   : > { %v6745_v0 = vld [vmem:[%s10599_s1] sm:$0xff]   ;;  %p272_p10 = scmp.lt.s32.totalorder %s6959_s28, 1  ;;  %v6746_v1 = vld [vmem:[%s10599_s1 + $0x8] sm:$0xff]   ;;  %v6747_v2 = vld [vmem:[%s10599_s1 + $0x10] sm:$0xff]   ;;  %v6889_v24 = vmov 1983009808   ;;  %v706_v26 = vlaneseq }
  0x16   : > { %6570 = vmatprep.subr.bf16.mxu0 %v6745_v0  ;;  %v6748_v3 = vld [vmem:[%s10599_s1 + $0x18] sm:$0xff]   ;;  %v6749_v5 = vld [vmem:[%s10599_s1 + $0x20] sm:$0xff]   ;;  %v6750_v6 = vld [vmem:[%s10599_s1 + $0x28] sm:$0xff]   ;;  %v704_v25 = vunpack.c.l.s4 %v6889_v24  ;;  %v6890_v30 = vmov 0.0   ;;  %s6892_s21 = smov 32   ;;  %s6894_s19 = smov 96  }
  0x17   : > { %s273_s17 = scalar_select %p272_p10, %s6959_s28, 1  ;;  %6571 = vmatpush3.bf16.msra.mxu0 %v6745_v0  ;;  %v6751_v7 = vld [vmem:[%s10599_s1 + $0x30] sm:$0xff]   ;;  %v6752_v8 = vld [vmem:[%s10599_s1 + $0x38] sm:$0xff]   ;;  %v707_v28 = vshrl.u32 %v706_v26, 7  ;;  %v710_v32 = vcombine.high %v6890_v30, %v6890_v30  ;;  %v6769_v47 = vld [vmem:[%s10601_s3 + $0x80] sm:$0xff]   ;;  %vm3530_vm2 = vcmask 261120  }
  0x18   : > { %6572 = vmatprep.subr.bf16.mxu0 %v6746_v1  ;;  %v705_v27 = vunpack.c.0.s8 %v704_v25  ;;  %v6770_v48 = vld [vmem:[%s10601_s3 + $0x88] sm:$0xff]   ;;  %v7068_v49 = vld [vmem:[%s10600_s2] ss:$0 sm:$0xff]  ;;  %vm2835_vm0 = vsmask.f32 256  ;;  %vm3588_vm3 = vcmask 523264  }
  0x19   : > { %s6506_s20 = sshll.u32 %s273_s17, 7  ;;  %vm3841_vm1 = vsmask.f32 7424  ;;  %vm3627_vm4 = vcmask 785408   ;;  %s269_s18 = sand.u32 1, %s6879_s25  }
  0x1a   : > { %s7000_s23 = scalar_lea.vmem %s10598_s0, %s6506_s20  ;;  %v7033_v29 = vsub.s32 %v705_v27, %v707_v28  ;;  %s6891_s20 = smov 64  }
  0x1b   : > { %6573 = vmatpush3.bf16.msra.mxu0 %v6746_v1  ;;  %v278_v4 = vld [vmem:[%s7000_s23] sm:$0xff]   ;;  %v280_v9 = vld [vmem:[%s7000_s23 + $0x8] sm:$0xff]   ;;  %v282_v10 = vld [vmem:[%s7000_s23 + $0x10] sm:$0xff]   ;;  %s6417_s8 = sshll.u32 %s269_s18, 8  ;;  %s6895_s15 = smov [#allocation2]  }
  0x1c   : > { %6574 = vmatprep.subr.bf16.mxu0 %v6747_v2  ;;  %6586 = vmatprep.mubr.bf16.mxu0 %v278_v4  ;;  %v284_v11 = vld [vmem:[%s7000_s23 + $0x18] sm:$0xff]   ;;  %v286_v12 = vld [vmem:[%s7000_s23 + $0x20] sm:$0xff]   ;;  %v288_v13 = vld [vmem:[%s7000_s23 + $0x28] sm:$0xff]   ;;  %v7036_v31 = vrot.slane %v6890_v30, %v7033_v29  ;;  %v7039_v33 = vrot.slane %v710_v32, %v7033_v29  ;;  %s10470_s9 = scalar_lea.vmem [#allocation2], %s6417_s8  ;;  %s6829_s16 = sshll.u32 %s6895_s15, 4  ;;  %s6830_s16 = int_to_ptr.vmem [resolvable:$false] %s6829_s16 }
  0x1d   : > { %v290_v14 = vld [vmem:[%s7000_s23 + $0x30] sm:$0xff]   ;;  %v292_v15 = vld [vmem:[%s7000_s23 + $0x38] sm:$0xff]   ;;  %v294_v16 = vld [vmem:[%s7000_s23 + $0x40] sm:$0xff]   ;;  %s6351_s13 = sshll.u32 %s10470_s9, 4  ;;  %s6831_s17 = scalar_lea.vmem %s6830_s16, 8192  ;;  %s10550_s13 = int_to_ptr.vmem [resolvable:$true] %s6351_s13 }
  0x1e   : > { %v296_v17 = vld [vmem:[%s7000_s23 + $0x48] sm:$0xff]   ;;  %v298_v18 = vld [vmem:[%s7000_s23 + $0x50] sm:$0xff]   ;;  %v300_v19 = vld [vmem:[%s7000_s23 + $0x58] sm:$0xff]   ;;  %10838 = vst [vmem:[#allocation5_spill] sm:$0xff] %v7039_v33  ;;  %v7043_v34 = vcombine.high %v7036_v31, %v7036_v31  ;;  %v719_v35 = vcombine.high %v7039_v33, %v7039_v33  ;;  %p6832_p0 = scmp.lt.s32.totalorder %s10550_s13, %s6830_s16 }
  0x1f   : > { %6575 = vmatpush3.bf16.msra.mxu0 %v6747_v2  ;;  %v302_v20 = vld [vmem:[%s7000_s23 + $0x60] sm:$0xff]   ;;  %v304_v21 = vld [vmem:[%s7000_s23 + $0x68] sm:$0xff]   ;;  %v306_v22 = vld [vmem:[%s7000_s23 + $0x70] sm:$0xff]  }
  0x20   : > { %6576 = vmatprep.subr.bf16.mxu0 %v6748_v3  ;;  %v308_v23 = vld [vmem:[%s7000_s23 + $0x78] sm:$0xff]   ;;  %10839 = vst [vmem:[#allocation6_spill] sm:$0xff] %v7043_v34  ;;  %v1923_v36 = vcombine.low %v7036_v31, %v7043_v34  ;;  %v1924_v37 = vcombine.low %v7039_v33, %v719_v35 }
  0x22   : > { %v1931_v38 = vrot.slane %v1923_v36, %v7033_v29  ;;  %v1938_v39 = vrot.slane %v1924_v37, %v7033_v29 }
  0x23   : > { %6577 = vmatpush3.bf16.msra.mxu0 %v6748_v3 }
  0x24   : > { %6578 = vmatprep.subr.bf16.mxu0 %v6749_v5  ;;  %v1939_v40 = vcombine.low %v1931_v38, %v1938_v39 }
  0x26   : > { %v2553_v41 = vpack.c.bf16 %v1939_v40, %v1939_v40 }
  0x27   : > { %6579 = vmatpush3.bf16.msra.mxu0 %v6749_v5 }
  0x28   : > { %6580 = vmatprep.subr.bf16.mxu0 %v6750_v6  ;;  %v2837_v42 = vshrl.u32 %v2553_v41, 16  ;;  %v2840_v44 = vshll.u32 %v2553_v41, 16  ;;  %3036 = vrot.lane.b32.xlu1 %v2553_v41, %s6891_s20 }
  0x2a   : > { %v7052_v43 = vrot.slane %v2837_v42, 7 }
  0x2b   : > { %6581 = vmatpush3.bf16.msra.mxu0 %v6750_v6 }
  0x2c   : > { %6582 = vmatprep.subr.bf16.mxu0 %v6751_v7  ;;  %10840 = vst [vmem:[#allocation7_spill] sm:$0xff] %v7052_v43  ;;  %v2842_v45 = vor.u32 %v2840_v44, %v7052_v43 }
  0x2e   : > { %2979 = vrot.lane.b32.xlu0 %v2842_v45, %s6892_s21 }
  0x2f   : > { %6583 = vmatpush3.bf16.msra.mxu0 %v6751_v7 }
  0x30   : > { %6584 = vmatprep.subr.bf16.mxu0 %v6752_v8 }
  0x33   : > { %6585 = vmatpush3.bf16.msra.mxu0 %v6752_v8 }
  0x34   : > { %6618 = vmatprep.subr.bf16.mxu0 %v6769_v47 }
  0x36   : > { %6587 = vmatmul.mubr.bf16.vlgmr.msra.gmra.mrb[0].mxu0 %v280_v9 }
  0x37   : > { %6590 = vmatprep.mubr.bf16.mxu0 %v282_v10  ;;  %6619 = vmatpush3.bf16.msra.mxu0 %v6769_v47  ;;  %v1281_v10 = vcombine.low %v719_v35, %v7036_v31 }
  0x38   : > { %6620 = vmatprep.subr.bf16.mxu0 %v6770_v48 }
  0x3b   : > { %6621 = vmatpush3.bf16.msra.mxu0 %v6770_v48 }
  0x3e   : > { %6591 = vmatmul.mubr.bf16.gmra.mrb[4].mxu0 %v284_v11 }
  0x3f   : > { %6594 = vmatprep.mubr.bf16.mxu0 %v286_v12 }
  0x46   : > { %6595 = vmatmul.mubr.bf16.gmra.mrb[8].mxu0 %v288_v13 }
  0x47   : > { %6598 = vmatprep.mubr.bf16.mxu0 %v290_v14 }
  0x4e   : > { %6599 = vmatmul.mubr.bf16.gmra.mrb[12].mxu0 %v292_v15 }
  0x4f   : > { %6602 = vmatprep.mubr.bf16.mxu0 %v294_v16 }
  0x56   : > { %6603 = vmatmul.mubr.bf16.gmra.mrb[16].mxu0 %v296_v17 }
  0x57   : > { %6606 = vmatprep.mubr.bf16.mxu0 %v298_v18 }
  0x5e   : > { %6607 = vmatmul.mubr.bf16.gmra.mrb[20].mxu0 %v300_v19 }
  0x5f   : > { %6610 = vmatprep.mubr.bf16.mxu0 %v302_v20 }
  0x66   : > { %6611 = vmatmul.mubr.bf16.gmra.mrb[24].mxu0 %v304_v21 }
  0x67   : > { %6614 = vmatprep.mubr.bf16.mxu0 %v306_v22  ;;  %v7111_v22 = vrot.slane %v1281_v10, %v7033_v29 }
  0x69   : > { %10841 = vst [vmem:[#allocation8_spill] sm:$0xff] %v7111_v22 }
  0x6e   : > { %6615 = vmatmul.mubr.bf16.gmra.mrb[28].mxu0 %v308_v23 }
 0x109   : > { %v6588_v50 = vpop.f32.mrb[0].mxu0 }
 0x10a   : > { %v520_v51 = vadd.f32 %v6588_v50, %v7068_v49  ;;  %v511_v52 = vpop.f32.mrb[1].mxu0 }
 0x10b   : > { %v512_v53 = vadd.f32 %v7068_v49, %v511_v52  ;;  %v6589_v54 = vpop.f32.mrb[2].mxu0 }
 0x10c   : > { %v640_v55 = vmax.f32 %v520_v51, 0.0  ;;  %v523_v56 = vadd.f32 %v6589_v54, %v7068_v49  ;;  %v514_v57 = vpop.f32.mrb[3].mxu0 }
 0x10d   : > { %v638_v58 = vmax.f32 %v512_v53, 0.0  ;;  %v515_v59 = vadd.f32 %v7068_v49, %v514_v57 }
 0x10e   : > { %v754_v60 = vcombine.high %v640_v55, %v640_v55  ;;  %v641_v62 = vmax.f32 %v523_v56, 0.0  ;;  %v761_v0 = vrot.slane %v640_v55, %v7033_v29 }
 0x10f   : > { %v720_v61 = vcombine.high %v638_v58, %v638_v58  ;;  %v639_v2 = vmax.f32 %v515_v59, 0.0  ;;  %v7094_v12 = vrot.slane %v638_v58, %v7033_v29 }
 0x110   : > { %v7075_v63 = vrot.slane %v754_v60, %v7033_v29  ;;  %v7088_v7 = vrot.slane %v641_v62, %v7033_v29  ;;  %v7091_v11 = vcombine.high %v761_v0, %v761_v0  ;;  %v1317_v15 = vcombine.low %v7036_v31, %v761_v0 }
 0x111   : > { %v7079_v1 = vrot.slane %v720_v61, %v7033_v29  ;;  %v6592_v3 = vpop.f32.mrb[4].mxu0  ;;  %v7098_v14 = vrot.slane %v639_v2, %v7033_v29  ;;  %v771_v16 = vcombine.high %v641_v62, %v641_v62  ;;  %v7106_v19 = vcombine.high %v7094_v12, %v7094_v12 }
 0x112   : > { %v770_v4 = vcombine.high %v7075_v63, %v7075_v63  ;;  %v527_v5 = vpop.f32.mrb[5].mxu0  ;;  %v1975_v18 = vcombine.low %v761_v0, %v7091_v11  ;;  %v1940_v20 = vcombine.low %v7036_v31, %v7094_v12  ;;  %v536_v24 = vadd.f32 %v6592_v3, %v7068_v49 }
 0x113   : > { %v7085_v6 = vcombine.high %v7079_v1, %v7079_v1  ;;  %v6593_v8 = vpop.f32.mrb[6].mxu0  ;;  %v528_v25 = vadd.f32 %v7068_v49, %v527_v5  ;;  %v7120_v28 = vrot.slane %v1317_v15, %v7033_v29  ;;  %v7125_v32 = vrot.slane %v771_v16, %v7033_v29 }
 0x114   : > { %v530_v9 = vpop.f32.mrb[7].mxu0  ;;  %v1334_v13 = vcombine.low %v770_v4, %v7088_v7  ;;  %v1991_v23 = vcombine.low %v7075_v63, %v770_v4  ;;  %v539_v26 = vadd.f32 %v6593_v8, %v7068_v49  ;;  %v7132_v37 = vcombine.high %v7088_v7, %v7088_v7 }
 0x115   : > { %v1957_v17 = vcombine.low %v7085_v6, %v7098_v14  ;;  %10842 = vst [vmem:[#allocation9_spill] sm:$0xff] %v7120_v28  ;;  %v531_v35 = vadd.f32 %v7068_v49, %v530_v9  ;;  %v644_v38 = vmax.f32 %v536_v24, 0.0  ;;  %v642_v39 = vmax.f32 %v528_v25, 0.0 }
 0x116   : > { %v645_v40 = vmax.f32 %v539_v26, 0.0  ;;  %v7141_v45 = vrot.slane %v1940_v20, %v7033_v29  ;;  %v737_v47 = vcombine.high %v639_v2, %v639_v2  ;;  %v7144_v48 = vrot.slane %v1975_v18, %v7033_v29 }
 0x117   : > { %v7147_v50 = vrot.slane %v1991_v23, %v7033_v29  ;;  %v822_v51 = vcombine.high %v644_v38, %v644_v38  ;;  %v788_v52 = vcombine.high %v642_v39, %v642_v39  ;;  %v7153_v54 = vcombine.high %v7125_v32, %v7125_v32 }
 0x118   : > { %v7156_v55 = vrot.slane %v645_v40, %v7033_v29  ;;  %v643_v56 = vmax.f32 %v531_v35, 0.0  ;;  %v7168_v61 = vrot.slane %v1334_v13, %v7033_v29  ;;  %v1992_v62 = vcombine.low %v7088_v7, %v7132_v37 }
 0x119   : > { %v6596_v21 = vpop.f32.mrb[8].mxu0  ;;  %v7161_v58 = vrot.slane %v822_v51, %v7033_v29  ;;  %v7164_v59 = vrot.slane %v788_v52, %v7033_v29  ;;  %v7173_v0 = vrot.slane %v737_v47, %v7033_v29  ;;  %v7176_v2 = vrot.slane %v644_v38, %v7033_v29 }
 0x11a   : > { %v7117_v27 = vpop.f32.mrb[9].mxu0  ;;  %v552_v60 = vadd.f32 %v6596_v21, %v7068_v49  ;;  %10843 = vst [vmem:[#allocation10_spill] sm:$0xff] %v7168_v61  ;;  %v7184_v5 = vcombine.high %v7098_v14, %v7098_v14  ;;  %v7192_v7 = vcombine.high %v7156_v55, %v7156_v55  ;;  %v839_v13 = vcombine.high %v645_v40, %v645_v40 }
 0x11b   : > { %v7128_v36 = vpop.f32.mrb[10].mxu0  ;;  %v7188_v8 = vcombine.high %v7161_v58, %v7161_v58  ;;  %v805_v15 = vcombine.high %v643_v56, %v643_v56  ;;  %v7199_v16 = vrot.slane %v643_v56, %v7033_v29  ;;  %v7207_v21 = vcombine.high %v7164_v59, %v7164_v59 }
 0x11c   : > { %v7134_v41 = vpop.f32.mrb[11].mxu0  ;;  %v648_v24 = vmax.f32 %v552_v60, 0.0  ;;  %v7214_v26 = vrot.slane %v1992_v62, %v7033_v29  ;;  %v2008_v35 = vcombine.low %v7125_v32, %v7153_v54  ;;  %v7220_v38 = vcombine.high %v7173_v0, %v7173_v0 }
 0x11d   : > { %v2060_v20 = vcombine.low %v7161_v58, %v7188_v8  ;;  %v7224_v40 = vcombine.high %v7176_v2, %v7176_v2  ;;  %v7232_v52 = vrot.slane %v642_v39, %v7033_v29  ;;  %v2076_v56 = vcombine.low %v7156_v55, %v7192_v7 }
 0x11e   : > { %v7239_v62 = vrot.slane %v839_v13, %v7033_v29  ;;  %v7242_v46 = vrot.slane %v805_v15, %v7033_v29  ;;  %v7246_v4 = vcombine.high %v7199_v16, %v7199_v16  ;;  %v7252_v39 = vrot.slane %v1957_v17, %v7033_v29 }
 0x11f   : > { %v7229_v51 = vrot.slane %v2060_v20, %v7033_v29  ;;  %v7255_v20 = vrot.slane %v2076_v56, %v7033_v29  ;;  %v2026_v13 = vcombine.low %v7207_v21, %v7199_v16  ;;  %v890_v10 = vcombine.high %v648_v24, %v648_v24 }
 0x120   : > { %10845 = vst [vmem:[#allocation12_spill] sm:$0xff] %v7239_v62  ;;  %v2059_v15 = vcombine.low %v7176_v2, %v7224_v40  ;;  %v7263_v47 = vcombine.high %v7242_v46, %v7242_v46  ;;  %v2042_v53 = vcombine.low %v7246_v4, %v7242_v46  ;;  %v544_v17 = vadd.f32 %v7068_v49, %v7117_v27 }
 0x121   : > { %v7178_v3 = vpop.f32.mrb[12].mxu0  ;;  %10844 = vst [vmem:[#allocation11_spill] sm:$0xff] %v7229_v51  ;;  %10846 = vst [vmem:[#allocation13_spill] sm:$0xff] %v7255_v20  ;;  %v803_v56 = vcombine.high %v7232_v52, %v7232_v52  ;;  %v7276_v44 = vrot.slane %v2026_v13, %v7033_v29  ;;  %v555_v23 = vadd.f32 %v7128_v36, %v7068_v49 }
 0x122   : > { %v7194_v9 = vpop.f32.mrb[13].mxu0  ;;  %v7283_v30 = vrot.slane %v2008_v35, %v7033_v29  ;;  %v7287_v27 = vcombine.high %v7239_v62, %v7239_v62  ;;  %v2043_v22 = vcombine.low %v7263_v47, %v7036_v31  ;;  %v7292_v60 = vrot.slane %v2042_v53, %v7033_v29 }
 0x123   : > { %v7201_v18 = vpop.f32.mrb[14].mxu0  ;;  %v1316_v36 = vcombine.low %v7173_v0, %v7220_v38  ;;  %v1401_v35 = vcombine.low %v7036_v31, %v7176_v2  ;;  %v7303_v34 = vrot.slane %v890_v10, %v7033_v29  ;;  %v646_v43 = vmax.f32 %v544_v17, 0.0 }
 0x124   : > { %v7211_v25 = vpop.f32.mrb[15].mxu0  ;;  %v7311_v53 = vrot.slane %v2043_v22, %v7033_v29  ;;  %v1367_v33 = vcombine.low %v7232_v52, %v803_v56  ;;  %v2009_v2 = vcombine.low %v7036_v31, %v7232_v52  ;;  %v2025_v10 = vcombine.low %v803_v56, %v7164_v59 }
 0x125   : > { %10850 = vst [vmem:[#allocation17_spill] sm:$0xff] %v7303_v34  ;;  %v649_v20 = vmax.f32 %v555_v23, 0.0  ;;  %v856_v22 = vcombine.high %v646_v43, %v646_v43  ;;  %v7324_v51 = vrot.slane %v646_v43, %v7033_v29  ;;  %v7328_v17 = vcombine.high %v7303_v34, %v7303_v34 }
 0x126   : > { %10853 = vst [vmem:[#allocation20_spill] sm:$0xff] %v7311_v53  ;;  %v10854_v23 = vcombine.low %v7091_v11, %v7075_v63  ;;  %v10856_v56 = vcombine.low %v7132_v37, %v7125_v32  ;;  %v7350_v53 = vrot.slane %v1401_v35, %v7033_v29  ;;  %v7366_v35 = vrot.slane %v2009_v2, %v7033_v29 }
 0x127   : > { %v2093_v63 = vcombine.low %v7036_v31, %v7324_v51  ;;  %v907_v32 = vcombine.high %v649_v20, %v649_v20  ;;  %v7385_v2 = vrot.slane %v2025_v10, %v7033_v29  ;;  %v547_v10 = vadd.f32 %v7068_v49, %v7134_v41 }
 0x128   : > { %v7337_v52 = vrot.slane %v10854_v23, %v7033_v29  ;;  %10858 = vst [vmem:[#allocation23_spill] sm:$0xff] %v7350_v53  ;;  %v7357_v23 = vrot.slane %v648_v24, %v7033_v29  ;;  %v10871_v41 = vcombine.low %v7094_v12, %v7106_v19  ;;  %v7458_v12 = vrot.slane %v1316_v36, %v7033_v29 }
 0x129   : > { %v7269_v42 = vpop.f32.mrb[16].mxu0  ;;  %v7375_v24 = vrot.slane %v2093_v63, %v7033_v29  ;;  %v10864_v63 = vcombine.low %v7188_v8, %v7156_v55  ;;  %v6771_v8 = vld [vmem:[%s10601_s3] sm:$0xff]  }
 0x12a   : > { %10847 = vst [vmem:[#allocation14_spill] sm:$0xff] %v7269_v42  ;;  %v7280_v57 = vpop.f32.mrb[17].mxu0  ;;  %v7308_v42 = vrot.slane %v2059_v15, %v7033_v29  ;;  %10855 = vst [vmem:[#allocation21_spill] sm:$0xff] %v7337_v52  ;;  %v7343_v15 = vrot.slane %v10856_v56, %v7033_v29  ;;  %v7405_v37 = vcombine.high %v7357_v23, %v7357_v23 }
 0x12b   : > { %10848 = vst [vmem:[#allocation15_spill] sm:$0xff] %v7280_v57  ;;  %v7294_v13 = vpop.f32.mrb[18].mxu0  ;;  %10877 = vst [vmem:[#allocation36_spill] sm:$0xff] %v7458_v12 }
 0x12c   : > { %10849 = vst [vmem:[#allocation16_spill] sm:$0xff] %v7294_v13  ;;  %v7305_v57 = vpop.f32.mrb[19].mxu0  ;;  %10852 = vst [vmem:[#allocation19_spill] sm:$0xff] %v7308_v42  ;;  %v7331_v13 = vrot.slane %v649_v20, %v7033_v29  ;;  %v2620_v56 = vcombine.low %v7168_v61, %v7343_v15 }
 0x12d   : > { %10851 = vst [vmem:[#allocation18_spill] sm:$0xff] %v7305_v57  ;;  %v2077_v57 = vcombine.low %v7239_v62, %v7287_v27  ;;  %10857 = vst [vmem:[#allocation22_spill] sm:$0xff] %v7343_v15  ;;  %v7382_v15 = vrot.slane %v1367_v33, %v7033_v29  ;;  %v10869_v33 = vcombine.low %v7106_v19, %v7079_v1  ;;  %v10626_v19 = vmov 0  }
 0x12e   : > { %10866 = vst [vmem:[#allocation30_spill] sm:$0xff] %v7405_v37  ;;  %4355 = vmatprep.subr.bf16.mxu1 %v10626_v19 }
 0x12f   : > { %v7369_v42 = vrot.slane %v2077_v57, %v7033_v29  ;;  %10862 = vst [vmem:[#allocation27_spill] sm:$0xff] %v7382_v15  ;;  %v2619_v57 = vcombine.low %v7120_v28, %v7337_v52  ;;  %v7409_v52 = vcombine.high %v7324_v51, %v7324_v51  ;;  %v1955_v28 = vrot.slane %v10869_v33, %v7033_v29 }
 0x130   : > { %v10873_v33 = vcombine.low %v7079_v1, %v7085_v6  ;;  %v2128_v6 = vcombine.low %v7357_v23, %v7405_v37  ;;  %4356 = vmatpush1.bf16.msra.mxu1 %v6771_v8 }
 0x131   : > { %v7354_v11 = vpop.f32.mrb[20].mxu0  ;;  %v7414_v55 = vpack.c.bf16 %v2620_v56, %v2619_v57  ;;  %v7441_v57 = vrot.slane %v10871_v41, %v7033_v29  ;;  %4357 = vmatprep.subr.bf16.mxu1 %v10626_v19 }
 0x132   : > { %10859 = vst [vmem:[#allocation24_spill] sm:$0xff] %v7354_v11  ;;  %v7363_v43 = vpop.f32.mrb[21].mxu0  ;;  %v7372_v11 = vrot.slane %v856_v22, %v7033_v29  ;;  %v7412_v22 = vrot.slane %v907_v32, %v7033_v29  ;;  %v10870_v32 = vcombine.low %v7184_v5, %v7173_v0  ;;  %v10875_v0 = vcombine.low %v7098_v14, %v7184_v5 }
 0x133   : > { %10860 = vst [vmem:[#allocation25_spill] sm:$0xff] %v7363_v43  ;;  %v7377_v20 = vpop.f32.mrb[22].mxu0  ;;  %10868 = vst [vmem:[#allocation32_spill] sm:$0xff] %v7414_v55  ;;  %3277 = vrot.lane.b32.xlu0 %v7414_v55, %s6892_s21  ;;  %3313 = vrot.lane.b32.xlu1 %v7414_v55, %s6891_s20  ;;  %v647_v43 = vmax.f32 %v547_v10, 0.0  ;;  %v1956_v55 = vcombine.low %v7141_v45, %v1955_v28  ;;  %v568_v5 = vadd.f32 %v7178_v3, %v7068_v49 }
 0x134   : > { %10861 = vst [vmem:[#allocation26_spill] sm:$0xff] %v7377_v20  ;;  %v7389_v61 = vpop.f32.mrb[23].mxu0  ;;  %v7397_v20 = vrot.slane %v10864_v63, %v7033_v29  ;;  %10867 = vst [vmem:[#allocation31_spill] sm:$0xff] %v7412_v22  ;;  %v7421_v63 = vcombine.high %v7372_v11, %v7372_v11  ;;  %v1972_v56 = vrot.slane %v10870_v32, %v7033_v29 }
 0x135   : > { %10863 = vst [vmem:[#allocation28_spill] sm:$0xff] %v7389_v61  ;;  %10872 = vst [vmem:[#allocation33_spill] sm:$0xff] %v7441_v57  ;;  %v7447_v61 = vrot.slane %v10873_v33, %v7033_v29  ;;  %v7453_v32 = vrot.slane %v10875_v0, %v7033_v29  ;;  %v560_v28 = vadd.f32 %v7068_v49, %v7194_v9  ;;  %v652_v33 = vmax.f32 %v568_v5, 0.0 }
 0x136   : > { %10865 = vst [vmem:[#allocation29_spill] sm:$0xff] %v7397_v20  ;;  %v1973_v62 = vcombine.low %v7252_v39, %v1972_v56  ;;  %v6772_v39 = vld [vmem:[%s10601_s3 + $0x8] sm:$0xff]   ;;  %v873_v36 = vcombine.high %v647_v43, %v647_v43  ;;  %v7477_v10 = vrot.slane %v647_v43, %v7033_v29  ;;  %v2144_v9 = vcombine.low %v7303_v34, %v7328_v17 }
 0x137   : > { %10874 = vst [vmem:[#allocation34_spill] sm:$0xff] %v7447_v61  ;;  %10876 = vst [vmem:[#allocation35_spill] sm:$0xff] %v7453_v32  ;;  %v2617_v14 = vcombine.low %v7441_v57, %v7447_v61  ;;  %v2618_v41 = vcombine.low %v7453_v32, %v7458_v12  ;;  %v2094_v8 = vcombine.low %v7409_v52, %v7372_v11  ;;  %v650_v0 = vmax.f32 %v560_v28, 0.0  ;;  %v6773_v57 = vld [vmem:[%s10601_s3 + $0x10] sm:$0xff]  }
 0x138   : > { %v7479_v56 = vpack.c.bf16 %v1973_v62, %v1956_v55  ;;  %v7494_v62 = vcombine.high %v7331_v13, %v7331_v13  ;;  %v7498_v43 = vcombine.high %v7412_v22, %v7412_v22  ;;  %v2110_v55 = vcombine.low %v7421_v63, %v7477_v10  ;;  %4358 = vmatpush1.bf16.msra.mxu1 %v6772_v39 }
 0x139   : > { %v7461_v1 = vpop.f32.mrb[24].mxu0  ;;  %v7504_v19 = vpack.c.bf16 %v2618_v41, %v2617_v14  ;;  %v7511_v12 = vrot.slane %v873_v36, %v7033_v29  ;;  %v958_v32 = vcombine.high %v652_v33, %v652_v33  ;;  %v1470_v14 = vcombine.low %v7036_v31, %v7357_v23 }
 0x13a   : > { %10878 = vst [vmem:[#allocation37_spill] sm:$0xff] %v7461_v1  ;;  %v7471_v45 = vpop.f32.mrb[25].mxu0  ;;  %10882 = vst [vmem:[#allocation41_spill] sm:$0xff] %v7494_v62  ;;  %3076 = vrot.lane.b32.xlu1 %v7479_v56, %s6894_s19  ;;  %v7521_v41 = vrot.slane %v2110_v55, %v7033_v29  ;;  %v924_v36 = vcombine.high %v650_v0, %v650_v0  ;;  %v7526_v28 = vrot.slane %v2128_v6, %v7033_v29  ;;  %v10887_v23 = vmov 0  }
 0x13b   : > { %10879 = vst [vmem:[#allocation38_spill] sm:$0xff] %v7471_v45  ;;  %v7483_v3 = vpop.f32.mrb[26].mxu0  ;;  %10883 = vst [vmem:[#allocation42_spill] sm:$0xff] %v7498_v43  ;;  %3275 = vrot.lane.b32.xlu0 %v7504_v19, %s6892_s21  ;;  %v7529_v39 = vrot.slane %v2144_v9, %v7033_v29  ;;  %v7532_v5 = vrot.slane %v2094_v8, %v7033_v29  ;;  %4359 = vmatprep.subr.bf16.mxu1 %v10887_v23 }
 0x13c   : > { %10880 = vst [vmem:[#allocation39_spill] sm:$0xff] %v7483_v3  ;;  %v7490_v61 = vpop.f32.mrb[27].mxu0  ;;  %10884 = vst [vmem:[#allocation43_spill] sm:$0xff] %v7504_v19  ;;  %v10888_v55 = vcombine.low %v7199_v16, %v7246_v4  ;;  %v2145_v6 = vcombine.low %v7331_v13, %v7494_v62  ;;  %v2161_v9 = vcombine.low %v7412_v22, %v7498_v43  ;;  %4360 = vmatpush1.bf16.msra.mxu1 %v6773_v57  ;;  %v6776_v43 = vld [vmem:[%s10601_s3 + $0x28] sm:$0xff]  }
 0x13d   : > { %10881 = vst [vmem:[#allocation40_spill] sm:$0xff] %v7490_v61  ;;  %10885 = vst [vmem:[#allocation44_spill] sm:$0xff] %v7529_v39  ;;  %v7535_v61 = vrot.slane %v958_v32, %v7033_v29  ;;  %v571_v8 = vadd.f32 %v7201_v18, %v7068_v49  ;;  %v888_v32 = vcombine.high %v7477_v10, %v7477_v10  ;;  %v6774_v18 = vld [vmem:[%s10601_s3 + $0x18] sm:$0xff]   ;;  %4361 = vmatprep.subr.bf16.mxu1 %v10887_v23 }
 0x13e   : > { %v7542_v19 = vrot.slane %v10888_v55, %v7033_v29  ;;  %3038 = vrot.lane.b32.xlu1 %v7479_v56, %s6891_s20  ;;  %v7556_v4 = vcombine.high %v7511_v12, %v7511_v12  ;;  %v563_v55 = vadd.f32 %v7068_v49, %v7211_v25  ;;  %v1436_v45 = vcombine.low %v7324_v51, %v7409_v52 }
 0x13f   : > { %10886 = vst [vmem:[#allocation45_spill] sm:$0xff] %v7535_v61  ;;  %v7571_v1 = vcombine.high %v7535_v61, %v7535_v61  ;;  %v7574_v16 = vrot.slane %v924_v36, %v7033_v29  ;;  %v7580_v57 = vrot.slane %v1470_v14, %v7033_v29  ;;  %v10893_v51 = vcombine.low %v7328_v17, %v7331_v13 }
 0x140   : > { %10889 = vst [vmem:[#allocation46_spill] sm:$0xff] %v7542_v19  ;;  %v7595_v37 = vrot.slane %v2145_v6, %v7033_v29  ;;  %v7598_v14 = vrot.slane %v2161_v9, %v7033_v29  ;;  %v653_v3 = vmax.f32 %v571_v8, 0.0  ;;  %v2127_v13 = vcombine.low %v7556_v4, %v7036_v31  ;;  %4362 = vmatpush1.bf16.msra.mxu1 %v6774_v18  ;;  %v6775_v6 = vld [vmem:[%s10601_s3 + $0x20] sm:$0xff]  }
 0x141   : > { %10890 = vst [vmem:[#allocation47_spill] sm:$0xff] %v7571_v1  ;;  %v7577_v25 = vpop.f32.mrb[28].mxu0  ;;  %10892 = vst [vmem:[#allocation49_spill] sm:$0xff] %v7580_v57  ;;  %v7588_v52 = vrot.slane %v10893_v51, %v7033_v29  ;;  %v2111_v57 = vcombine.low %v888_v32, %v7511_v12  ;;  %v7608_v17 = vcombine.high %v7574_v16, %v7574_v16  ;;  %v651_v51 = vmax.f32 %v563_v55, 0.0 }
 0x142   : > { %10891 = vst [vmem:[#allocation48_spill] sm:$0xff] %v7577_v25  ;;  %v7592_v34 = vpop.f32.mrb[29].mxu0  ;;  %v7601_v25 = vrot.slane %v652_v33, %v7033_v29  ;;  %v7616_v33 = vrot.slane %v1436_v45, %v7033_v29  ;;  %v2213_v8 = vcombine.low %v7535_v61, %v7571_v1  ;;  %v7621_v36 = vrot.slane %v650_v0, %v7033_v29 }
 0x143   : > { %10894 = vst [vmem:[#allocation50_spill] sm:$0xff] %v7588_v52  ;;  %10895 = vst [vmem:[#allocation51_spill] sm:$0xff] %v7592_v34  ;;  %v7613_v9 = vpop.f32.mrb[30].mxu0  ;;  %v7624_v34 = vrot.slane %v653_v3, %v7033_v29  ;;  %4363 = vmatprep.subr.bf16.mxu1 %v10887_v23  ;;  %v1453_v45 = vcombine.low %v7477_v10, %v888_v32  ;;  %v7648_v18 = vrot.slane %v2111_v57, %v7033_v29 }
 0x144   : > { %10896 = vst [vmem:[#allocation52_spill] sm:$0xff] %v7613_v9  ;;  %10897 = vst [vmem:[#allocation53_spill] sm:$0xff] %v7616_v33  ;;  %v7633_v9 = vrot.slane %v651_v51, %v7033_v29  ;;  %v7639_v52 = vcombine.high %v7601_v25, %v7601_v25  ;;  %v7651_v10 = vrot.slane %v2127_v13, %v7033_v29  ;;  %v2844_v0 = vshrl.u32 %v7479_v56, 16  ;;  %v7659_v62 = vpop.f32.mrb[31].mxu0 }
 0x145   : > { %10898 = vst [vmem:[#allocation54_spill] sm:$0xff] %v7624_v34  ;;  %v7643_v22 = vcombine.high %v7624_v34, %v7624_v34  ;;  %10900 = vst [vmem:[#allocation56_spill] sm:$0xff] %v7648_v18  ;;  %4364 = vmatpush1.bf16.msra.mxu1 %v6775_v6  ;;  %v7662_v55 = vrot.slane %v2213_v8, %v7033_v29  ;;  %v7666_v57 = vcombine.high %v7621_v36, %v7621_v36 }
 0x146   : > { %10899 = vst [vmem:[#allocation55_spill] sm:$0xff] %v7633_v9  ;;  %10901 = vst [vmem:[#allocation57_spill] sm:$0xff] %v7651_v10  ;;  %v975_v13 = vcombine.high %v653_v3, %v653_v3  ;;  %4365 = vmatprep.subr.bf16.mxu1 %v10887_v23  ;;  %v7672_v6 = vrot.slane %v1453_v45, %v7033_v29  ;;  %v941_v45 = vcombine.high %v651_v51, %v651_v51 }
 0x147   : > { %10902 = vst [vmem:[#allocation58_spill] sm:$0xff] %v7659_v62  ;;  %10903 = vst [vmem:[#allocation59_spill] sm:$0xff] %v7662_v55  ;;  %v2229_v32 = vcombine.low %v7624_v34, %v7643_v22  ;;  %v7689_v1 = vrot.slane %v2844_v0, 7  ;;  %v2847_v8 = vshll.u32 %v7479_v56, 16  ;;  %v10907_v62 = vcombine.low %v7220_v38, %v7036_v31 }
 0x148   : > { %10904 = vst [vmem:[#allocation60_spill] sm:$0xff] %v7672_v6  ;;  %v2755_v6 = vcombine.low %v7648_v18, %v7651_v10  ;;  %v7702_v3 = vrot.slane %v975_v13, %v7033_v29  ;;  %v2007_v0 = vcombine.low %v7147_v50, %v7214_v26  ;;  %v10910_v13 = vcombine.low %v7164_v59, %v7207_v21  ;;  %v10917_v59 = vld [vmem:[#allocation20_spill] sm:$0xff]  ;;  %v10918_v21 = vld [vmem:[#allocation19_spill] sm:$0xff] }
 0x149   : > { %v7685_v33 = vrot.slane %v2229_v32, %v7033_v29  ;;  %10906 = vst [vmem:[#allocation62_spill] sm:$0xff] %v7689_v1  ;;  %v1982_v61 = vrot.slane %v10907_v62, %v7033_v29  ;;  %4366 = vmatpush1.bf16.msra.mxu1 %v6776_v43  ;;  %v6777_v32 = vld [vmem:[%s10601_s3 + $0x30] sm:$0xff]   ;;  %v2849_v38 = vor.u32 %v2847_v8, %v7689_v1 }
 0x14a   : > { %4367 = vmatprep.subr.bf16.mxu1 %v10887_v23  ;;  %v10908_v43 = vcombine.low %v7153_v54, %v7036_v31  ;;  %v7721_v56 = vrot.slane %v10910_v13, %v7033_v29  ;;  %v7724_v34 = vrot.slane %v941_v45, %v7033_v29  ;;  %v10913_v8 = vcombine.low %v7144_v48, %v7147_v50  ;;  %v10920_v45 = vld [vmem:[#allocation11_spill] sm:$0xff] }
 0x14b   : > { %10905 = vst [vmem:[#allocation61_spill] sm:$0xff] %v7685_v33  ;;  %v1990_v62 = vcombine.low %v1982_v61, %v7144_v48  ;;  %v10914_v61 = vcombine.low %v7214_v26, %v7283_v30  ;;  %v10915_v54 = vcombine.low %v7366_v35, %v7385_v2  ;;  %v10919_v13 = vcombine.low %v10917_v59, %v10918_v21  ;;  %v10921_v33 = vld [vmem:[#allocation13_spill] sm:$0xff]  ;;  %v10923_v48 = vld [vmem:[#allocation7_spill] sm:$0xff] }
 0x14c   : > { %v7715_v51 = vrot.slane %v10908_v43, %v7033_v29  ;;  %10911 = vst [vmem:[#allocation64_spill] sm:$0xff] %v7721_v56  ;;  %10912 = vst [vmem:[#allocation65_spill] sm:$0xff] %v7724_v34  ;;  %v10916_v43 = vcombine.low %v7276_v44, %v7292_v60  ;;  %v10922_v55 = vcombine.low %v10920_v45, %v10921_v33 }
 0x14d   : > { %v2817_v10 = vpack.c.bf16 %v10914_v61, %v10913_v8  ;;  %v2850_v50 = vsel %vm2835_vm0, %v10923_v48, %v2849_v38  ;;  %v7750_v26 = vpack.c.bf16 %v2007_v0, %v1990_v62  ;;  %v2622_v61 = vcombine.low %v7721_v56, %v7542_v19  ;;  %4368 = vmatpush1.bf16.msra.mxu1 %v6777_v32 }
 0x14e   : > { %10909 = vst [vmem:[#allocation63_spill] sm:$0xff] %v7715_v51  ;;  %v7738_v18 = vpack.c.bf16 %v10916_v43, %v10915_v54  ;;  %v7746_v1 = vpack.c.bf16 %v10922_v55, %v10919_v13  ;;  %v2621_v8 = vcombine.low %v7715_v51, %v7382_v15  ;;  %v6778_v54 = vld [vmem:[%s10601_s3 + $0x38] sm:$0xff]   ;;  %2981 = vrot.lane.b32.xlu0 %v2850_v50, %s6892_s21 }
 0x14f   : > { %v3350_v55 = vshrl.u32 %v2817_v10, 16  ;;  %v3353_v43 = vshll.u32 %v2817_v10, 16  ;;  %4369 = vmatprep.subr.bf16.mxu1 %v10887_v23  ;;  %3078 = vrot.lane.b32.xlu1 %v7750_v26, %s6894_s19  ;;  %v10925_v62 = vcombine.low %v7242_v46, %v7263_v47  ;;  %v10927_v10 = vcombine.low %v7224_v40, %v7161_v58 }
 0x150   : > { %v10653_v0 = vshll.u32 %v7738_v18, 16  ;;  %v7765_v38 = vpack.c.bf16 %v2622_v61, %v2621_v8  ;;  %v10655_v32 = vshll.u32 %v7746_v1, 16  ;;  %v10929_v61 = vcombine.low %v7369_v42, %v7375_v24 }
 0x151   : > { %v7772_v48 = vrot.slane %v10925_v62, %v7033_v29  ;;  %v7778_v50 = vrot.slane %v10927_v10, %v7033_v29  ;;  %v3862_v13 = vrot.slane %v3353_v43, 1  ;;  %v7782_v8 = vrot.slane %v3350_v55, 7  ;;  %4370 = vmatpush1.bf16.msra.mxu1 %v6778_v54 }
 0x152   : > { %10924 = vst [vmem:[#allocation20_spill] sm:$0xff] %v7765_v38  ;;  %v3864_v19 = vrot.slane %v10653_v0, 1  ;;  %v10930_v46 = vcombine.low %v7532_v5, %v7521_v41  ;;  %v7794_v62 = vcombine.high %v7633_v9, %v7633_v9  ;;  %v3881_v58 = vrot.slane %v10655_v32, 1  ;;  %v6779_v0 = vld [vmem:[%s10601_s3 + $0x40] sm:$0xff]   ;;  %3315 = vrot.lane.b32.xlu0 %v7765_v38, %s6891_s20  ;;  %4371 = vmatprep.subr.bf16.mxu1 %v10887_v23 }
 0x153   : > { %10926 = vst [vmem:[#allocation19_spill] sm:$0xff] %v7772_v48  ;;  %10928 = vst [vmem:[#allocation11_spill] sm:$0xff] %v7778_v50  ;;  %v2623_v40 = vcombine.low %v7772_v48, %v7350_v53  ;;  %v10662_v10 = vshrl.u32 %v7746_v1, 16  ;;  %v2624_v32 = vcombine.low %v7778_v50, %v7397_v20  ;;  %3040 = vrot.lane.b32.xlu1 %v7750_v26, %s6891_s20 }
 0x154   : > { %v7790_v47 = vpack.c.bf16 %v10930_v46, %v10929_v61  ;;  %v3863_v61 = vor.u32 %v3862_v13, %v3350_v55  ;;  %v10931_v46 = vshrl.u32 %v7738_v18, 16  ;;  %v3355_v54 = vor.u32 %v3353_v43, %v7782_v8  ;;  %v10932_v55 = vld [vmem:[#allocation14_spill] sm:$0xff] }
 0x155   : > { %v3897_v53 = vor.u32 %v3881_v58, %v10662_v10  ;;  %v584_v13 = vadd.f32 %v10932_v55, %v7068_v49  ;;  %4372 = vmatpush1.bf16.msra.mxu1 %v6779_v0  ;;  %v10937_v0 = vld [vmem:[#allocation16_spill] sm:$0xff] }
 0x156   : > { %v3880_v51 = vor.u32 %v3864_v19, %v10931_v46  ;;  %v10933_v46 = vcombine.low %v7526_v28, %v7529_v39  ;;  %v3865_v15 = vsel %vm3841_vm1, %v3863_v61, %v3864_v19  ;;  %v10934_v50 = vshll.u32 %v7790_v47, 16  ;;  %v6780_v19 = vld [vmem:[%s10601_s3 + $0x48] sm:$0xff]   ;;  %3279 = vrot.lane.b32.xlu0 %v7765_v38, %s6892_s21  ;;  %4373 = vmatprep.subr.bf16.mxu1 %v10887_v23 }
 0x157   : > { %v10665_v43 = vshrl.u32 %v7790_v47, 16  ;;  %6622 = vmatprep.mubr.msk.bf16.mxu0 %vm3530_vm2, %v3865_v15  ;;  %v7830_v10 = vmax.f32 %v584_v13, 0.0  ;;  %v2024_v39 = vcombine.low %v7283_v30, %v7366_v35  ;;  %3492 = vrot.lane.b32.xlu1 %v3355_v54, %s6894_s19  ;;  %v10938_v61 = vld [vmem:[#allocation18_spill] sm:$0xff]  ;;  %v7871_v13 = vcombine.high %v7724_v34, %v7724_v34 }
 0x158   : > { %v7822_v48 = vpack.c.bf16 %v10933_v46, %v2755_v6  ;;  %v3882_v20 = vsel %vm3841_vm1, %v3880_v51, %v3881_v58  ;;  %v3898_v56 = vrot.slane %v10934_v50, 1  ;;  %v2041_v6 = vcombine.low %v7385_v2, %v7276_v44  ;;  %v10935_v50 = vld [vmem:[#allocation15_spill] sm:$0xff] }
 0x159   : > { %6623 = vmatmul.mubr.msk.bf16.vlgmr.msra.gmra.mrb[32].mxu0 %vm3530_vm2, %v3882_v20  ;;  %v576_v30 = vadd.f32 %v7068_v49, %v10935_v50  ;;  %v7850_v44 = vcombine.high %v7702_v3, %v7702_v3  ;;  %v1026_v35 = vcombine.high %v7830_v10, %v7830_v10  ;;  %v7862_v2 = vpack.c.bf16 %v2624_v32, %v2623_v40 }
 0x15a   : > { %v10664_v55 = vshll.u32 %v7822_v48, 16  ;;  %v3899_v15 = vsel %vm3841_vm1, %v3897_v53, %v3898_v56  ;;  %v3914_v51 = vor.u32 %v3898_v56, %v10665_v43  ;;  %v7860_v20 = vpack.c.bf16 %v2041_v6, %v2024_v39  ;;  %10939 = vst [vmem:[#allocation7_spill] sm:$0xff] %v7871_v13  ;;  %4374 = vmatpush1.bf16.msra.mxu1 %v6780_v19 }
 0x15b   : > { %6626 = vmatprep.mubr.msk.bf16.mxu0 %vm3530_vm2, %v3899_v15  ;;  %10936 = vst [vmem:[#allocation13_spill] sm:$0xff] %v7862_v2  ;;  %v654_v56 = vmax.f32 %v576_v30, 0.0  ;;  %v587_v58 = vadd.f32 %v10937_v0, %v7068_v49  ;;  %v579_v54 = vadd.f32 %v7068_v49, %v10938_v61  ;;  %v2195_v46 = vcombine.low %v7794_v62, %v7724_v34  ;;  %v6781_v49 = vld [vmem:[%s10601_s3 + $0x50] sm:$0xff]  }
 0x15c   : > { %v7858_v53 = vrot.slane %v10664_v55, 1  ;;  %v7876_v39 = vrot.slane %v1026_v35, %v7033_v29  ;;  %v1520_v40 = vcombine.low %v7621_v36, %v7666_v57  ;;  %3317 = vrot.lane.b32.xlu0 %v7862_v2, %s6891_s20  ;;  %4375 = vmatprep.subr.bf16.mxu1 %v10887_v23  ;;  %v10941_v19 = vcombine.low %v7036_v31, %v7621_v36 }
 0x15d   : > { %v992_v6 = vcombine.high %v654_v56, %v654_v56  ;;  %v7888_v15 = vrot.slane %v654_v56, %v7033_v29  ;;  %v655_v50 = vmax.f32 %v579_v54, 0.0  ;;  %v10942_v30 = vcombine.low %v7666_v57, %v7574_v16  ;;  %3080 = vrot.lane.b32.xlu1 %v7860_v20, %s6894_s19 }
 0x15e   : > { %10940 = vst [vmem:[#allocation14_spill] sm:$0xff] %v7876_v39  ;;  %v3916_v32 = vsel %vm3841_vm1, %v3914_v51, %v7858_v53  ;;  %v7895_v51 = vrot.slane %v10941_v19, %v7033_v29  ;;  %v7905_v56 = vmax.f32 %v587_v58, 0.0  ;;  %v10944_v0 = vshrl.u32 %v7738_v18, 16  ;;  %4376 = vmatpush1.bf16.msra.mxu1 %v6781_v49 }
 0x15f   : > { %v7901_v35 = vrot.slane %v10942_v30, %v7033_v29  ;;  %v2230_v36 = vcombine.low %v7702_v3, %v7850_v44  ;;  %v10945_v54 = vcombine.low %v7608_v17, %v7633_v9  ;;  %v7920_v57 = vrot.slane %v992_v6, %v7033_v29  ;;  %v6782_v6 = vld [vmem:[%s10601_s3 + $0x58] sm:$0xff]   ;;  %4377 = vmatprep.subr.bf16.mxu1 %v10887_v23 }
 0x160   : > { %v7909_v61 = vrot.slane %v10944_v0, 7  ;;  %v7924_v58 = vcombine.high %v7888_v15, %v7888_v15  ;;  %v2196_v30 = vcombine.low %v7871_v13, %v7036_v31  ;;  %v7929_v0 = vrot.slane %v2195_v46, %v7033_v29  ;;  %3281 = vrot.lane.b32.xlu0 %v7862_v2, %s6892_s21 }
 0x161   : > { %10943 = vst [vmem:[#allocation15_spill] sm:$0xff] %v7901_v35  ;;  %v7917_v19 = vrot.slane %v10945_v54, %v7033_v29  ;;  %10947 = vst [vmem:[#allocation18_spill] sm:$0xff] %v7920_v57  ;;  %v7933_v55 = vcombine.high %v7876_v39, %v7876_v39  ;;  %v7937_v54 = vrot.slane %v7905_v56, %v7033_v29  ;;  %6627 = vmatmul.mubr.msk.bf16.gmra.mrb[36].mxu0 %vm3530_vm2, %v3916_v32 }
 0x162   : > { %10948 = vst [vmem:[#allocation66_spill] sm:$0xff] %v7929_v0  ;;  %v7947_v46 = vcombine.high %v7920_v57, %v7920_v57  ;;  %v1009_v38 = vcombine.high %v655_v50, %v655_v50  ;;  %v10950_v49 = vcombine.low %v7036_v31, %v7601_v25  ;;  %v2758_v32 = vcombine.low %v7895_v51, %v7901_v35 }
 0x163   : > { %10946 = vst [vmem:[#allocation16_spill] sm:$0xff] %v7917_v19  ;;  %v2246_v2 = vcombine.low %v7036_v31, %v7888_v15  ;;  %3042 = vrot.lane.b32.xlu1 %v7860_v20, %s6891_s20  ;;  %v10952_v13 = vshll.u32 %v7738_v18, 16  ;;  %v10953_v39 = vcombine.low %v7601_v25, %v7639_v52  ;;  %v2247_v35 = vcombine.low %v7924_v58, %v7920_v57 }
 0x164   : > { %10949 = vst [vmem:[#allocation67_spill] sm:$0xff] %v7947_v46  ;;  %v7955_v34 = vrot.slane %v10950_v49, %v7033_v29  ;;  %4378 = vmatpush1.bf16.msra.mxu1 %v6782_v6  ;;  %v6783_v49 = vld [vmem:[%s10601_s3 + $0x60] sm:$0xff]   ;;  %v2759_v18 = vcombine.low %v7917_v19, %v7929_v0  ;;  %v8001_v57 = vrot.slane %v1009_v38, %v7033_v29  ;;  %v10681_v0 = vshrl.u32 %v7822_v48, 16 }
 0x165   : > { %v3362_v43 = vor.u32 %v10952_v13, %v7909_v61  ;;  %v7970_v9 = vrot.slane %v10953_v39, %v7033_v29  ;;  %v7982_v13 = vrot.slane %v1520_v40, %v7033_v29  ;;  %v7987_v39 = vrot.slane %v2196_v30, %v7033_v29  ;;  %4379 = vmatprep.subr.bf16.mxu1 %v10887_v23 }
 0x166   : > { %10951 = vst [vmem:[#allocation68_spill] sm:$0xff] %v7955_v34  ;;  %v7993_v34 = vrot.slane %v2230_v36, %v7033_v29  ;;  %v7998_v40 = vrot.slane %v655_v50, %v7033_v29  ;;  %10957 = vst [vmem:[#allocation72_spill] sm:$0xff] %v8001_v57  ;;  %v8005_v30 = vrot.slane %v2246_v2, %v7033_v29 }
 0x167   : > { %10954 = vst [vmem:[#allocation69_spill] sm:$0xff] %v7982_v13  ;;  %10955 = vst [vmem:[#allocation70_spill] sm:$0xff] %v7987_v39  ;;  %v3363_v6 = vsel %vm2835_vm0, %v7782_v8, %v3362_v43  ;;  %v10959_v36 = vcombine.low %v7595_v37, %v7598_v14  ;;  %v8016_v50 = vrot.slane %v2247_v35, %v7033_v29 }
 0x168   : > { %10956 = vst [vmem:[#allocation71_spill] sm:$0xff] %v7998_v40  ;;  %10958 = vst [vmem:[#allocation73_spill] sm:$0xff] %v8005_v30  ;;  %v8020_v38 = vcombine.high %v7998_v40, %v7998_v40  ;;  %v8024_v2 = vcombine.high %v8001_v57, %v8001_v57  ;;  %v2263_v8 = vcombine.low %v7947_v46, %v7998_v40  ;;  %3494 = vrot.lane.b32.xlu0 %v3363_v6, %s6894_s19  ;;  %v6784_v46 = vld [vmem:[%s10601_s3 + $0x68] sm:$0xff]  }
 0x169   : > { %v8012_v25 = vpack.c.bf16 %v2758_v32, %v10959_v36  ;;  %10960 = vst [vmem:[#allocation74_spill] sm:$0xff] %v8016_v50  ;;  %v8031_v43 = vrot.slane %v7830_v10, %v7033_v29  ;;  %v3931_v32 = vor.u32 %v7858_v53, %v10681_v0  ;;  %v2760_v36 = vcombine.low %v7987_v39, %v7970_v9 }
 0x16a   : > { %10961 = vst [vmem:[#allocation75_spill] sm:$0xff] %v8020_v38  ;;  %10962 = vst [vmem:[#allocation76_spill] sm:$0xff] %v8024_v2  ;;  %4380 = vmatpush1.bf16.msra.mxu1 %v6783_v49  ;;  %v2264_v35 = vcombine.low %v8020_v38, %v8001_v57  ;;  %v8049_v19 = vrot.slane %v2263_v8, %v7033_v29  ;;  %v1043_v53 = vcombine.high %v7905_v56, %v7905_v56 }
 0x16b   : > { %4381 = vmatprep.subr.bf16.mxu1 %v10887_v23  ;;  %v2280_v49 = vcombine.low %v8024_v2, %v7036_v31  ;;  %v10964_v0 = vshll.u32 %v8012_v25, 16  ;;  %v8058_v39 = vpack.c.bf16 %v2760_v36, %v2759_v18  ;;  %v2762_v10 = vcombine.low %v7993_v34, %v8005_v30 }
 0x16c   : > { %10963 = vst [vmem:[#allocation77_spill] sm:$0xff] %v8049_v19  ;;  %v8063_v57 = vrot.slane %v2264_v35, %v7033_v29  ;;  %v2763_v8 = vcombine.low %v8016_v50, %v8049_v19  ;;  %v10688_v38 = vshrl.u32 %v8012_v25, 16  ;;  %v2852_v18 = vshrl.u32 %v7750_v26, 16  ;;  %v6785_v35 = vld [vmem:[%s10601_s3 + $0x70] sm:$0xff]   ;;  %v11027_v50 = vld [vmem:[#allocation65_spill] sm:$0xff] }
 0x16d   : > { %v3932_v6 = vrot.slane %v10964_v0, 1  ;;  %10965 = vst [vmem:[#allocation78_spill] sm:$0xff] %v8058_v39  ;;  %v8069_v56 = vrot.slane %v2280_v49, %v7033_v29  ;;  %v2855_v19 = vshll.u32 %v7750_v26, 16  ;;  %v10968_v49 = vld [vmem:[#allocation12_spill] sm:$0xff] }
 0x16e   : > { %10966 = vst [vmem:[#allocation79_spill] sm:$0xff] %v8063_v57  ;;  %4382 = vmatpush1.bf16.msra.mxu1 %v6784_v46  ;;  %v10971_v46 = vcombine.low %v7287_v27, %v7036_v31 }
 0x16f   : > { %10967 = vst [vmem:[#allocation80_spill] sm:$0xff] %v8069_v56  ;;  %v3933_v2 = vsel %vm3841_vm1, %v3931_v32, %v3932_v6  ;;  %v3948_v36 = vor.u32 %v3932_v6, %v10688_v38  ;;  %v10969_v32 = vcombine.low %v7192_v7, %v10968_v49  ;;  %4383 = vmatprep.subr.bf16.mxu1 %v10887_v23  ;;  %v10973_v6 = vshll.u32 %v8058_v39, 16 }
 0x170   : > { %6630 = vmatprep.mubr.msk.bf16.mxu0 %vm3530_vm2, %v3933_v2  ;;  %v8091_v0 = vrot.slane %v10971_v46, %v7033_v29  ;;  %v2764_v2 = vcombine.low %v8063_v57, %v8069_v56  ;;  %v8098_v38 = vrot.slane %v2852_v18, 7  ;;  %v10974_v7 = vcombine.low %v7372_v11, %v7421_v63  ;;  %v10977_v11 = vld [vmem:[#allocation53_spill] sm:$0xff] }
 0x171   : > { %v8085_v30 = vrot.slane %v10969_v32, %v7033_v29  ;;  %v3949_v26 = vrot.slane %v10973_v6, 1  ;;  %v2058_v32 = vcombine.low %v7292_v60, %v10917_v59  ;;  %v2075_v46 = vcombine.low %v10918_v21, %v10920_v45  ;;  %v6786_v60 = vld [vmem:[%s10601_s3 + $0x78] sm:$0xff]  }
 0x172   : > { %10972 = vst [vmem:[#allocation81_spill] sm:$0xff] %v8091_v0  ;;  %v8104_v49 = vrot.slane %v10974_v7, %v7033_v29  ;;  %v10976_v56 = vshrl.u32 %v7746_v1, 16  ;;  %v2857_v57 = vor.u32 %v2855_v19, %v8098_v38  ;;  %v2092_v7 = vcombine.low %v10921_v33, %v7369_v42  ;;  %4384 = vmatpush1.bf16.msra.mxu1 %v6785_v35  ;;  %v10981_v33 = vld [vmem:[#allocation62_spill] sm:$0xff] }
 0x173   : > { %10970 = vst [vmem:[#allocation12_spill] sm:$0xff] %v8085_v30  ;;  %v2625_v27 = vcombine.low %v8085_v30, %v8091_v0  ;;  %v3950_v18 = vsel %vm3841_vm1, %v3948_v36, %v3949_v26  ;;  %v2557_v59 = vpack.c.bf16 %v2075_v46, %v2058_v32  ;;  %v10978_v21 = vshll.u32 %v7746_v1, 16  ;;  %v10983_v32 = vld [vmem:[#allocation30_spill] sm:$0xff]  ;;  %v10984_v46 = vld [vmem:[#allocation17_spill] sm:$0xff]  ;;  %4385 = vmatprep.subr.bf16.mxu1 %v10887_v23 }
 0x174   : > { %10975 = vst [vmem:[#allocation82_spill] sm:$0xff] %v8104_v49  ;;  %v8114_v6 = vrot.slane %v10976_v56, 7  ;;  %v2626_v63 = vcombine.low %v10977_v11, %v8104_v49  ;;  %6631 = vmatmul.mubr.msk.bf16.gmra.mrb[40].mxu0 %vm3530_vm2, %v3950_v18  ;;  %v2109_v19 = vcombine.low %v7375_v24, %v7532_v5  ;;  %v10979_v56 = vcombine.low %v7511_v12, %v7556_v4  ;;  %v10988_v49 = vld [vmem:[#allocation61_spill] sm:$0xff]  ;;  %v10991_v12 = vld [vmem:[#allocation47_spill] sm:$0xff]  ;;  %v10992_v4 = vld [vmem:[#allocation54_spill] sm:$0xff] }
 0x175   : > { %v2858_v35 = vsel %vm2835_vm0, %v10981_v33, %v2857_v57  ;;  %v10985_v18 = vcombine.low %v10983_v32, %v10984_v46  ;;  %v10692_v33 = vshrl.u32 %v8058_v39, 16  ;;  %v8172_v32 = vpack.c.bf16 %v2764_v2, %v2763_v8  ;;  %v6805_v8 = vld [vmem:[%s10601_s3 + $0x80] sm:$0xff]   ;;  %v10995_v2 = vld [vmem:[#allocation60_spill] sm:$0xff] }
 0x176   : > { %v3370_v45 = vor.u32 %v10978_v21, %v8114_v6  ;;  %v8135_v42 = vrot.slane %v10979_v56, %v7033_v29  ;;  %v8139_v36 = vpack.c.bf16 %v2626_v63, %v2625_v27  ;;  %v10987_v21 = vld [vmem:[#allocation59_spill] sm:$0xff]  ;;  %v10993_v56 = vcombine.low %v10991_v12, %v10992_v4  ;;  %2983 = vrot.lane.b32.xlu1 %v2858_v35, %s6892_s21  ;;  %v10997_v4 = vld [vmem:[#allocation41_spill] sm:$0xff] }
 0x177   : > { %v8145_v1 = vrot.slane %v10985_v18, %v7033_v29  ;;  %v10989_v24 = vcombine.low %v10987_v21, %v10988_v49  ;;  %v8162_v63 = vpack.c.bf16 %v2109_v19, %v2092_v7  ;;  %4386 = vmatpush1.bf16.msra.mxu1 %v6786_v60  ;;  %v8180_v7 = vcombine.high %v7937_v54, %v7937_v54 }
 0x178   : > { %10980 = vst [vmem:[#allocation83_spill] sm:$0xff] %v8135_v42  ;;  %10982 = vst [vmem:[#allocation62_spill] sm:$0xff] %v8139_v36  ;;  %v8157_v57 = vrot.slane %v10993_v56, %v7033_v29  ;;  %v3371_v27 = vsel %vm2835_vm0, %v7909_v61, %v3370_v45  ;;  %3319 = vrot.lane.b32.xlu0 %v8139_v36, %s6891_s20  ;;  %v8176_v61 = vrot.slane %v1043_v53, %v7033_v29  ;;  %v10996_v53 = vld [vmem:[#allocation49_spill] sm:$0xff]  ;;  %v10998_v56 = vld [vmem:[#allocation31_spill] sm:$0xff] }
 0x179   : > { %10986 = vst [vmem:[#allocation30_spill] sm:$0xff] %v8145_v1  ;;  %v8150_v5 = vpack.c.bf16 %v2762_v10, %v10989_v24  ;;  %v8167_v10 = vcombine.high %v8031_v43, %v8031_v43  ;;  %v3965_v45 = vor.u32 %v3949_v26, %v10692_v33  ;;  %v2860_v19 = vshrl.u32 %v7860_v20, 16  ;;  %6694 = vmatprep.subr.bf16.mxu1 %v6805_v8 }
 0x17a   : > { %10994 = vst [vmem:[#allocation59_spill] sm:$0xff] %v8157_v57  ;;  %v2627_v60 = vcombine.low %v10995_v2, %v8135_v42  ;;  %v2628_v46 = vcombine.low %v10996_v53, %v8145_v1  ;;  %3082 = vrot.lane.b32.xlu1 %v2557_v59, %s6894_s19  ;;  %v2863_v12 = vshll.u32 %v7860_v20, 16  ;;  %v10999_v8 = vcombine.low %v10997_v4, %v10998_v56  ;;  %v11003_v56 = vld [vmem:[#allocation56_spill] sm:$0xff]  ;;  %v11004_v2 = vld [vmem:[#allocation57_spill] sm:$0xff] }
 0x17b   : > { %10990 = vst [vmem:[#allocation17_spill] sm:$0xff] %v8150_v5  ;;  %v10694_v23 = vshll.u32 %v8150_v5, 16  ;;  %v2862_v26 = vrot.slane %v2860_v19, 7  ;;  %v2868_v35 = vshrl.u32 %v2557_v59, 16  ;;  %v11002_v42 = vshll.u32 %v8172_v32, 16 }
 0x17c   : > { %v8201_v33 = vrot.slane %v10999_v8, %v7033_v29  ;;  %3283 = vrot.lane.b32.xlu0 %v8139_v36, %s6892_s21  ;;  %v2871_v20 = vshll.u32 %v2557_v59, 16  ;;  %v2126_v8 = vcombine.low %v7521_v41, %v11003_v56  ;;  %v2143_v30 = vcombine.low %v11004_v2, %v7526_v28  ;;  %v11026_v36 = vld [vmem:[#allocation7_spill] sm:$0xff] }
 0x17d   : > { %v3966_v18 = vrot.slane %v10694_v23, 1  ;;  %v11001_v23 = vshrl.u32 %v8150_v5, 16  ;;  %v8210_v19 = vrot.slane %v11002_v42, 1  ;;  %v2865_v53 = vor.u32 %v2863_v12, %v2862_v26 }
 0x17e   : > { %11000 = vst [vmem:[#allocation61_spill] sm:$0xff] %v8201_v33  ;;  %v8213_v4 = vrot.slane %v2868_v35, 7  ;;  %v11006_v42 = vshrl.u32 %v7790_v47, 16  ;;  %v11007_v35 = vld [vmem:[#allocation24_spill] sm:$0xff]  ;;  %3044 = vrot.lane.b32.xlu1 %v2557_v59, %s6891_s20  ;;  %v8237_v2 = vpack.c.bf16 %v2143_v30, %v2126_v8  ;;  %v11010_v59 = vld [vmem:[#allocation25_spill] sm:$0xff] }
 0x17f   : > { %v3967_v1 = vsel %vm3841_vm1, %v3965_v45, %v3966_v18  ;;  %v3982_v24 = vor.u32 %v3966_v18, %v11001_v23  ;;  %v8219_v45 = vpack.c.bf16 %v2628_v46, %v2627_v60  ;;  %v2866_v28 = vsel %vm2835_vm0, %v8098_v38, %v2865_v53  ;;  %v11012_v53 = vld [vmem:[#allocation28_spill] sm:$0xff] }
 0x180   : > { %6634 = vmatprep.mubr.msk.bf16.mxu0 %vm3530_vm2, %v3967_v1  ;;  %v3375_v18 = vrot.slane %v11006_v42, 7  ;;  %v8228_v1 = vld [vmem:[%s10600_s2] ss:$0 sm:$0xff]  ;;  %v2873_v41 = vor.u32 %v2871_v20, %v8213_v4  ;;  %v11008_v60 = vshrl.u32 %v7822_v48, 16  ;;  %3496 = vrot.lane.b32.xlu0 %v3371_v27, %s6894_s19  ;;  %v11013_v27 = vshll.u32 %v7822_v48, 16 }
 0x181   : > { %11005 = vst [vmem:[#allocation47_spill] sm:$0xff] %v8219_v45  ;;  %v3984_v23 = vsel %vm3841_vm1, %v3982_v24, %v8210_v19  ;;  %v600_v12 = vadd.f32 %v8228_v1, %v11007_v35  ;;  %v11009_v24 = vshll.u32 %v7790_v47, 16  ;;  %v11011_v35 = vld [vmem:[#allocation26_spill] sm:$0xff]  ;;  %v595_v20 = vadd.f32 %v8228_v1, %v11012_v53  ;;  %v11014_v47 = vld [vmem:[#allocation44_spill] sm:$0xff] }
 0x182   : > { %6635 = vmatmul.mubr.msk.bf16.gmra.mrb[44].mxu0 %vm3530_vm2, %v3984_v23  ;;  %v8241_v46 = vrot.slane %v11008_v60, 7  ;;  %v592_v23 = vadd.f32 %v8228_v1, %v11010_v59  ;;  %v603_v38 = vadd.f32 %v8228_v1, %v11011_v35  ;;  %v8253_v30 = vsel %vm2835_vm0, %v2862_v26, %v2873_v41  ;;  %v11015_v60 = vld [vmem:[#allocation42_spill] sm:$0xff]  ;;  %3084 = vrot.lane.b32.xlu1 %v8162_v63, %s6894_s19 }
 0x183   : > { %v3378_v56 = vor.u32 %v11009_v24, %v3375_v18  ;;  %v8246_v42 = vmax.f32 %v600_v12, 0.0  ;;  %v2160_v12 = vcombine.low %v11014_v47, %v7595_v37  ;;  %v11016_v24 = vcombine.low %v11015_v60, %v7036_v31  ;;  %v11019_v60 = vld [vmem:[#allocation55_spill] sm:$0xff] }
 0x184   : > { %v3386_v8 = vor.u32 %v11013_v27, %v8241_v46  ;;  %v658_v35 = vmax.f32 %v592_v23, 0.0  ;;  %v8276_v48 = vcombine.high %v8176_v61, %v8176_v61  ;;  %v661_v37 = vmax.f32 %v603_v38, 0.0  ;;  %3321 = vrot.lane.b32.xlu0 %v8219_v45, %s6891_s20 }
 0x185   : > { %v8266_v59 = vrot.slane %v11016_v24, %v7033_v29  ;;  %v8270_v26 = vsel %vm2835_vm0, %v8114_v6, %v3378_v56  ;;  %v1094_v41 = vcombine.high %v8246_v42, %v8246_v42  ;;  %v2177_v27 = vcombine.low %v7598_v14, %v7895_v51  ;;  %v11022_v24 = vld [vmem:[#allocation50_spill] sm:$0xff] }
 0x186   : > { %v8281_v53 = vsel %vm2835_vm0, %v3375_v18, %v3386_v8  ;;  %v1588_v6 = vcombine.low %v7850_v44, %v7036_v31  ;;  %v1060_v23 = vcombine.high %v658_v35, %v658_v35  ;;  %v659_v47 = vmax.f32 %v595_v20, 0.0  ;;  %v11021_v44 = vld [vmem:[#allocation14_spill] sm:$0xff]  ;;  %3046 = vrot.lane.b32.xlu1 %v8162_v63, %s6891_s20 }
 0x187   : > { %11017 = vst [vmem:[#allocation54_spill] sm:$0xff] %v8266_v59  ;;  %v8290_v56 = vrot.slane %v1094_v41, %v7033_v29  ;;  %v1537_v38 = vcombine.low %v11019_v60, %v7794_v62  ;;  %v2281_v18 = vcombine.low %v8031_v43, %v8167_v10  ;;  %v8297_v8 = vrot.slane %v658_v35, %v7033_v29 }
 0x188   : > { %v8300_v14 = vrot.slane %v661_v37, %v7033_v29  ;;  %v2297_v51 = vcombine.low %v11021_v44, %v7933_v55  ;;  %v2629_v41 = vcombine.low %v11022_v24, %v8201_v33  ;;  %v2630_v20 = vcombine.low %v8266_v59, %v7982_v13  ;;  %3285 = vrot.lane.b32.xlu0 %v8219_v45, %s6892_s21 }
 0x189   : > { %11018 = vst [vmem:[#allocation41_spill] sm:$0xff] %v8290_v56  ;;  %v8310_v62 = vcombine.high %v8290_v56, %v8290_v56  ;;  %v2298_v35 = vcombine.low %v7937_v54, %v8180_v7  ;;  %v2314_v60 = vcombine.low %v8176_v61, %v8276_v48  ;;  %v8319_v0 = vrot.slane %v1060_v23, %v7033_v29 }
 0x18a   : > { %11020 = vst [vmem:[#allocation31_spill] sm:$0xff] %v8300_v14  ;;  %v8323_v33 = vcombine.high %v8297_v8, %v8297_v8  ;;  %v1111_v13 = vcombine.high %v661_v37, %v661_v37  ;;  %v8329_v59 = vcombine.high %v8300_v14, %v8300_v14  ;;  %v1077_v11 = vcombine.high %v659_v47, %v659_v47 }
 0x18b   : > { %11023 = vst [vmem:[#allocation56_spill] sm:$0xff] %v8310_v62  ;;  %11024 = vst [vmem:[#allocation57_spill] sm:$0xff] %v8319_v0  ;;  %v1538_v23 = vcombine.low %v11027_v50, %v11026_v36  ;;  %v8336_v5 = vrot.slane %v1537_v38, %v7033_v29  ;;  %v2366_v39 = vcombine.low %v8290_v56, %v8310_v62  ;;  %2985 = vrot.lane.b32.xlu1 %v2866_v28, %s6892_s21 }
 0x18c   : > { %11025 = vst [vmem:[#allocation24_spill] sm:$0xff] %v8329_v59  ;;  %v2315_v37 = vcombine.low %v7036_v31, %v8297_v8  ;;  %v1623_v45 = vcombine.low %v7036_v31, %v8031_v43  ;;  %v8344_v40 = vpack.c.bf16 %v2630_v20, %v2629_v41  ;;  %v8348_v24 = vcombine.high %v8319_v0, %v8319_v0 }
 0x18d   : > { %11028 = vst [vmem:[#allocation25_spill] sm:$0xff] %v8336_v5  ;;  %v2331_v50 = vcombine.low %v8323_v33, %v8319_v0  ;;  %v8353_v36 = vrot.slane %v2281_v18, %v7033_v29  ;;  %v8356_v38 = vrot.slane %v2297_v51, %v7033_v29  ;;  %v8359_v62 = vrot.slane %v2298_v35, %v7033_v29 }
 0x18e   : > { %11029 = vst [vmem:[#allocation26_spill] sm:$0xff] %v8344_v40  ;;  %11030 = vst [vmem:[#allocation28_spill] sm:$0xff] %v8348_v24  ;;  %v2382_v43 = vcombine.low %v8300_v14, %v8329_v59  ;;  %v8365_v41 = vrot.slane %v2314_v60, %v7033_v29  ;;  %3323 = vrot.lane.b32.xlu0 %v8344_v40, %s6891_s20  ;;  %v8370_v18 = vrot.slane %v1111_v13, %v7033_v29 }
 0x18f   : > { %v8373_v51 = vrot.slane %v659_v47, %v7033_v29  ;;  %v8376_v20 = vrot.slane %v1077_v11, %v7033_v29  ;;  %v8379_v28 = vrot.slane %v2366_v39, %v7033_v29  ;;  %v8382_v35 = vrot.slane %v2315_v37, %v7033_v29  ;;  %2987 = vrot.lane.b32.xlu1 %v8253_v30, %s6892_s21 }
 0x190   : > { %11031 = vst [vmem:[#allocation44_spill] sm:$0xff] %v8365_v41  ;;  %11032 = vst [vmem:[#allocation42_spill] sm:$0xff] %v8370_v18  ;;  %v8385_v60 = vrot.slane %v2382_v43, %v7033_v29  ;;  %v8387_v0 = vpack.c.bf16 %v2177_v27, %v2160_v12  ;;  %v8390_v13 = vrot.slane %v2331_v50, %v7033_v29  ;;  %v11039_v27 = vld [vmem:[#allocation45_spill] sm:$0xff] }
 0x191   : > { %11033 = vst [vmem:[#allocation55_spill] sm:$0xff] %v8376_v20  ;;  %11034 = vst [vmem:[#allocation14_spill] sm:$0xff] %v8379_v28  ;;  %v8394_v47 = vcombine.high %v8373_v51, %v8373_v51  ;;  %v8398_v11 = vcombine.high %v8376_v20, %v8376_v20  ;;  %v2332_v39 = vcombine.low %v8348_v24, %v8373_v51 }
 0x192   : > { %11035 = vst [vmem:[#allocation7_spill] sm:$0xff] %v8382_v35  ;;  %11036 = vst [vmem:[#allocation65_spill] sm:$0xff] %v8385_v60  ;;  %v8403_v37 = vrot.slane %v1623_v45, %v7033_v29  ;;  %v11040_v50 = vcombine.low %v7639_v52, %v11039_v27  ;;  %v11042_v14 = vcombine.low %v7643_v22, %v7702_v3  ;;  %3287 = vrot.lane.b32.xlu0 %v8344_v40, %s6892_s21 }
 0x193   : > { %11037 = vst [vmem:[#allocation84_spill] sm:$0xff] %v8390_v13  ;;  %v8426_v30 = vrot.slane %v2332_v39, %v7033_v29  ;;  %v2348_v52 = vcombine.low %v8394_v47, %v8376_v20  ;;  %v8431_v27 = vrot.slane %v1588_v6, %v7033_v29  ;;  %v2765_v3 = vcombine.low %v8353_v36, %v8356_v38 }
 0x194   : > { %11038 = vst [vmem:[#allocation85_spill] sm:$0xff] %v8403_v37  ;;  %v8413_v43 = vrot.slane %v11040_v50, %v7033_v29  ;;  %v8419_v24 = vrot.slane %v11042_v14, %v7033_v29  ;;  %v2766_v14 = vcombine.low %v8359_v62, %v8365_v41  ;;  %v2876_v50 = vshrl.u32 %v8162_v63, 16  ;;  %3086 = vrot.lane.b32.xlu1 %v8237_v2, %s6894_s19 }
 0x195   : > { %11044 = vst [vmem:[#allocation87_spill] sm:$0xff] %v8426_v30  ;;  %11045 = vst [vmem:[#allocation88_spill] sm:$0xff] %v8431_v27  ;;  %v8442_v39 = vrot.slane %v8246_v42, %v7033_v29  ;;  %v2767_v45 = vcombine.low %v8382_v35, %v8390_v13  ;;  %v8448_v6 = vcombine.high %v8370_v18, %v8370_v18  ;;  %v2879_v42 = vshll.u32 %v8162_v63, 16 }
 0x196   : > { %11041 = vst [vmem:[#allocation45_spill] sm:$0xff] %v8413_v43  ;;  %11043 = vst [vmem:[#allocation86_spill] sm:$0xff] %v8419_v24  ;;  %v8451_v12 = vrot.slane %v2348_v52, %v7033_v29  ;;  %v2633_v22 = vcombine.low %v8413_v43, %v8157_v57  ;;  %v2878_v40 = vrot.slane %v2876_v50, 7  ;;  %v2884_v41 = vshrl.u32 %v8237_v2, 16  ;;  %3498 = vrot.lane.b32.xlu0 %v8270_v26, %s6894_s19 }
 0x197   : > { %11046 = vst [vmem:[#allocation89_spill] sm:$0xff] %v8448_v6  ;;  %v2634_v52 = vcombine.low %v8419_v24, %v8431_v27  ;;  %v11048_v35 = vcombine.low %v7574_v16, %v7608_v17  ;;  %v2887_v50 = vshll.u32 %v8237_v2, 16  ;;  %v2228_v26 = vcombine.low %v7970_v9, %v10987_v21 }
 0x198   : > { %11047 = vst [vmem:[#allocation90_spill] sm:$0xff] %v8451_v12  ;;  %v2768_v13 = vcombine.low %v8426_v30, %v8451_v12  ;;  %v2881_v63 = vor.u32 %v2879_v42, %v2878_v40  ;;  %v8472_v57 = vrot.slane %v2884_v41, 7  ;;  %v2245_v43 = vcombine.low %v10988_v49, %v7993_v34  ;;  %3048 = vrot.lane.b32.xlu1 %v8237_v2, %s6891_s20 }
 0x199   : > { %v8469_v20 = vrot.slane %v11048_v35, %v7033_v29  ;;  %v8479_v12 = vrot.slane %v1538_v23, %v7033_v29  ;;  %v11051_v27 = vshrl.u32 %v8012_v25, 16  ;;  %v8485_v16 = vpack.c.bf16 %v2766_v14, %v2765_v3 }
 0x19a   : > { %v10730_v17 = vshrl.u32 %v8172_v32, 16  ;;  %v2882_v9 = vsel %vm2835_vm0, %v8213_v4, %v2881_v63  ;;  %v2889_v21 = vor.u32 %v2887_v50, %v8472_v57  ;;  %v8493_v34 = vpack.c.bf16 %v2245_v43, %v2228_v26  ;;  %3500 = vrot.lane.b32.xlu0 %v8281_v53, %s6894_s19 }
 0x19b   : > { %11049 = vst [vmem:[#allocation91_spill] sm:$0xff] %v8469_v20  ;;  %11050 = vst [vmem:[#allocation92_spill] sm:$0xff] %v8479_v12  ;;  %v8483_v24 = vrot.slane %v11051_v27, 7  ;;  %v8495_v49 = vpack.c.bf16 %v2768_v13, %v2767_v45  ;;  %v11052_v23 = vshll.u32 %v8012_v25, 16  ;;  %v10729_v35 = vshll.u32 %v8485_v16, 16  ;;  %v11053_v45 = vld [vmem:[#allocation37_spill] sm:$0xff] }
 0x19c   : > { %v3999_v2 = vor.u32 %v8210_v19, %v10730_v17  ;;  %v10731_v4 = vshrl.u32 %v8485_v16, 16  ;;  %v8508_v43 = vsel %vm2835_vm0, %v2878_v40, %v2889_v21  ;;  %v616_v53 = vadd.f32 %v8228_v1, %v11053_v45  ;;  %v11054_v27 = vld [vmem:[#allocation38_spill] sm:$0xff]  ;;  %3088 = vrot.lane.b32.xlu1 %v8387_v0, %s6894_s19 }
 0x19d   : > { %v3394_v41 = vor.u32 %v11052_v23, %v8483_v24  ;;  %v10728_v13 = vshll.u32 %v8495_v49, 16  ;;  %v608_v25 = vadd.f32 %v8228_v1, %v11054_v27  ;;  %v11055_v3 = vcombine.low %v7888_v15, %v7924_v58  ;;  %v11059_v23 = vld [vmem:[#allocation68_spill] sm:$0xff] }
 0x19e   : > { %v8521_v19 = vpack.c.bf16 %v2634_v52, %v2633_v22  ;;  %v4000_v42 = vrot.slane %v10729_v35, 1  ;;  %v8531_v50 = vcombine.high %v8442_v39, %v8442_v39  ;;  %v664_v58 = vmax.f32 %v616_v53, 0.0  ;;  %v11060_v53 = vld [vmem:[#allocation39_spill] sm:$0xff] }
 0x19f   : > { %v8519_v14 = vrot.slane %v11055_v3, %v7033_v29  ;;  %v8525_v40 = vsel %vm2835_vm0, %v8241_v46, %v3394_v41  ;;  %v8537_v15 = vrot.slane %v10728_v13, 1  ;;  %v662_v22 = vmax.f32 %v608_v25, 0.0 }
 0x1a0   : > { %11057 = vst [vmem:[#allocation38_spill] sm:$0xff] %v8521_v19  ;;  %11058 = vst [vmem:[#allocation93_spill] sm:$0xff] %v8531_v50  ;;  %v1707_v46 = vcombine.low %v7036_v31, %v8442_v39  ;;  %v2383_v52 = vcombine.low %v8370_v18, %v8448_v6  ;;  %3327 = vrot.lane.b32.xlu0 %v8521_v19, %s6891_s20  ;;  %v4001_v63 = vsel %vm3841_vm1, %v3999_v2, %v4000_v42 }
 0x1a1   : > { %11056 = vst [vmem:[#allocation37_spill] sm:$0xff] %v8519_v14  ;;  %v4016_v26 = vor.u32 %v4000_v42, %v10731_v4  ;;  %v2631_v21 = vcombine.low %v8469_v20, %v8336_v5  ;;  %v2632_v41 = vcombine.low %v8479_v12, %v11059_v23  ;;  %6638 = vmatprep.mubr.msk.bf16.mxu0 %vm3530_vm2, %v4001_v63  ;;  %v11063_v63 = vld [vmem:[#allocation43_spill] sm:$0xff]  ;;  %v11074_v4 = vld [vmem:[#allocation78_spill] sm:$0xff] }
 0x1a2   : > { %v1162_v45 = vcombine.high %v664_v58, %v664_v58  ;;  %v619_v27 = vadd.f32 %v8228_v1, %v11060_v53  ;;  %v11061_v25 = vcombine.low %v7933_v55, %v7937_v54  ;;  %v1656_v3 = vcombine.low %v8180_v7, %v8176_v61  ;;  %3050 = vrot.lane.b32.xlu1 %v8387_v0, %s6891_s20  ;;  %v11065_v7 = vld [vmem:[#allocation71_spill] sm:$0xff]  ;;  %v11090_v12 = vld [vmem:[#allocation66_spill] sm:$0xff] }
 0x1a3   : > { %v4018_v42 = vsel %vm3841_vm1, %v4016_v26, %v8537_v15  ;;  %v8566_v13 = vrot.slane %v662_v22, %v7033_v29  ;;  %v2365_v53 = vcombine.low %v8442_v39, %v8531_v50  ;;  %v1128_v54 = vcombine.high %v662_v22, %v662_v22  ;;  %v11066_v26 = vld [vmem:[#allocation75_spill] sm:$0xff] }
 0x1a4   : > { %v8559_v2 = vrot.slane %v11061_v25, %v7033_v29  ;;  %6639 = vmatmul.mubr.msk.bf16.gmra.mrb[48].mxu0 %vm3530_vm2, %v4018_v42  ;;  %v8575_v55 = vrot.slane %v1162_v45, %v7033_v29  ;;  %v11067_v25 = vcombine.low %v11065_v7, %v11066_v26  ;;  %v8586_v39 = vrot.slane %v2383_v52, %v7033_v29 }
 0x1a5   : > { %3291 = vrot.lane.b32.xlu0 %v8521_v19, %s6892_s21  ;;  %v2399_v45 = vcombine.low %v7036_v31, %v8566_v13  ;;  %v8595_v42 = vrot.slane %v1707_v46, %v7033_v29  ;;  %v8597_v61 = vpack.c.bf16 %v2632_v41, %v2631_v21  ;;  %v665_v7 = vmax.f32 %v619_v27, 0.0 }
 0x1a6   : > { %11062 = vst [vmem:[#allocation39_spill] sm:$0xff] %v8559_v2  ;;  %11064 = vst [vmem:[#allocation43_spill] sm:$0xff] %v8575_v55  ;;  %v8583_v35 = vrot.slane %v11067_v25, %v7033_v29  ;;  %v1169_v26 = vrot.slane %v664_v58, %v7033_v29  ;;  %v11073_v25 = vld [vmem:[#allocation40_spill] sm:$0xff]  ;;  %v11075_v23 = vshrl.u32 %v11074_v4, 16  ;;  %v8610_v22 = vrot.slane %v2365_v53, %v7033_v29 }
 0x1a7   : > { %11069 = vst [vmem:[#allocation75_spill] sm:$0xff] %v8586_v39  ;;  %11070 = vst [vmem:[#allocation94_spill] sm:$0xff] %v8595_v42  ;;  %v8601_v52 = vrot.slane %v2399_v45, %v7033_v29  ;;  %v611_v17 = vadd.f32 %v8228_v1, %v11073_v25  ;;  %2989 = vrot.lane.b32.xlu1 %v2882_v9, %s6892_s21  ;;  %v8615_v46 = vcombine.high %v8575_v55, %v8575_v55 }
 0x1a8   : > { %11068 = vst [vmem:[#allocation71_spill] sm:$0xff] %v8583_v35  ;;  %11071 = vst [vmem:[#allocation95_spill] sm:$0xff] %v8597_v61  ;;  %v8607_v19 = vrot.slane %v11075_v23, 7  ;;  %v8618_v58 = vrot.slane %v1128_v54, %v7033_v29  ;;  %v8621_v21 = vrot.slane %v665_v7, %v7033_v29  ;;  %v1673_v41 = vcombine.low %v8297_v8, %v8323_v33  ;;  %v11080_v33 = vld [vmem:[#allocation56_spill] sm:$0xff]  ;;  %v11081_v8 = vld [vmem:[#allocation31_spill] sm:$0xff] }
 0x1a9   : > { %11072 = vst [vmem:[#allocation96_spill] sm:$0xff] %v8601_v52  ;;  %11076 = vst [vmem:[#allocation40_spill] sm:$0xff] %v8610_v22  ;;  %3325 = vrot.lane.b32.xlu0 %v8597_v61, %s6891_s20  ;;  %v11077_v9 = vcombine.low %v8167_v10, %v11021_v44  ;;  %v8636_v53 = vrot.slane %v1656_v3, %v7033_v29  ;;  %v11082_v45 = vcombine.low %v11080_v33, %v11081_v8  ;;  %v11088_v8 = vld [vmem:[#allocation15_spill] sm:$0xff]  ;;  %v11089_v10 = vld [vmem:[#allocation70_spill] sm:$0xff] }
 0x1aa   : > { %v1690_v23 = vcombine.low %v8373_v51, %v8394_v47  ;;  %v8650_v44 = vcombine.high %v1169_v26, %v1169_v26  ;;  %v8654_v3 = vcombine.high %v8566_v13, %v8566_v13  ;;  %v11085_v54 = vshll.u32 %v11074_v4, 16  ;;  %v11087_v47 = vld [vmem:[#allocation16_spill] sm:$0xff] }
 0x1ab   : > { %v8633_v27 = vrot.slane %v11077_v9, %v7033_v29  ;;  %11079 = vst [vmem:[#allocation97_spill] sm:$0xff] %v8636_v53  ;;  %v8644_v25 = vrot.slane %v11082_v45, %v7033_v29  ;;  %v663_v9 = vmax.f32 %v611_v17, 0.0  ;;  %v2349_v33 = vcombine.low %v8398_v11, %v7036_v31  ;;  %2991 = vrot.lane.b32.xlu1 %v8508_v43, %s6892_s21 }
 0x1ac   : > { %11084 = vst [vmem:[#allocation31_spill] sm:$0xff] %v8650_v44  ;;  %v3402_v5 = vor.u32 %v11085_v54, %v8607_v19  ;;  %v8665_v51 = vcombine.high %v8618_v58, %v8618_v58  ;;  %v2194_v45 = vcombine.low %v11088_v8, %v11087_v47  ;;  %v2211_v17 = vcombine.low %v11090_v12, %v11089_v10  ;;  %v11092_v8 = vld [vmem:[#allocation28_spill] sm:$0xff] }
 0x1ad   : > { %11078 = vst [vmem:[#allocation78_spill] sm:$0xff] %v8633_v27  ;;  %11083 = vst [vmem:[#allocation56_spill] sm:$0xff] %v8644_v25  ;;  %3289 = vrot.lane.b32.xlu0 %v8597_v61, %s6892_s21  ;;  %v1776_v4 = vcombine.low %v7036_v31, %v1169_v26  ;;  %v2637_v54 = vcombine.low %v8403_v37, %v8633_v27  ;;  %v2638_v43 = vcombine.low %v8559_v2, %v8636_v53  ;;  %v11093_v61 = vld [vmem:[#allocation57_spill] sm:$0xff] }
 0x1ae   : > { %11086 = vst [vmem:[#allocation98_spill] sm:$0xff] %v8665_v51  ;;  %v8679_v20 = vrot.slane %v663_v9, %v7033_v29  ;;  %v1145_v18 = vcombine.high %v663_v9, %v663_v9  ;;  %v8683_v47 = vsel %vm2835_vm0, %v8483_v24, %v3402_v5  ;;  %v2892_v12 = vshrl.u32 %v8387_v0, 16  ;;  %v11115_v25 = vld [vmem:[#allocation5_spill] sm:$0xff] }
 0x1af   : > { %v2895_v10 = vshll.u32 %v8387_v0, 16  ;;  %v2434_v27 = vcombine.low %v1169_v26, %v8650_v44  ;;  %v2400_v53 = vcombine.low %v8654_v3, %v8618_v58  ;;  %v1179_v2 = vcombine.high %v665_v7, %v665_v7  ;;  %3092 = vrot.lane.b32.xlu1 %v8493_v34, %s6894_s19  ;;  %v11110_v44 = vld [vmem:[#allocation17_spill] sm:$0xff] }
 0x1b0   : > { %11091 = vst [vmem:[#allocation16_spill] sm:$0xff] %v8679_v20  ;;  %v2450_v5 = vcombine.low %v8575_v55, %v8615_v46  ;;  %v2416_v24 = vcombine.low %v8665_v51, %v8679_v20  ;;  %v8698_v9 = vpack.c.bf16 %v2211_v17, %v2194_v45  ;;  %v8700_v0 = vrot.slane %v2892_v12, 7 }
 0x1b1   : > { %v8703_v59 = vrot.slane %v1673_v41, %v7033_v29  ;;  %v8708_v7 = vrot.slane %v1690_v23, %v7033_v29  ;;  %v8711_v37 = vrot.slane %v2349_v33, %v7033_v29  ;;  %3502 = vrot.lane.b32.xlu0 %v8525_v40, %s6894_s19  ;;  %v8716_v45 = vrot.slane %v1776_v4, %v7033_v29  ;;  %v11107_v23 = vld [vmem:[#allocation76_spill] sm:$0xff] }
 0x1b2   : > { %v8718_v17 = vpack.c.bf16 %v2638_v43, %v2637_v54  ;;  %v8721_v41 = vrot.slane %v1145_v18, %v7033_v29  ;;  %v2897_v12 = vor.u32 %v2895_v10, %v8700_v0  ;;  %v8727_v26 = vrot.slane %v2434_v27, %v7033_v29 }
 0x1b3   : > { %11094 = vst [vmem:[#allocation15_spill] sm:$0xff] %v8703_v59  ;;  %11095 = vst [vmem:[#allocation70_spill] sm:$0xff] %v8708_v7  ;;  %v1742_v33 = vcombine.low %v8566_v13, %v8654_v3  ;;  %v8732_v40 = vrot.slane %v1179_v2, %v7033_v29  ;;  %v8735_v4 = vrot.slane %v2450_v5, %v7033_v29  ;;  %3054 = vrot.lane.b32.xlu1 %v8493_v34, %s6891_s20  ;;  %v11102_v2 = vld [vmem:[#allocation18_spill] sm:$0xff]  ;;  %v11103_v3 = vld [vmem:[#allocation67_spill] sm:$0xff] }
 0x1b4   : > { %11096 = vst [vmem:[#allocation66_spill] sm:$0xff] %v8711_v37  ;;  %11097 = vst [vmem:[#allocation28_spill] sm:$0xff] %v8716_v45  ;;  %v8738_v18 = vrot.slane %v2400_v53, %v7033_v29  ;;  %v2898_v54 = vsel %vm2835_vm0, %v8472_v57, %v2897_v12  ;;  %v2900_v27 = vshrl.u32 %v8698_v9, 16  ;;  %v8749_v13 = vcombine.high %v8679_v20, %v8679_v20  ;;  %v11106_v12 = vld [vmem:[#allocation72_spill] sm:$0xff] }
 0x1b5   : > { %11098 = vst [vmem:[#allocation57_spill] sm:$0xff] %v8718_v17  ;;  %11099 = vst [vmem:[#allocation99_spill] sm:$0xff] %v8727_v26  ;;  %3331 = vrot.lane.b32.xlu0 %v8718_v17, %s6891_s20  ;;  %v11104_v53 = vcombine.low %v11102_v2, %v11103_v3  ;;  %v2908_v10 = vshrl.u32 %v8493_v34, 16  ;;  %v2911_v5 = vshll.u32 %v8493_v34, 16  ;;  %v8761_v57 = vcombine.high %v8721_v41, %v8721_v41 }
 0x1b6   : > { %11100 = vst [vmem:[#allocation100_spill] sm:$0xff] %v8735_v4  ;;  %11101 = vst [vmem:[#allocation101_spill] sm:$0xff] %v8738_v18  ;;  %v11108_v45 = vcombine.low %v11106_v12, %v11107_v23  ;;  %v11111_v6 = vshrl.u32 %v11110_v44, 16  ;;  %v1264_v2 = vcombine.low %v7036_v31, %v7036_v31  ;;  %v8776_v3 = vrot.slane %v2416_v24, %v7033_v29 }
 0x1b7   : > { %v8755_v43 = vrot.slane %v11104_v53, %v7033_v29  ;;  %v8778_v34 = vrot.slane %v2908_v10, 7  ;;  %v11114_v53 = vld [vmem:[#allocation6_spill] sm:$0xff]  ;;  %3090 = vrot.lane.b32.xlu1 %v8698_v9, %s6894_s19  ;;  %v11119_v24 = vshll.u32 %v11110_v44, 16  ;;  %v8795_v10 = vpop.permute.xlu1 %3036  ;;  %v2769_v44 = vcombine.low %v8711_v37, %v8610_v22 }
 0x1b8   : > { %v8767_v55 = vrot.slane %v11108_v45, %v7033_v29  ;;  %v8771_v30 = vrot.slane %v11111_v6, 7  ;;  %11112 = vst [vmem:[#allocation72_spill] sm:$0xff] %v8776_v3  ;;  %v11116_v42 = vcombine.low %v11114_v53, %v11115_v25  ;;  %v11118_v45 = vld [vmem:[#allocation48_spill] sm:$0xff]  ;;  %v8790_v6 = vrot.slane %v2900_v27, 7  ;;  %11120 = vst [vmem:[#allocation6_spill] sm:$0xff] %v8795_v10  ;;  %v11121_v25 = vld [vmem:[#allocation51_spill] sm:$0xff] }
 0x1b9   : > { %11105 = vst [vmem:[#allocation18_spill] sm:$0xff] %v8755_v43  ;;  %11113 = vst [vmem:[#allocation76_spill] sm:$0xff] %v8778_v34  ;;  %v632_v23 = vadd.f32 %v8228_v1, %v11118_v45  ;;  %v8798_v56 = vrot.slane %v1264_v2, %v7033_v29  ;;  %3295 = vrot.lane.b32.xlu0 %v8718_v17, %s6892_s21  ;;  %v2913_v53 = vor.u32 %v2911_v5, %v8778_v34  ;;  %v11122_v27 = vld [vmem:[#allocation8_spill] sm:$0xff]  ;;  %v8817_v17 = vpop.permute.xlu0 %2979 }
 0x1ba   : > { %11109 = vst [vmem:[#allocation67_spill] sm:$0xff] %v8767_v55  ;;  %v8784_v20 = vrot.slane %v11116_v42, %v7033_v29  ;;  %v3410_v12 = vor.u32 %v11119_v24, %v8771_v30  ;;  %v624_v42 = vadd.f32 %v8228_v1, %v11121_v25  ;;  %v2635_v24 = vcombine.low %v8519_v14, %v8755_v43 }
 0x1bb   : > { %v668_v50 = vmax.f32 %v632_v23, 0.0  ;;  %v2636_v2 = vcombine.low %v8583_v35, %v8767_v55  ;;  %v2914_v23 = vsel %vm2835_vm0, %v8790_v6, %v2913_v53  ;;  %v11123_v22 = vcombine.low %v8379_v28, %v8385_v60  ;;  %3052 = vrot.lane.b32.xlu1 %v8698_v9, %s6891_s20  ;;  %v11135_v28 = vld [vmem:[#allocation77_spill] sm:$0xff] }
 0x1bc   : > { %11117 = vst [vmem:[#allocation17_spill] sm:$0xff] %v8784_v20  ;;  %v1289_v45 = vcombine.low %v11122_v27, %v8784_v20  ;;  %v8815_v25 = vsel %vm2835_vm0, %v8607_v19, %v3410_v12  ;;  %v1280_v5 = vcombine.low %v8798_v56, %v8784_v20  ;;  %v10765_v55 = vshrl.u32 %v8495_v49, 16 }
 0x1bd   : > { %v1230_v34 = vcombine.high %v668_v50, %v668_v50  ;;  %v8826_v43 = vpack.c.bf16 %v11123_v22, %v2769_v44  ;;  %v8831_v19 = vcombine.high %v8621_v21, %v8621_v21  ;;  %v8835_v12 = vcombine.high %v8732_v40, %v8732_v40  ;;  %3504 = vrot.lane.b32.xlu0 %v8683_v47, %s6894_s19  ;;  %v8864_v44 = vpop.permute.xlu1 %3313 }
 0x1be   : > { %v8839_v53 = vpack.c.bf16 %v1289_v45, %v1280_v5  ;;  %v666_v35 = vmax.f32 %v624_v42, 0.0  ;;  %v8842_v14 = vrot.slane %v1742_v33, %v7033_v29  ;;  %v2417_v22 = vcombine.low %v8749_v13, %v8721_v41 }
 0x1bf   : > { %11124 = vst [vmem:[#allocation5_spill] sm:$0xff] %v8826_v43  ;;  %v4033_v20 = vor.u32 %v8537_v15, %v10765_v55  ;;  %v11126_v33 = vcombine.low %v8615_v46, %v8621_v21  ;;  %v2433_v47 = vcombine.low %v8761_v57, %v7036_v31  ;;  %v2772_v15 = vcombine.low %v8738_v18, %v8776_v3  ;;  %v11134_v18 = vld [vmem:[#allocation79_spill] sm:$0xff] }
 0x1c0   : > { %11125 = vst [vmem:[#allocation48_spill] sm:$0xff] %v8842_v14  ;;  %v8868_v55 = vpack.c.bf16 %v2636_v2, %v2635_v24  ;;  %v8871_v45 = vrot.slane %v1230_v34, %v7033_v29  ;;  %v11130_v42 = vshll.u32 %v8826_v43, 16  ;;  %2993 = vrot.lane.b32.xlu1 %v2898_v54, %s6892_s21  ;;  %v1196_v3 = vcombine.high %v666_v35, %v666_v35  ;;  %v8882_v24 = vpop.permute.xlu0 %3277  ;;  %v11132_v2 = vld [vmem:[#allocation74_spill] sm:$0xff] }
 0x1c1   : > { %v8860_v5 = vrot.slane %v11126_v33, %v7033_v29  ;;  %v8885_v34 = vrot.slane %v2417_v22, %v7033_v29  ;;  %v2279_v33 = vcombine.low %v11135_v28, %v11134_v18  ;;  %v8898_v54 = vrot.slane %v668_v50, %v7033_v29 }
 0x1c2   : > { %11128 = vst [vmem:[#allocation102_spill] sm:$0xff] %v8868_v55  ;;  %11129 = vst [vmem:[#allocation103_spill] sm:$0xff] %v8871_v45  ;;  %v4034_v60 = vrot.slane %v11130_v42, 1  ;;  %3329 = vrot.lane.b32.xlu0 %v8868_v55, %s6891_s20  ;;  %v11133_v42 = vld [vmem:[#allocation73_spill] sm:$0xff]  ;;  %v8901_v22 = vrot.slane %v666_v35, %v7033_v29  ;;  %v11138_v37 = vshrl.u32 %v8485_v16, 16  ;;  %v8910_v28 = vcombine.high %v8871_v45, %v8871_v45 }
 0x1c3   : > { %11127 = vst [vmem:[#allocation51_spill] sm:$0xff] %v8860_v5  ;;  %11131 = vst [vmem:[#allocation104_spill] sm:$0xff] %v8885_v34  ;;  %v2262_v46 = vcombine.low %v11133_v42, %v11132_v2  ;;  %v8895_v5 = vrot.slane %v2433_v47, %v7033_v29  ;;  %v11141_v50 = vcombine.low %v8586_v39, %v8601_v52  ;;  %v11143_v2 = vshrl.u32 %v8172_v32, 16 }
 0x1c4   : > { %v4035_v14 = vsel %vm3841_vm1, %v4033_v20, %v4034_v60  ;;  %11137 = vst [vmem:[#allocation73_spill] sm:$0xff] %v8901_v22  ;;  %v8906_v51 = vrot.slane %v11138_v37, 7  ;;  %11139 = vst [vmem:[#allocation79_spill] sm:$0xff] %v8910_v28  ;;  %v11140_v20 = vld [vmem:[#allocation52_spill] sm:$0xff]  ;;  %2997 = vrot.lane.b32.xlu1 %v2914_v23, %s6892_s21  ;;  %v8924_v37 = vrot.slane %v1196_v3, %v7033_v29  ;;  %v11145_v3 = vshrl.u32 %v8826_v43, 16 }
 0x1c5   : > { %11136 = vst [vmem:[#allocation74_spill] sm:$0xff] %v8895_v5  ;;  %6642 = vmatprep.mubr.msk.bf16.mxu0 %vm3530_vm2, %v4035_v14  ;;  %v635_v18 = vadd.f32 %v8228_v1, %v11140_v20  ;;  %v8917_v47 = vpack.c.bf16 %v2772_v15, %v11141_v50  ;;  %v2773_v14 = vcombine.low %v8885_v34, %v8895_v5  ;;  %v8928_v42 = vrot.slane %v11143_v2, 7  ;;  %v8933_v15 = vpop.permute.xlu1 %3076 }
 0x1c6   : > { %v11144_v20 = vshll.u32 %v8485_v16, 16  ;;  %3293 = vrot.lane.b32.xlu0 %v8868_v55, %s6892_s21  ;;  %v8937_v50 = vpack.c.bf16 %v2279_v33, %v2262_v46  ;;  %v4050_v5 = vor.u32 %v4034_v60, %v11145_v3  ;;  %v8944_v2 = vcombine.high %v8898_v54, %v8898_v54  ;;  %v8951_v46 = vpop.permute.xlu0 %3275 }
 0x1c7   : > { %11142 = vst [vmem:[#allocation77_spill] sm:$0xff] %v8917_v47  ;;  %v669_v35 = vmax.f32 %v635_v18, 0.0  ;;  %v10780_v23 = vshll.u32 %v8917_v47, 16  ;;  %v2903_v55 = vshll.u32 %v8698_v9, 16  ;;  %v2581_v33 = vcombine.low %v8871_v45, %v8910_v28 }
 0x1c8   : > { %v3426_v52 = vor.u32 %v11144_v20, %v8906_v51  ;;  %11146 = vst [vmem:[#allocation52_spill] sm:$0xff] %v8944_v2  ;;  %v11147_v20 = vld [vmem:[#allocation58_spill] sm:$0xff]  ;;  %v8957_v60 = vcombine.high %v8901_v22, %v8901_v22  ;;  %3094 = vrot.lane.b32.xlu1 %v8937_v50, %s6894_s19  ;;  %v11150_v43 = vcombine.low %v8276_v48, %v7036_v31 }
 0x1c9   : > { %v627_v34 = vadd.f32 %v8228_v1, %v11147_v20  ;;  %v8960_v18 = vrot.slane %v669_v35, %v7033_v29  ;;  %v8968_v1 = vcombine.high %v8924_v37, %v8924_v37  ;;  %v1247_v9 = vcombine.high %v669_v35, %v669_v35 }
 0x1ca   : > { %v3427_v16 = vsel %vm2835_vm0, %v8928_v42, %v3426_v52  ;;  %v4051_v52 = vrot.slane %v10780_v23, 1  ;;  %v2905_v20 = vor.u32 %v2903_v55, %v8790_v6  ;;  %3506 = vrot.lane.b32.xlu0 %v8815_v25, %s6894_s19  ;;  %v8984_v35 = vrot.slane %v11150_v43, %v7033_v29  ;;  %v8994_v23 = vpop.permute.xlu1 %3038  ;;  %v11153_v43 = vld [vmem:[#allocation32_spill] sm:$0xff] }
 0x1cb   : > { %11148 = vst [vmem:[#allocation58_spill] sm:$0xff] %v8960_v18  ;;  %v667_v3 = vmax.f32 %v627_v34, 0.0  ;;  %v8975_v45 = vcombine.high %v8960_v18, %v8960_v18  ;;  %v2468_v55 = vcombine.low %v7036_v31, %v8901_v22  ;;  %v3122_v28 = vshrl.u32 %v11153_v43, 16 }
 0x1cc   : > { %v4052_v39 = vsel %vm3841_vm1, %v4050_v5, %v4051_v52  ;;  %11151 = vst [vmem:[#allocation106_spill] sm:$0xff] %v8984_v35  ;;  %v2906_v34 = vsel %vm2835_vm0, %v8700_v0, %v2905_v20  ;;  %v8997_v5 = vrot.slane %v2581_v33, %v7033_v29  ;;  %3056 = vrot.lane.b32.xlu1 %v8937_v50, %s6891_s20 }
 0x1cd   : > { %11149 = vst [vmem:[#allocation105_spill] sm:$0xff] %v8975_v45  ;;  %6643 = vmatmul.mubr.msk.bf16.gmra.mrb[52].mxu0 %vm3530_vm2, %v4052_v39  ;;  %v1213_v6 = vcombine.high %v667_v3, %v667_v3  ;;  %v8990_v25 = vrot.slane %v667_v3, %v7033_v29  ;;  %v2597_v48 = vcombine.low %v8960_v18, %v8975_v45  ;;  %v9022_v18 = vpop.permute.xlu0 %2981 }
 0x1ce   : > { %v11154_v39 = vcombine.low %v11093_v61, %v11092_v8  ;;  %v9011_v0 = vrot.slane %v1247_v9, %v7033_v29  ;;  %v11159_v61 = vcombine.low %v8621_v21, %v8831_v19  ;;  %v11160_v9 = vcombine.low %v8732_v40, %v8835_v12  ;;  %3510 = vrot.lane.b32.xlu0 %v3427_v16, %s6894_s19 }
 0x1cf   : > { %11152 = vst [vmem:[#allocation107_spill] sm:$0xff] %v8990_v25  ;;  %v9014_v33 = vrot.slane %v1213_v6, %v7033_v29  ;;  %v9018_v3 = vcombine.high %v8990_v25, %v8990_v25  ;;  %v2485_v20 = vcombine.low %v8968_v1, %v8990_v25  ;;  %v2639_v45 = vcombine.low %v8984_v35, %v8703_v59 }
 0x1d0   : > { %v9006_v22 = vrot.slane %v11154_v39, %v7033_v29  ;;  %11156 = vst [vmem:[#allocation108_spill] sm:$0xff] %v9011_v0  ;;  %v9028_v8 = vrot.slane %v11159_v61, %v7033_v29  ;;  %v9034_v6 = vrot.slane %v11160_v9, %v7033_v29  ;;  %v9038_v39 = vrot.slane %v2597_v48, %v7033_v29  ;;  %v9076_v48 = vpop.permute.xlu1 %3078 }
 0x1d1   : > { %11157 = vst [vmem:[#allocation109_spill] sm:$0xff] %v9014_v33  ;;  %11158 = vst [vmem:[#allocation110_spill] sm:$0xff] %v9018_v3  ;;  %v3533_v21 = vsel %vm3530_vm2, %v8839_v53, %v8817_v17  ;;  %v2484_v61 = vcombine.low %v8957_v60, %v8924_v37  ;;  %v9048_v25 = vrot.slane %v2485_v20, %v7033_v29  ;;  %2995 = vrot.lane.b32.xlu1 %v2906_v34, %s6892_s21 }
 0x1d2   : > { %11155 = vst [vmem:[#allocation32_spill] sm:$0xff] %v9006_v22  ;;  %11161 = vst [vmem:[#allocation111_spill] sm:$0xff] %v9034_v6  ;;  %v2501_v9 = vcombine.low %v9018_v3, %v9014_v33  ;;  %v2580_v16 = vcombine.low %v8898_v54, %v8944_v2  ;;  %v2640_v59 = vcombine.low %v9006_v22, %v8708_v7  ;;  %v9070_v3 = vrot.slane %v3122_v28, 7  ;;  %v9078_v7 = vpop.permute.xlu0 %3315 }
 0x1d3   : > { %v11162_v17 = vcombine.low %v8727_v26, %v8735_v4  ;;  %v9064_v20 = vrot.slane %v2468_v55, %v7033_v29  ;;  %v9068_v35 = vcombine.high %v9011_v0, %v9011_v0  ;;  %v9089_v22 = vrot.slane %v2484_v61, %v7033_v29 }
 0x1d4   : > { %v9073_v2 = vrot.slane %v2501_v9, %v7033_v29  ;;  %v9084_v55 = vpack.c.bf16 %v2640_v59, %v2639_v45  ;;  %v3125_v9 = vshll.u32 %v11153_v43, 16  ;;  %v3590_v61 = vsel %vm3588_vm3, %v3533_v21, %v8795_v10  ;;  %v11169_v43 = vld [vmem:[#allocation80_spill] sm:$0xff] }
 0x1d5   : > { %v9061_v53 = vpack.c.bf16 %v11162_v17, %v2773_v14  ;;  %11163 = vst [vmem:[#allocation112_spill] sm:$0xff] %v9064_v20  ;;  %11164 = vst [vmem:[#allocation113_spill] sm:$0xff] %v9068_v35  ;;  %v9082_v14 = vcombine.high %v9014_v33, %v9014_v33  ;;  %v10798_v17 = vshrl.u32 %v8917_v47, 16  ;;  %v11168_v4 = vshrl.u32 %v11063_v63, 16 }
 0x1d6   : > { %11165 = vst [vmem:[#allocation114_spill] sm:$0xff] %v9073_v2  ;;  %11166 = vst [vmem:[#allocation115_spill] sm:$0xff] %v9084_v55  ;;  %3333 = vrot.lane.b32.xlu0 %v9084_v55, %s6891_s20  ;;  %v9108_v26 = vsel %vm3627_vm4, %v3590_v61, %v8933_v15  ;;  %v2296_v33 = vcombine.low %v11169_v43, %v8353_v36  ;;  %v3127_v21 = vor.u32 %v3125_v9, %v9070_v3  ;;  %v11170_v36 = vld [vmem:[#allocation33_spill] sm:$0xff]  ;;  %v11172_v43 = vld [vmem:[#allocation34_spill] sm:$0xff] }
 0x1d7   : > { %v10799_v28 = vshll.u32 %v9061_v53, 16  ;;  %11167 = vst [vmem:[#allocation116_spill] sm:$0xff] %v9089_v22  ;;  %v4067_v59 = vor.u32 %v4051_v52, %v10798_v17  ;;  %v3117_v34 = vrot.slane %v11168_v4, 7  ;;  %v2313_v52 = vcombine.low %v8356_v38, %v8359_v62  ;;  %v9114_v17 = vpop.permute.xlu0 %3279  ;;  %v11171_v38 = vld [vmem:[#allocation35_spill] sm:$0xff] }
 0x1d8   : > { %v2502_v4 = vcombine.low %v9082_v14, %v7036_v31  ;;  %v1298_v62 = vcombine.low %v11122_v27, %v11170_v36  ;;  %v1315_v10 = vcombine.low %v11172_v43, %v11171_v38  ;;  %v3844_v47 = vshll.u32 %v9108_v26, 16  ;;  %v11178_v38 = vld [vmem:[#allocation41_spill] sm:$0xff] }
 0x1d9   : > { %v9100_v45 = vrot.slane %v10799_v28, 1  ;;  %v2598_v28 = vcombine.low %v9011_v0, %v9068_v35  ;;  %v9124_v61 = vpack.c.bf16 %v2313_v52, %v2296_v33  ;;  %v11173_v35 = vshll.u32 %v8172_v32, 16  ;;  %v9133_v0 = vpop.permute.xlu1 %3040 }
 0x1da   : > { %3297 = vrot.lane.b32.xlu0 %v9084_v55, %s6892_s21  ;;  %v2916_v33 = vshrl.u32 %v8937_v50, 16  ;;  %v2919_v52 = vshll.u32 %v8937_v50, 16 }
 0x1db   : > { %v4069_v15 = vsel %vm3841_vm1, %v4067_v59, %v9100_v45  ;;  %v3418_v9 = vor.u32 %v11173_v35, %v8928_v42  ;;  %v3118_v59 = vshll.u32 %v11063_v63, 16  ;;  %3096 = vrot.lane.b32.xlu1 %v9124_v61, %s6894_s19  ;;  %v11174_v42 = vld [vmem:[#allocation55_spill] sm:$0xff]  ;;  %v11177_v63 = vld [vmem:[#allocation93_spill] sm:$0xff]  ;;  %v9157_v50 = vpop.permute.xlu0 %3317 }
 0x1dc   : > { %6646 = vmatprep.mubr.msk.bf16.mxu0 %vm3530_vm2, %v4069_v15  ;;  %v1905_v15 = vpack.c.bf16 %v1315_v10, %v1298_v62  ;;  %v11175_v35 = vcombine.low %v11174_v42, %v8398_v11  ;;  %v11179_v43 = vcombine.low %v11177_v63, %v11178_v38  ;;  %v2775_v10 = vcombine.low %v9028_v8, %v9034_v6  ;;  %v11181_v62 = vld [vmem:[#allocation16_spill] sm:$0xff]  ;;  %v11182_v63 = vld [vmem:[#allocation94_spill] sm:$0xff] }
 0x1dd   : > { %v3419_v32 = vsel %vm2835_vm0, %v8771_v30, %v3418_v9  ;;  %v2776_v9 = vcombine.low %v9064_v20, %v9089_v22  ;;  %v9165_v11 = vrot.slane %v2916_v33, 7  ;;  %v3120_v42 = vor.u32 %v3118_v59, %v3117_v34 }
 0x1de   : > { %v9149_v36 = vrot.slane %v11175_v35, %v7033_v29  ;;  %v9155_v55 = vrot.slane %v11179_v43, %v7033_v29  ;;  %v3536_v35 = vsel %vm3530_vm2, %v1905_v15, %v9022_v18  ;;  %v11183_v43 = vld [vmem:[#allocation56_spill] sm:$0xff]  ;;  %v9174_v6 = vrot.slane %v2580_v16, %v7033_v29  ;;  %3508 = vrot.lane.b32.xlu0 %v3419_v32, %s6894_s19  ;;  %v3493_v16 = vpop.permute.xlu1 %3492 }
 0x1df   : > { %v9177_v30 = vrot.slane %v2598_v28, %v7033_v29  ;;  %v3128_v22 = vsel %vm2835_vm0, %v3117_v34, %v3127_v21  ;;  %v2921_v59 = vor.u32 %v2919_v52, %v9165_v11  ;;  %v9183_v18 = vrot.slane %v2502_v4, %v7033_v29  ;;  %3058 = vrot.lane.b32.xlu1 %v9124_v61, %s6891_s20  ;;  %v11187_v21 = vld [vmem:[#allocation76_spill] sm:$0xff] }
 0x1e0   : > { %11176 = vst [vmem:[#allocation80_spill] sm:$0xff] %v9149_v36  ;;  %11180 = vst [vmem:[#allocation33_spill] sm:$0xff] %v9155_v55  ;;  %v2641_v38 = vcombine.low %v9149_v36, %v11182_v63  ;;  %v2642_v27 = vcombine.low %v9155_v55, %v11183_v43  ;;  %v3846_v33 = vrot.slane %v3844_v47, 1  ;;  %v3668_v15 = vsel %vm3530_vm2, %v3120_v42, %v8951_v46  ;;  %v11189_v47 = vld [vmem:[#allocation7_spill] sm:$0xff]  ;;  %v11190_v32 = vld [vmem:[#allocation44_spill] sm:$0xff]  ;;  %v9201_v46 = vpop.permute.xlu0 %3281 }
 0x1e1   : > { %11184 = vst [vmem:[#allocation35_spill] sm:$0xff] %v9174_v6  ;;  %11185 = vst [vmem:[#allocation34_spill] sm:$0xff] %v9183_v18  ;;  %v11186_v28 = vshrl.u32 %v8495_v49, 16  ;;  %v3592_v34 = vsel %vm3588_vm3, %v3536_v35, %v8994_v23  ;;  %v2922_v52 = vsel %vm2835_vm0, %v11187_v21, %v2921_v59  ;;  %v2330_v63 = vcombine.low %v11190_v32, %v11189_v47  ;;  %v11191_v55 = vld [vmem:[#allocation87_spill] sm:$0xff] }
 0x1e2   : > { %v9197_v4 = vpack.c.bf16 %v2642_v27, %v2641_v38  ;;  %v9205_v42 = vsel %vm3627_vm4, %v3592_v34, %v9076_v48  ;;  %v11193_v23 = vshll.u32 %v8495_v49, 16  ;;  %v9212_v20 = vpack.c.bf16 %v2776_v9, %v2775_v10  ;;  %v9241_v34 = vpop.permute.xlu1 %3080 }
 0x1e3   : > { %v9191_v43 = vrot.slane %v11186_v28, 7  ;;  %v11192_v28 = vld [vmem:[#allocation84_spill] sm:$0xff]  ;;  %v3671_v38 = vsel %vm3530_vm2, %v3128_v22, %v8882_v24  ;;  %v3842_v59 = vshrl.u32 %v9108_v26, 16  ;;  %v3724_v48 = vsel %vm3588_vm3, %v3668_v15, %v8864_v44  ;;  %2999 = vrot.lane.b32.xlu1 %v2922_v52, %s6892_s21  ;;  %v11207_v26 = vld [vmem:[#allocation90_spill] sm:$0xff] }
 0x1e4   : > { %11188 = vst [vmem:[#allocation55_spill] sm:$0xff] %v9197_v4  ;;  %v2347_v36 = vcombine.low %v11192_v28, %v11191_v55  ;;  %3335 = vrot.lane.b32.xlu0 %v9197_v4, %s6891_s20  ;;  %v3761_v49 = vsel %vm3627_vm4, %v3724_v48, %v3493_v16  ;;  %v10814_v10 = vshrl.u32 %v9061_v53, 16  ;;  %v10813_v9 = vshll.u32 %v9212_v20, 16  ;;  %v3495_v52 = vpop.permute.xlu0 %3494  ;;  %v11195_v28 = vld [vmem:[#allocation24_spill] sm:$0xff] }
 0x1e5   : > { %v3434_v35 = vor.u32 %v11193_v23, %v9191_v43  ;;  %v3847_v24 = vor.u32 %v3846_v33, %v3842_v59  ;;  %v3848_v22 = vshll.u32 %v9205_v42, 16  ;;  %v3726_v44 = vsel %vm3588_vm3, %v3671_v38, %v9078_v7  ;;  %v11196_v23 = vld [vmem:[#allocation42_spill] sm:$0xff]  ;;  %v11199_v59 = vld [vmem:[#allocation89_spill] sm:$0xff] }
 0x1e6   : > { %v9234_v15 = vpack.c.bf16 %v2347_v36, %v2330_v63  ;;  %v4084_v16 = vor.u32 %v9100_v45, %v10814_v10  ;;  %v2778_v21 = vcombine.low %v9183_v18, %v9174_v6  ;;  %v3854_v33 = vshll.u32 %v3761_v49, 16  ;;  %v11214_v6 = vld [vmem:[#allocation5_spill] sm:$0xff] }
 0x1e7   : > { %v3435_v55 = vsel %vm2835_vm0, %v8906_v51, %v3434_v35  ;;  %v4085_v51 = vrot.slane %v10813_v9, 1  ;;  %v10815_v7 = vshrl.u32 %v9212_v20, 16  ;;  %v2924_v36 = vshrl.u32 %v9124_v61, 16  ;;  %v11202_v9 = vld [vmem:[#allocation20_spill] sm:$0xff] }
 0x1e8   : > { %3299 = vrot.lane.b32.xlu0 %v9197_v4, %s6892_s21  ;;  %v2927_v63 = vshll.u32 %v9124_v61, 16  ;;  %3098 = vrot.lane.b32.xlu1 %v9234_v15, %s6894_s19  ;;  %v11194_v47 = vcombine.low %v9048_v25, %v9073_v2  ;;  %v11197_v35 = vcombine.low %v11195_v28, %v11196_v23  ;;  %v11200_v61 = vcombine.low %v11199_v59, %v7036_v31 }
 0x1e9   : > { %v4086_v45 = vsel %vm3841_vm1, %v4084_v16, %v4085_v51  ;;  %v3130_v10 = vshrl.u32 %v11202_v9, 16  ;;  %v4101_v16 = vor.u32 %v4085_v51, %v10815_v7  ;;  %v3856_v51 = vrot.slane %v3854_v33, 1  ;;  %v11210_v33 = vld [vmem:[#allocation14_spill] sm:$0xff] }
 0x1ea   : > { %v9256_v32 = vpack.c.bf16 %v2778_v21, %v11194_v47  ;;  %v9262_v38 = vrot.slane %v11197_v35, %v7033_v29  ;;  %v9268_v48 = vrot.slane %v11200_v61, %v7033_v29  ;;  %6647 = vmatmul.mubr.msk.bf16.gmra.mrb[56].mxu0 %vm3530_vm2, %v4086_v45  ;;  %v9274_v21 = vrot.slane %v2924_v36, 7  ;;  %v11203_v47 = vld [vmem:[#allocation98_spill] sm:$0xff] }
 0x1eb   : > { %v11204_v28 = vcombine.low %v8618_v58, %v11203_v47  ;;  %v9286_v61 = vsel %vm3627_vm4, %v3726_v44, %v3495_v52  ;;  %v11206_v45 = vld [vmem:[#allocation66_spill] sm:$0xff]  ;;  %v11208_v58 = vld [vmem:[#allocation48_spill] sm:$0xff]  ;;  %v9295_v7 = vrot.slane %v3848_v22, 1  ;;  %v3852_v35 = vshrl.u32 %v3761_v49, 16  ;;  %v11212_v22 = vld [vmem:[#allocation9_spill] sm:$0xff] }
 0x1ec   : > { %11198 = vst [vmem:[#allocation93_spill] sm:$0xff] %v9262_v38  ;;  %11201 = vst [vmem:[#allocation41_spill] sm:$0xff] %v9268_v48  ;;  %v2643_v59 = vcombine.low %v9262_v38, %v9268_v48  ;;  %v2364_v27 = vcombine.low %v11207_v26, %v11206_v45  ;;  %3512 = vrot.lane.b32.xlu0 %v3435_v55, %s6894_s19  ;;  %v2929_v36 = vor.u32 %v2927_v63, %v9274_v21  ;;  %v9301_v26 = vpop.permute.xlu1 %3042  ;;  %v11211_v55 = vld [vmem:[#allocation40_spill] sm:$0xff] }
 0x1ed   : > { %v9280_v23 = vrot.slane %v11204_v28, %v7033_v29  ;;  %v3858_v28 = vshll.u32 %v9286_v61, 16  ;;  %3060 = vrot.lane.b32.xlu1 %v9234_v15, %s6891_s20  ;;  %v11209_v44 = vshll.u32 %v9256_v32, 16  ;;  %v2381_v45 = vcombine.low %v11211_v55, %v11210_v33  ;;  %v11213_v49 = vld [vmem:[#allocation36_spill] sm:$0xff]  ;;  %v11222_v33 = vld [vmem:[#allocation65_spill] sm:$0xff] }
 0x1ee   : > { %v2930_v63 = vsel %vm2835_vm0, %v9165_v11, %v2929_v36  ;;  %v9313_v38 = vrot.slane %v3130_v10, 7  ;;  %v11215_v2 = vshrl.u32 %v11214_v6, 16  ;;  %v11216_v11 = vcombine.low %v11181_v62, %v8749_v13  ;;  %v11218_v10 = vld [vmem:[#allocation10_spill] sm:$0xff]  ;;  %v11219_v36 = vld [vmem:[#allocation21_spill] sm:$0xff]  ;;  %v11221_v62 = vld [vmem:[#allocation75_spill] sm:$0xff] }
 0x1ef   : > { %11205 = vst [vmem:[#allocation16_spill] sm:$0xff] %v9280_v23  ;;  %v2644_v47 = vcombine.low %v11208_v58, %v9280_v23  ;;  %v4102_v52 = vrot.slane %v11209_v44, 1  ;;  %v9309_v48 = vrot.slane %v3858_v28, 1  ;;  %v1332_v58 = vcombine.low %v11213_v49, %v11212_v22  ;;  %v11223_v22 = vld [vmem:[#allocation101_spill] sm:$0xff]  ;;  %v11224_v49 = vld [vmem:[#allocation96_spill] sm:$0xff] }
 0x1f0   : > { %v9316_v44 = vpack.c.bf16 %v2381_v45, %v2364_v27  ;;  %v9320_v18 = vrot.slane %v11215_v2, 7  ;;  %v3857_v27 = vor.u32 %v3856_v51, %v3852_v35  ;;  %v3133_v2 = vshll.u32 %v11202_v9, 16 }
 0x1f1   : > { %v9307_v23 = vpack.c.bf16 %v2644_v47, %v2643_v59  ;;  %v4103_v4 = vsel %vm3841_vm1, %v4101_v16, %v4102_v52  ;;  %v9326_v59 = vrot.slane %v11216_v11, %v7033_v29  ;;  %v1349_v16 = vcombine.low %v11219_v36, %v11218_v10  ;;  %v11220_v47 = vld [vmem:[#allocation73_spill] sm:$0xff]  ;;  %3001 = vrot.lane.b32.xlu1 %v2930_v63, %s6892_s21  ;;  %v2984_v63 = vpop.permute.xlu1 %2983  ;;  %v11229_v10 = vld [vmem:[#allocation43_spill] sm:$0xff] }
 0x1f2   : > { %6650 = vmatprep.mubr.msk.bf16.mxu0 %vm3530_vm2, %v4103_v4  ;;  %v1826_v28 = vcombine.low %v11220_v47, %v8957_v60  ;;  %v3851_v13 = vsel %vm3841_vm1, %v3847_v24, %v9295_v7  ;;  %v2398_v4 = vcombine.low %v11222_v33, %v11221_v62  ;;  %v3861_v45 = vsel %vm3841_vm1, %v3857_v27, %v9309_v48 }
 0x1f3   : > { %11217 = vst [vmem:[#allocation76_spill] sm:$0xff] %v9326_v59  ;;  %3337 = vrot.lane.b32.xlu0 %v9307_v23, %s6891_s20  ;;  %v1906_v55 = vpack.c.bf16 %v1349_v16, %v1332_v58  ;;  %v2415_v35 = vcombine.low %v11224_v49, %v11223_v22  ;;  %v11225_v60 = vcombine.low %v8721_v41, %v8761_v57  ;;  %v11227_v24 = vshll.u32 %v11214_v6, 16  ;;  %v11228_v58 = vld [vmem:[#allocation31_spill] sm:$0xff] }
 0x1f4   : > { %v3135_v51 = vor.u32 %v3133_v2, %v9313_v38  ;;  %4387 = vmatprep.mubr.bf16.mxu1 %v3861_v45  ;;  %v11230_v36 = vcombine.low %v11228_v58, %v11229_v10  ;;  %v11232_v27 = vcombine.low %v8997_v5, %v9038_v39  ;;  %v11233_v41 = vcombine.low %v9177_v30, %v8798_v56  ;;  %v9374_v2 = vpop.permute.xlu0 %3319 }
 0x1f5   : > { %v9349_v9 = vrot.slane %v11225_v60, %v7033_v29  ;;  %v3442_v11 = vor.u32 %v11227_v24, %v9320_v18  ;;  %v1810_v47 = vcombine.low %v8835_v12, %v7036_v31  ;;  %v3539_v6 = vsel %vm3530_vm2, %v1906_v55, %v2984_v63  ;;  %4388 = vmatmul.mubr.bf16.vlgmr.msra.gmra.mrb[0].mxu1 %v3851_v13  ;;  %v11234_v55 = vld [vmem:[#allocation28_spill] sm:$0xff]  ;;  %v11236_v63 = vld [vmem:[#allocation13_spill] sm:$0xff]  ;;  %v9409_v10 = vpop.permute.xlu1 %3082 }
 0x1f6   : > { %v9359_v16 = vrot.slane %v11230_v36, %v7033_v29  ;;  %v9367_v57 = vpack.c.bf16 %v11233_v41, %v11232_v27  ;;  %v9376_v62 = vpack.c.bf16 %v2415_v35, %v2398_v4  ;;  %v10825_v33 = vshrl.u32 %v9256_v32, 16  ;;  %3100 = vrot.lane.b32.xlu1 %v9316_v44, %s6894_s19  ;;  %v11241_v27 = vld [vmem:[#allocation110_spill] sm:$0xff]  ;;  %v11242_v41 = vld [vmem:[#allocation107_spill] sm:$0xff] }
 0x1f7   : > { %11226 = vst [vmem:[#allocation7_spill] sm:$0xff] %v9349_v9  ;;  %3301 = vrot.lane.b32.xlu0 %v9307_v23, %s6892_s21  ;;  %v3594_v12 = vsel %vm3588_vm3, %v3539_v6, %v9133_v0  ;;  %v2645_v45 = vcombine.low %v9326_v59, %v9349_v9  ;;  %v9392_v4 = vrot.slane %v1826_v28, %v7033_v29  ;;  %v6807_v0 = vld [vmem:[%s10601_s3 + $0x80] sm:$0xff]   ;;  %v3138_v24 = vshrl.u32 %v11236_v63, 16 }
 0x1f8   : > { %11231 = vst [vmem:[#allocation44_spill] sm:$0xff] %v9359_v16  ;;  %v2646_v22 = vcombine.low %v11234_v55, %v9359_v16  ;;  %v10824_v49 = vshll.u32 %v9367_v57, 16  ;;  %v4118_v35 = vor.u32 %v4102_v52, %v10825_v33  ;;  %6696 = vmatpush3.bf16.msra.mxu1 %v6807_v0  ;;  %v3136_v60 = vsel %vm2835_vm0, %v9070_v3, %v3135_v51  ;;  %v6808_v52 = vld [vmem:[%s10601_s3 + $0x88] sm:$0xff]   ;;  %v9415_v36 = vpop.permute.xlu0 %3283  ;;  %v11247_v33 = vld [vmem:[#allocation72_spill] sm:$0xff]  ;;  %v11249_v55 = vld [vmem:[#allocation99_spill] sm:$0xff] }
 0x1f9   : > { %11235 = vst [vmem:[#allocation87_spill] sm:$0xff] %v9392_v4  ;;  %v9405_v58 = vsel %vm3627_vm4, %v3594_v12, %v9241_v34  ;;  %v3443_v28 = vsel %vm2835_vm0, %v9191_v43, %v3442_v11  ;;  %6695 = vmatprep.subr.bf16.mxu1 %v6808_v52  ;;  %v2932_v34 = vshrl.u32 %v9234_v15, 16  ;;  %v11238_v43 = vcombine.low %v8831_v19, %v8732_v40  ;;  %v11243_v12 = vld [vmem:[#allocation109_spill] sm:$0xff]  ;;  %v11244_v19 = vld [vmem:[#allocation51_spill] sm:$0xff] }
 0x1fa   : > { %v9419_v3 = vrot.slane %v10824_v49, 1  ;;  %v9429_v11 = vrot.slane %v1810_v47, %v7033_v29  ;;  %v1843_v6 = vcombine.low %v11242_v41, %v11241_v27  ;;  %v1844_v0 = vcombine.low %v11243_v12, %v9082_v14  ;;  %3062 = vrot.lane.b32.xlu1 %v9316_v44, %s6891_s20  ;;  %v11251_v59 = vld [vmem:[#allocation77_spill] sm:$0xff] }
 0x1fb   : > { %3514 = vrot.lane.b32.xlu0 %v3443_v28, %s6894_s19  ;;  %v9426_v51 = vrot.slane %v11238_v43, %v7033_v29  ;;  %v3674_v28 = vsel %vm3530_vm2, %v3136_v60, %v9114_v17  ;;  %v9439_v49 = vpack.c.bf16 %v2646_v22, %v2645_v45  ;;  %v3869_v27 = vshll.u32 %v9405_v58, 16  ;;  %v9452_v22 = vpop.permute.xlu1 %3044 }
 0x1fc   : > { %11237 = vst [vmem:[#allocation84_spill] sm:$0xff] %v9419_v3  ;;  %11240 = vst [vmem:[#allocation42_spill] sm:$0xff] %v9429_v11  ;;  %v4120_v40 = vsel %vm3841_vm1, %v4118_v35, %v9419_v3  ;;  %v2648_v43 = vcombine.low %v9429_v11, %v9392_v4  ;;  %6697 = vmatpush3.bf16.msra.mxu1 %v6808_v52  ;;  %v3866_v14 = vshrl.u32 %v9205_v42, 16  ;;  %v3141_v45 = vshll.u32 %v11236_v63, 16  ;;  %v3497_v41 = vpop.permute.xlu0 %3496  ;;  %v11245_v63 = vld [vmem:[#allocation62_spill] sm:$0xff] }
 0x1fd   : > { %11239 = vst [vmem:[#allocation24_spill] sm:$0xff] %v9426_v51  ;;  %v2647_v47 = vcombine.low %v11244_v19, %v9426_v51  ;;  %v3728_v17 = vsel %vm3588_vm3, %v3674_v28, %v9157_v50  ;;  %6651 = vmatmul.mubr.msk.bf16.gmra.mrb[60].mxu0 %vm3530_vm2, %v4120_v40  ;;  %v2940_v35 = vshrl.u32 %v9316_v44, 16  ;;  %v9456_v60 = vrot.slane %v3138_v24, 7  ;;  %v11246_v24 = vld [vmem:[#allocation104_spill] sm:$0xff]  ;;  %v11257_v4 = vld [vmem:[#allocation22_spill] sm:$0xff] }
 0x1fe   : > { %v2934_v52 = vrot.slane %v2932_v34, 7  ;;  %v2935_v42 = vshll.u32 %v9234_v15, 16  ;;  %v3873_v50 = vshrl.u32 %v9286_v61, 16  ;;  %v3146_v28 = vshrl.u32 %v11245_v63, 16  ;;  %3102 = vrot.lane.b32.xlu1 %v9376_v62, %s6894_s19 }
 0x1ff   : > { %3339 = vrot.lane.b32.xlu0 %v9439_v49, %s6891_s20  ;;  %v9461_v12 = vpack.c.bf16 %v2648_v43, %v2647_v47  ;;  %v9468_v40 = vsel %vm3627_vm4, %v3728_v17, %v3497_v41  ;;  %v2432_v56 = vcombine.low %v11247_v33, %v11246_v24  ;;  %v9473_v34 = vrot.slane %v3869_v27, 1  ;;  %v9480_v9 = vpop.permute.xlu1 %3084  ;;  %v11250_v17 = vld [vmem:[#allocation74_spill] sm:$0xff] }
 0x200   : > { %v3876_v13 = vshll.u32 %v9468_v40, 16  ;;  %v2942_v15 = vrot.slane %v2940_v35, 7  ;;  %v2943_v47 = vshll.u32 %v9316_v44, 16  ;;  %v9477_v61 = vrot.slane %v1843_v6, %v7033_v29  ;;  %v9494_v44 = vpop.permute.xlu0 %3321 }
 0x201   : > { %v3868_v43 = vor.u32 %v3866_v14, %v9295_v7  ;;  %v2449_v41 = vcombine.low %v11250_v17, %v11249_v55  ;;  %v11252_v3 = vshrl.u32 %v11251_v59, 16  ;;  %v9487_v24 = vor.u32 %v3141_v45, %v9456_v60  ;;  %v11253_v55 = vld [vmem:[#allocation64_spill] sm:$0xff] }
 0x202   : > { %11248 = vst [vmem:[#allocation89_spill] sm:$0xff] %v9477_v61  ;;  %v3875_v27 = vor.u32 %v3873_v50, %v9309_v48  ;;  %v9490_v35 = vrot.slane %v3876_v13, 1  ;;  %v2937_v7 = vor.u32 %v2935_v42, %v2934_v52  ;;  %v9496_v6 = vrot.slane %v3146_v28, 7  ;;  %3064 = vrot.lane.b32.xlu1 %v9376_v62, %s6891_s20  ;;  %v11256_v28 = vld [vmem:[#allocation63_spill] sm:$0xff] }
 0x203   : > { %v3447_v33 = vrot.slane %v11252_v3, 7  ;;  %3303 = vrot.lane.b32.xlu0 %v9439_v49, %s6892_s21  ;;  %v11254_v3 = vld [vmem:[#allocation27_spill] sm:$0xff]  ;;  %v9502_v45 = vpack.c.bf16 %v2449_v41, %v2432_v56  ;;  %v11255_v48 = vshll.u32 %v11251_v59, 16  ;;  %v3872_v17 = vsel %vm3841_vm1, %v3868_v43, %v9473_v34  ;;  %v9512_v11 = vpop.permute.xlu1 %3046 }
 0x204   : > { %v1383_v14 = vcombine.low %v11254_v3, %v11253_v55  ;;  %v3879_v50 = vsel %vm3841_vm1, %v3875_v27, %v9490_v35  ;;  %v2945_v42 = vor.u32 %v2943_v47, %v2942_v15  ;;  %v1366_v51 = vcombine.low %v11257_v4, %v11256_v28  ;;  %v11259_v55 = vld [vmem:[#allocation100_spill] sm:$0xff]  ;;  %v9526_v4 = vpop.permute.xlu0 %3285 }
 0x205   : > { %v3450_v13 = vor.u32 %v11255_v48, %v3447_v33  ;;  %4395 = vmatprep.mubr.bf16.mxu1 %v3879_v50  ;;  %v11258_v41 = vshrl.u32 %v9061_v53, 16  ;;  %v2466_v3 = vcombine.low %v11259_v55, %v9028_v8  ;;  %v11260_v27 = vld [vmem:[#allocation112_spill] sm:$0xff]  ;;  %v11261_v48 = vld [vmem:[#allocation111_spill] sm:$0xff]  ;;  %v2938_v47 = vsel %vm2835_vm0, %v9274_v21, %v2937_v7 }
 0x206   : > { %v2483_v16 = vcombine.low %v11261_v48, %v11260_v27  ;;  %4396 = vmatmul.mubr.bf16.gmra.mrb[4].mxu1 %v3872_v17  ;;  %v9535_v8 = vrot.slane %v1844_v0, %v7033_v29  ;;  %3003 = vrot.lane.b32.xlu1 %v2938_v47, %s6892_s21  ;;  %v1907_v21 = vpack.c.bf16 %v1383_v14, %v1366_v51  ;;  %v11265_v7 = vshll.u32 %v9061_v53, 16 }
 0x207   : > { %v3451_v56 = vsel %vm2835_vm0, %v9320_v18, %v3450_v13  ;;  %v3455_v59 = vrot.slane %v11258_v41, 7  ;;  %3341 = vrot.lane.b32.xlu0 %v9461_v12, %s6891_s20  ;;  %v11262_v18 = vcombine.low %v8924_v37, %v8968_v1  ;;  %v2948_v13 = vshrl.u32 %v9376_v62, 16  ;;  %v11267_v1 = vld [vmem:[#allocation19_spill] sm:$0xff]  ;;  %v11268_v41 = vld [vmem:[#allocation46_spill] sm:$0xff]  ;;  %v2986_v53 = vpop.permute.xlu1 %2985 }
 0x208   : > { %11264 = vst [vmem:[#allocation98_spill] sm:$0xff] %v9535_v8  ;;  %v9541_v28 = vpack.c.bf16 %v2483_v16, %v2466_v3  ;;  %v11266_v17 = vcombine.low %v7036_v31, %v8898_v54  ;;  %v1400_v55 = vcombine.low %v11268_v41, %v11267_v1  ;;  %v2951_v48 = vshll.u32 %v9376_v62, 16 }
 0x209   : > { %v9532_v43 = vrot.slane %v11262_v18, %v7033_v29  ;;  %v3458_v50 = vor.u32 %v11265_v7, %v3455_v59  ;;  %v2950_v27 = vrot.slane %v2948_v13, 7  ;;  %v2946_v51 = vsel %vm2835_vm0, %v2934_v52, %v2945_v42  ;;  %v9559_v18 = vpop.permute.xlu0 %3323 }
 0x20a   : > { %v2657_v37 = vrot.slane %v11266_v17, %v7033_v29  ;;  %v2956_v3 = vshrl.u32 %v9502_v45, 16  ;;  %v3542_v47 = vsel %vm3530_vm2, %v1907_v21, %v2986_v53  ;;  %v2959_v13 = vshll.u32 %v9502_v45, 16  ;;  %3005 = vrot.lane.b32.xlu1 %v2946_v51, %s6892_s21  ;;  %v11270_v21 = vld [vmem:[#allocation11_spill] sm:$0xff]  ;;  %v11275_v51 = vld [vmem:[#allocation108_spill] sm:$0xff] }
 0x20b   : > { %11263 = vst [vmem:[#allocation20_spill] sm:$0xff] %v9532_v43  ;;  %v2649_v0 = vcombine.low %v9532_v43, %v9477_v61  ;;  %v3459_v16 = vsel %vm2835_vm0, %v3447_v33, %v3458_v50  ;;  %3305 = vrot.lane.b32.xlu0 %v9461_v12, %s6892_s21  ;;  %v2953_v7 = vor.u32 %v2951_v48, %v2950_v27  ;;  %v11269_v62 = vshrl.u32 %v9212_v20, 16 }
 0x20c   : > { %v2658_v14 = vcombine.low %v9535_v8, %v2657_v37  ;;  %v3149_v33 = vshll.u32 %v11245_v63, 16  ;;  %v3596_v42 = vsel %vm3588_vm3, %v3542_v47, %v9301_v26  ;;  %v2958_v17 = vrot.slane %v2956_v3, 7  ;;  %v11271_v37 = vld [vmem:[#allocation23_spill] sm:$0xff]  ;;  %v11274_v63 = vld [vmem:[#allocation52_spill] sm:$0xff]  ;;  %v11276_v8 = vld [vmem:[#allocation105_spill] sm:$0xff] }
 0x20d   : > { %v9564_v52 = vrot.slane %v11269_v62, 7  ;;  %v1417_v1 = vcombine.low %v11271_v37, %v11270_v21  ;;  %v9575_v41 = vsel %vm2835_vm0, %v2942_v15, %v2953_v7  ;;  %v11272_v48 = vshll.u32 %v9212_v20, 16  ;;  %v11273_v62 = vld [vmem:[#allocation103_spill] sm:$0xff]  ;;  %v11277_v3 = vld [vmem:[#allocation113_spill] sm:$0xff]  ;;  %v9592_v7 = vpop.permute.xlu0 %3287 }
 0x20e   : > { %v9570_v50 = vpack.c.bf16 %v2658_v14, %v2649_v0  ;;  %v2659_v61 = vcombine.low %v11274_v63, %v11273_v62  ;;  %v2676_v43 = vcombine.low %v11276_v8, %v11275_v51  ;;  %v3151_v26 = vor.u32 %v3149_v33, %v9496_v6  ;;  %v2988_v0 = vpop.permute.xlu1 %2987  ;;  %v11278_v8 = vld [vmem:[#allocation79_spill] sm:$0xff]  ;;  %v11279_v33 = vld [vmem:[#allocation58_spill] sm:$0xff]  ;;  %3104 = vrot.lane.b32.xlu1 %v9502_v45, %s6894_s19 }
 0x20f   : > { %v3466_v53 = vor.u32 %v11272_v48, %v9564_v52  ;;  %v2961_v14 = vor.u32 %v2959_v13, %v2958_v17  ;;  %v2677_v47 = vcombine.low %v11277_v3, %v7036_v31  ;;  %v9589_v15 = vsel %vm3627_vm4, %v3596_v42, %v9409_v10  ;;  %3516 = vrot.lane.b32.xlu0 %v3451_v56, %s6894_s19 }
 0x210   : > { %v1908_v20 = vpack.c.bf16 %v1417_v1, %v1400_v55  ;;  %v11280_v37 = vcombine.low %v11278_v8, %v11279_v33  ;;  %v3144_v48 = vsel %vm2835_vm0, %v9313_v38, %v9487_v24  ;;  %v2964_v55 = vshrl.u32 %v9541_v28, 16 }
 0x211   : > { %v9595_v21 = vsel %vm2835_vm0, %v3455_v59, %v3466_v53  ;;  %v9607_v10 = vsel %vm2835_vm0, %v2950_v27, %v2961_v14  ;;  %v3677_v56 = vsel %vm3530_vm2, %v3144_v48, %v9201_v46  ;;  %v2967_v42 = vshll.u32 %v9541_v28, 16  ;;  %v3499_v63 = vpop.permute.xlu0 %3498 }
 0x212   : > { %v2674_v13 = vrot.slane %v11280_v37, %v7033_v29  ;;  %v3545_v59 = vsel %vm3530_vm2, %v1908_v20, %v2988_v0  ;;  %v3152_v1 = vsel %vm2835_vm0, %v9456_v60, %v3151_v26  ;;  %v9616_v53 = vpop.permute.xlu1 %3086  ;;  %v3886_v38 = vshll.u32 %v9589_v15, 16  ;;  %3066 = vrot.lane.b32.xlu1 %v9502_v45, %s6891_s20 }
 0x213   : > { %v2667_v24 = vrot.slane %v2659_v61, %v7033_v29  ;;  %v2684_v27 = vrot.slane %v2676_v43, %v7033_v29  ;;  %v3730_v46 = vsel %vm3588_vm3, %v3677_v56, %v9374_v2  ;;  %v3680_v62 = vsel %vm3530_vm2, %v3152_v1, %v9415_v36  ;;  %3518 = vrot.lane.b32.xlu0 %v3459_v16, %s6894_s19 }
 0x214   : > { %v9626_v51 = vrot.slane %v2964_v55, 7  ;;  %v2691_v60 = vrot.slane %v2677_v47, %v7033_v29  ;;  %v3890_v26 = vshrl.u32 %v9468_v40, 16  ;;  %v3598_v61 = vsel %vm3588_vm3, %v3545_v59, %v9452_v22 }
 0x215   : > { %v3767_v2 = vsel %vm3627_vm4, %v3730_v46, %v3499_v63  ;;  %v2675_v43 = vcombine.low %v2667_v24, %v2674_v13  ;;  %v3883_v36 = vshrl.u32 %v9405_v58, 16  ;;  %v3732_v16 = vsel %vm3588_vm3, %v3680_v62, %v9494_v44  ;;  %v3501_v44 = vpop.permute.xlu0 %3500  ;;  %v11284_v62 = vld [vmem:[#allocation34_spill] sm:$0xff] }
 0x216   : > { %v3893_v0 = vshll.u32 %v3767_v2, 16  ;;  %v2969_v14 = vor.u32 %v2967_v42, %v9626_v51  ;;  %v3892_v3 = vor.u32 %v3890_v26, %v9490_v35  ;;  %v9640_v40 = vpop.permute.xlu1 %3048  ;;  %v3888_v47 = vrot.slane %v3886_v38, 1  ;;  %3106 = vrot.lane.b32.xlu1 %v9541_v28, %s6894_s19  ;;  %v11285_v63 = vld [vmem:[#allocation114_spill] sm:$0xff] }
 0x217   : > { %v2692_v22 = vcombine.low %v2684_v27, %v2691_v60  ;;  %v11281_v20 = vshrl.u32 %v9256_v32, 16  ;;  %v9646_v8 = vsel %vm3627_vm4, %v3598_v61, %v9480_v9  ;;  %3343 = vrot.lane.b32.xlu0 %v9570_v50, %s6891_s20  ;;  %v3885_v33 = vor.u32 %v3883_v36, %v9473_v34  ;;  %v11283_v27 = vld [vmem:[#allocation116_spill] sm:$0xff]  ;;  %v11286_v61 = vld [vmem:[#allocation47_spill] sm:$0xff] }
 0x218   : > { %v3895_v58 = vrot.slane %v3893_v0, 1  ;;  %v2970_v35 = vsel %vm2835_vm0, %v2958_v17, %v2969_v14  ;;  %v3907_v37 = vshrl.u32 %v3767_v2, 16  ;;  %v9655_v13 = vsel %vm3627_vm4, %v3732_v16, %v3501_v44  ;;  %v11289_v0 = vld [vmem:[#allocation53_spill] sm:$0xff] }
 0x219   : > { %v3471_v45 = vrot.slane %v11281_v20, 7  ;;  %v9657_v48 = vpack.c.bf16 %v2692_v22, %v2675_v43  ;;  %v11282_v9 = vshll.u32 %v9256_v32, 16  ;;  %v3910_v59 = vshll.u32 %v9655_v13, 16  ;;  %v9673_v32 = vpop.permute.xlu0 %3327  ;;  %v11288_v43 = vld [vmem:[#allocation17_spill] sm:$0xff] }
 0x21a   : > { %v3896_v55 = vsel %vm3841_vm1, %v3892_v3, %v3895_v58  ;;  %v3909_v42 = vor.u32 %v3907_v37, %v3895_v58  ;;  %v9663_v34 = vpop.permute.xlu1 %3088  ;;  %v3889_v17 = vsel %vm3841_vm1, %v3885_v33, %v3888_v47  ;;  %v3903_v1 = vshll.u32 %v9646_v8, 16  ;;  %3007 = vrot.lane.b32.xlu1 %v9575_v41, %s6892_s21  ;;  %v11290_v14 = vld [vmem:[#allocation81_spill] sm:$0xff]  ;;  %v11291_v37 = vld [vmem:[#allocation12_spill] sm:$0xff] }
 0x21b   : > { %v3474_v56 = vor.u32 %v11282_v9, %v3471_v45  ;;  %4403 = vmatprep.mubr.bf16.mxu1 %v3896_v55  ;;  %v9669_v24 = vrot.slane %v3910_v59, 1  ;;  %3307 = vrot.lane.b32.xlu0 %v9570_v50, %s6892_s21  ;;  %v2500_v46 = vcombine.low %v11283_v27, %v9048_v25  ;;  %v2517_v60 = vcombine.low %v11285_v63, %v11284_v62  ;;  %v11292_v9 = vld [vmem:[#allocation29_spill] sm:$0xff] }
 0x21c   : > { %4404 = vmatmul.mubr.bf16.gmra.mrb[8].mxu1 %v3889_v17  ;;  %v3477_v26 = vshrl.u32 %v9367_v57, 16  ;;  %v3154_v2 = vshrl.u32 %v11286_v61, 16  ;;  %v1451_v3 = vcombine.low %v11290_v14, %v11289_v0  ;;  %v3900_v20 = vshrl.u32 %v9589_v15, 16 }
 0x21d   : > { %v3475_v38 = vsel %vm2835_vm0, %v9564_v52, %v3474_v56  ;;  %v11287_v52 = vld [vmem:[#allocation8_spill] sm:$0xff]  ;;  %v3913_v16 = vsel %vm3841_vm1, %v3909_v42, %v9669_v24  ;;  %v9689_v25 = vpack.c.bf16 %v2517_v60, %v2500_v46  ;;  %v9696_v41 = vrot.slane %v3903_v1, 1  ;;  %v9702_v33 = vpop.permute.xlu0 %3291 }
 0x21e   : > { %v2781_v36 = vcombine.low %v11288_v43, %v11287_v52  ;;  %v3479_v22 = vrot.slane %v3477_v26, 7  ;;  %4411 = vmatprep.mubr.bf16.mxu1 %v3913_v16  ;;  %v9694_v58 = vpop.permute.xlu1 %3050  ;;  %v1434_v56 = vcombine.low %v11292_v9, %v11291_v37  ;;  %v11293_v59 = vshll.u32 %v9367_v57, 16  ;;  %3009 = vrot.lane.b32.xlu1 %v9607_v10, %s6892_s21  ;;  %v11294_v10 = vld [vmem:[#allocation35_spill] sm:$0xff]  ;;  %v11296_v37 = vld [vmem:[#allocation60_spill] sm:$0xff]  ;;  %v11297_v9 = vld [vmem:[#allocation82_spill] sm:$0xff] }
 0x21f   : > { %3520 = vrot.lane.b32.xlu0 %v9595_v21, %s6894_s19  ;;  %v2972_v15 = vshrl.u32 %v9689_v25, 16  ;;  %v2975_v42 = vshll.u32 %v9689_v25, 16  ;;  %v3157_v17 = vshll.u32 %v11286_v61, 16  ;;  %v3902_v1 = vor.u32 %v3900_v20, %v3888_v47 }
 0x220   : > { %v9698_v44 = vpack.c.bf16 %v2781_v36, %v2781_v36  ;;  %v3482_v55 = vor.u32 %v11293_v59, %v3479_v22  ;;  %v3156_v46 = vrot.slane %v3154_v2, 7  ;;  %v1909_v62 = vpack.c.bf16 %v1451_v3, %v1434_v56  ;;  %v11298_v59 = vld [vmem:[#allocation49_spill] sm:$0xff] }
 0x221   : > { %v9716_v60 = vrot.slane %v2972_v15, 7  ;;  %v3906_v43 = vsel %vm3841_vm1, %v3902_v1, %v9696_v41  ;;  %v2596_v47 = vcombine.low %v11294_v10, %v8997_v5  ;;  %v2613_v36 = vcombine.low %v9038_v39, %v9177_v30  ;;  %v9731_v2 = vpop.permute.xlu0 %3325  ;;  %v11295_v30 = vld [vmem:[#allocation26_spill] sm:$0xff] }
 0x222   : > { %v3485_v21 = vshrl.u32 %v9698_v44, 16  ;;  %v3488_v27 = vshll.u32 %v9698_v44, 16  ;;  %v3483_v63 = vsel %vm2835_vm0, %v3471_v45, %v3482_v55  ;;  %v2990_v52 = vpop.permute.xlu1 %2989  ;;  %3011 = vrot.lane.b32.xlu1 %v2970_v35, %s6892_s21  ;;  %v3159_v39 = vor.u32 %v3157_v17, %v3156_v46  ;;  %v11299_v35 = vld [vmem:[#allocation83_spill] sm:$0xff] }
 0x223   : > { %3345 = vrot.lane.b32.xlu0 %v9657_v48, %s6891_s20  ;;  %v3548_v45 = vsel %vm3530_vm2, %v1909_v62, %v2990_v52  ;;  %v2977_v16 = vor.u32 %v2975_v42, %v9716_v60  ;;  %v3162_v14 = vshrl.u32 %v11295_v30, 16  ;;  %v9743_v20 = vpack.c.bf16 %v2613_v36, %v2596_v47  ;;  %v11300_v36 = vld [vmem:[#allocation95_spill] sm:$0xff] }
 0x224   : > { %v9722_v61 = vrot.slane %v3485_v21, 7  ;;  %4412 = vmatmul.mubr.bf16.gmra.mrb[12].mxu1 %v3906_v43  ;;  %v3600_v0 = vsel %vm3588_vm3, %v3548_v45, %v9512_v11  ;;  %v1468_v56 = vcombine.low %v11297_v9, %v11296_v37  ;;  %v1485_v55 = vcombine.low %v11299_v35, %v11298_v59 }
 0x225   : > { %v2978_v3 = vsel %vm2835_vm0, %v9626_v51, %v2977_v16  ;;  %v9752_v42 = vsel %vm3627_vm4, %v3600_v0, %v9616_v53  ;;  %v9755_v17 = vpop.permute.xlu0 %3289  ;;  %v3160_v51 = vsel %vm2835_vm0, %v9496_v6, %v3159_v39  ;;  %v9761_v1 = vrot.slane %v3162_v14, 7 }
 0x226   : > { %v3490_v5 = vor.u32 %v3488_v27, %v9722_v61  ;;  %v2992_v15 = vpop.permute.xlu1 %2991  ;;  %3068 = vrot.lane.b32.xlu1 %v9541_v28, %s6891_s20  ;;  %v3165_v62 = vshll.u32 %v11295_v30, 16  ;;  %v1910_v52 = vpack.c.bf16 %v1485_v55, %v1468_v56  ;;  %v3924_v47 = vshrl.u32 %v9655_v13, 16 }
 0x227   : > { %3522 = vrot.lane.b32.xlu0 %v3475_v38, %s6894_s19  ;;  %v3920_v38 = vshll.u32 %v9752_v42, 16  ;;  %v3170_v45 = vshrl.u32 %v11300_v36, 16  ;;  %v3917_v0 = vshrl.u32 %v9646_v8, 16  ;;  %v1866_v8 = vrot.slane %v7036_v31, %v7033_v29 }
 0x228   : > { %v3491_v11 = vsel %vm2835_vm0, %v3479_v22, %v3490_v5  ;;  %v3683_v22 = vsel %vm3530_vm2, %v3160_v51, %v9526_v4  ;;  %v3551_v6 = vsel %vm3530_vm2, %v1910_v52, %v2992_v15  ;;  %v3167_v4 = vor.u32 %v3165_v62, %v9761_v1  ;;  %v11302_v51 = vld [vmem:[#allocation30_spill] sm:$0xff]  ;;  %v11304_v52 = vld [vmem:[#allocation61_spill] sm:$0xff] }
 0x229   : > { %v3734_v43 = vsel %vm3588_vm3, %v3683_v22, %v9559_v18  ;;  %v3503_v28 = vpop.permute.xlu0 %3502  ;;  %v3926_v5 = vor.u32 %v3924_v47, %v9669_v24  ;;  %v3602_v39 = vsel %vm3588_vm3, %v3551_v6, %v9640_v40  ;;  %v3919_v13 = vor.u32 %v3917_v0, %v9696_v41  ;;  %v11303_v22 = vld [vmem:[#allocation54_spill] sm:$0xff] }
 0x22a   : > { %v9766_v53 = vpop.permute.xlu1 %3092  ;;  %3108 = vrot.lane.b32.xlu1 %v9689_v25, %s6894_s19  ;;  %v3771_v10 = vsel %vm3627_vm4, %v3734_v43, %v3503_v28  ;;  %v3168_v37 = vsel %vm2835_vm0, %v3156_v46, %v3167_v4  ;;  %v9796_v9 = vrot.slane %v3170_v45, 7  ;;  %v3173_v24 = vshll.u32 %v11300_v36, 16 }
 0x22b   : > { %3524 = vrot.lane.b32.xlu0 %v3483_v63, %s6894_s19  ;;  %v3927_v16 = vshll.u32 %v3771_v10, 16  ;;  %v9782_v63 = vrot.slane %v3920_v38, 1  ;;  %v9802_v56 = vsel %vm3627_vm4, %v3602_v39, %v9663_v34  ;;  %v3218_v31 = vshrl.u32 %v9307_v23, 16 }
 0x22c   : > { %v3226_v46 = vshrl.u32 %v9439_v49, 16  ;;  %v3686_v35 = vsel %vm3530_vm2, %v3168_v37, %v9592_v7  ;;  %v3229_v34 = vshll.u32 %v9439_v49, 16  ;;  %v9818_v15 = vpack.c.bf16 %v1866_v8, %v1866_v8 }
 0x22d   : > { %v3929_v30 = vrot.slane %v3927_v16, 1  ;;  %v9789_v14 = vpop.permute.xlu0 %3331  ;;  %v3923_v41 = vsel %vm3841_vm1, %v3919_v13, %v9782_v63  ;;  %v1519_v38 = vcombine.low %v11304_v52, %v11303_v22  ;;  %v3175_v7 = vor.u32 %v3173_v24, %v9796_v9 }
 0x22e   : > { %v9780_v18 = vpop.permute.xlu1 %3054  ;;  %3526 = vrot.lane.b32.xlu1 %v3491_v11, %s6894_s19  ;;  %v11301_v11 = vld [vmem:[#allocation50_spill] sm:$0xff]  ;;  %v3228_v43 = vrot.slane %v3226_v46, 7  ;;  %v3234_v28 = vshrl.u32 %v9461_v12, 16  ;;  %v3237_v6 = vshll.u32 %v9461_v12, 16  ;;  %v3934_v49 = vshrl.u32 %v9752_v42, 16 }
 0x22f   : > { %3309 = vrot.lane.b32.xlu0 %v9657_v48, %s6892_s21  ;;  %v3930_v40 = vsel %vm3841_vm1, %v3926_v5, %v3929_v30  ;;  %v1502_v62 = vcombine.low %v11302_v51, %v11301_v11  ;;  %v9833_v47 = vrot.slane %v3218_v31, 7  ;;  %v2577_v16 = vrot.slane %v8898_v54, %v7033_v29  ;;  %v11307_v31 = vld [vmem:[#allocation24_spill] sm:$0xff] }
 0x230   : > { %4419 = vmatprep.mubr.bf16.mxu1 %v3930_v40  ;;  %v3231_v36 = vor.u32 %v3229_v34, %v3228_v43  ;;  %v3236_v0 = vrot.slane %v3234_v28, 7  ;;  %v3242_v12 = vshrl.u32 %v9570_v50, 16  ;;  %v3245_v42 = vshll.u32 %v9570_v50, 16 }
 0x231   : > { %v9814_v55 = vpop.permute.xlu0 %3295  ;;  %4420 = vmatmul.mubr.bf16.gmra.mrb[16].mxu1 %v3923_v41  ;;  %v3941_v5 = vshrl.u32 %v3771_v10, 16  ;;  %v1911_v39 = vpack.c.bf16 %v1519_v38, %v1502_v62  ;;  %v11305_v10 = vld [vmem:[#allocation44_spill] sm:$0xff]  ;;  %v11306_v41 = vld [vmem:[#allocation42_spill] sm:$0xff]  ;;  %v3936_v22 = vor.u32 %v3934_v49, %v9782_v63  ;;  %v2579_v38 = vpack.c.bf16 %v2577_v16, %v2577_v16  ;;  %v11309_v16 = vld [vmem:[#allocation87_spill] sm:$0xff] }
 0x232   : > { %v9804_v59 = vpop.permute.xlu1 %3090  ;;  %3013 = vrot.lane.b32.xlu1 %v2978_v3, %s6892_s21  ;;  %v3736_v3 = vsel %vm3588_vm3, %v3686_v35, %v9731_v2  ;;  %v3239_v8 = vor.u32 %v3237_v6, %v3236_v0  ;;  %v3244_v37 = vrot.slane %v3242_v12, 7  ;;  %v1808_v40 = vcombine.low %v11305_v10, %v11244_v19  ;;  %v11310_v12 = vld [vmem:[#allocation98_spill] sm:$0xff] }
 0x233   : > { %3070 = vrot.lane.b32.xlu0 %v9689_v25, %s6891_s20  ;;  %v3937_v25 = vshll.u32 %v9802_v56, 16  ;;  %v3943_v24 = vor.u32 %v3941_v5, %v3929_v30  ;;  %v1825_v46 = vcombine.low %v11307_v31, %v11306_v41  ;;  %v3250_v35 = vshrl.u32 %v9657_v48, 16 }
 0x234   : > { %v9864_v62 = vsel %vm2835_vm0, %v3228_v43, %v3239_v8  ;;  %v3247_v30 = vor.u32 %v3245_v42, %v3244_v37  ;;  %v3176_v43 = vsel %vm2835_vm0, %v9761_v1, %v3175_v7  ;;  %v11308_v7 = vld [vmem:[#allocation20_spill] sm:$0xff]  ;;  %v11311_v42 = vld [vmem:[#allocation89_spill] sm:$0xff] }
 0x235   : > { %v3505_v45 = vpop.permute.xlu0 %3504  ;;  %v9851_v54 = vrot.slane %v3937_v25, 1  ;;  %v9871_v52 = vpack.c.bf16 %v1825_v46, %v1808_v40  ;;  %v9874_v25 = vpop.f32.mrb[32].mxu0  ;;  %v9887_v49 = vrot.slane %v3250_v35, 7  ;;  %v1859_v5 = vcombine.low %v11311_v42, %v11310_v12  ;;  %v11313_v40 = vld [vmem:[#allocation102_spill] sm:$0xff]  ;;  %v11314_v46 = vld [vmem:[#allocation91_spill] sm:$0xff]  ;;  %v11315_v35 = vld [vmem:[#allocation69_spill] sm:$0xff] }
 0x236   : > { %v9831_v4 = vpop.permute.xlu1 %3052  ;;  %3311 = vrot.lane.b32.xlu1 %v9818_v15, %s6892_s21  ;;  %v9844_v2 = vsel %vm3627_vm4, %v3736_v3, %v3505_v45  ;;  %v9877_v28 = vsel %vm2835_vm0, %v3236_v0, %v3247_v30  ;;  %v9885_v63 = vpop.f32.mrb[33].mxu0  ;;  %v3253_v3 = vshll.u32 %v9657_v48, 16  ;;  %v1842_v0 = vcombine.low %v11309_v16, %v11308_v7  ;;  %v11316_v30 = vld [vmem:[#allocation92_spill] sm:$0xff] }
 0x237   : > { %3110 = vrot.lane.b32.xlu0 %v9743_v20, %s6894_s19  ;;  %v9848_v20 = vsel %vm2835_vm0, %v9833_v47, %v3231_v36  ;;  %v3944_v13 = vshll.u32 %v9844_v2, 16  ;;  %v9895_v1 = vpop.f32.mrb[34].mxu0  ;;  %v3689_v48 = vsel %vm3530_vm2, %v3176_v43, %v9755_v17  ;;  %v3186_v41 = vshrl.u32 %v11313_v40, 16 }
 0x238   : > { %v9910_v8 = vpack.c.bf16 %v1859_v5, %v1842_v0  ;;  %v3738_v57 = vsel %vm3588_vm3, %v3689_v48, %v9673_v32  ;;  %v3958_v31 = vshrl.u32 %v9844_v2, 16  ;;  %v11318_v32 = vld [vmem:[#allocation38_spill] sm:$0xff]  ;;  %v3951_v43 = vshrl.u32 %v9802_v56, 16 }
 0x239   : > { %v3946_v34 = vrot.slane %v3944_v13, 1  ;;  %v9861_v51 = vpop.permute.xlu0 %3329  ;;  %v3255_v13 = vor.u32 %v3253_v3, %v9887_v49  ;;  %v9952_v2 = vrot.slane %v3186_v41, 7  ;;  %v3189_v0 = vshll.u32 %v11313_v40, 16 }
 0x23a   : > { %v2994_v50 = vpop.permute.xlu1 %2993  ;;  %3347 = vrot.lane.b32.xlu1 %v9818_v15, %s6891_s20 }
 0x23b   : > { %3015 = vrot.lane.b32.xlu0 %v9716_v60, %s6892_s21  ;;  %v3554_v11 = vsel %vm3530_vm2, %v1911_v39, %v2994_v50  ;;  %v3947_v60 = vsel %vm3841_vm1, %v3943_v24, %v3946_v34  ;;  %v4136_v39 = vrot.slane %v3488_v27, 1  ;;  %v11312_v24 = vld [vmem:[#allocation84_spill] sm:$0xff]  ;;  %v3960_v16 = vor.u32 %v3958_v31, %v3946_v34  ;;  %v11319_v31 = vld [vmem:[#allocation45_spill] sm:$0xff] }
 0x23c   : > { %v3604_v19 = vsel %vm3588_vm3, %v3554_v11, %v9694_v58  ;;  %4427 = vmatprep.mubr.bf16.mxu1 %v3947_v60  ;;  %v3940_v58 = vsel %vm3841_vm1, %v3936_v22, %v9851_v54  ;;  %v4135_v50 = vor.u32 %v11312_v24, %v3477_v26  ;;  %v1536_v11 = vcombine.low %v11315_v35, %v11314_v46  ;;  %v11321_v35 = vld [vmem:[#allocation86_spill] sm:$0xff] }
 0x23d   : > { %v9892_v36 = vsel %vm3627_vm4, %v3604_v19, %v9804_v59  ;;  %v3294_v45 = vpop.permute.xlu0 %3293  ;;  %4428 = vmatmul.mubr.bf16.gmra.mrb[20].mxu1 %v3940_v58  ;;  %v9907_v59 = vpop.f32.mrb[35].mxu0  ;;  %v9917_v10 = vor.u32 %v4136_v39, %v3485_v21  ;;  %v11317_v19 = vld [vmem:[#allocation25_spill] sm:$0xff]  ;;  %v3178_v60 = vshrl.u32 %v11318_v32, 16  ;;  %v3191_v40 = vor.u32 %v3189_v0, %v9952_v2 }
 0x23e   : > { %v9881_v6 = vpop.permute.xlu1 %2997  ;;  %3528 = vrot.lane.b32.xlu1 %v9722_v61, %s6894_s19  ;;  %v3954_v17 = vshll.u32 %v9892_v36, 16  ;;  %v9923_v61 = vsel %vm2835_vm0, %v3244_v37, %v3255_v13  ;;  %v9931_v44 = vsel %vm3841_vm1, %v4135_v50, %v4136_v39  ;;  %v1553_v22 = vcombine.low %v11317_v19, %v11316_v30 }
 0x23f   : > { %3072 = vrot.lane.b32.xlu0 %v2579_v38, %s6891_s20  ;;  %v9942_v38 = vpop.f32.mrb[36].mxu0  ;;  %v3953_v39 = vor.u32 %v3951_v43, %v9851_v54  ;;  %v3180_v24 = vrot.slane %v3178_v60, 7  ;;  %v3181_v50 = vshll.u32 %v11318_v32, 16 }
 0x240   : > { %v9948_v3 = vrot.slane %v3954_v17, 1  ;;  %v9950_v7 = vpop.f32.mrb[37].mxu0  ;;  %v1912_v13 = vpack.c.bf16 %v1553_v22, %v1536_v11  ;;  %v11322_v11 = vld [vmem:[#allocation59_spill] sm:$0xff] }
 0x241   : > { %v3507_v26 = vpop.permute.xlu0 %3506  ;;  %v9955_v5 = vpop.f32.mrb[38].mxu0  ;;  %v3183_v54 = vor.u32 %v3181_v50, %v3180_v24  ;;  %v1587_v30 = vcombine.low %v11322_v11, %v11321_v35  ;;  %v3192_v19 = vsel %vm2835_vm0, %v3180_v24, %v3191_v40  ;;  %v11324_v24 = vld [vmem:[#allocation37_spill] sm:$0xff] }
 0x242   : > { %v9919_v27 = vpop.permute.xlu1 %3094  ;;  %v9934_v21 = vsel %vm3627_vm4, %v3738_v57, %v3507_v26  ;;  %v9958_v48 = vpop.f32.mrb[39].mxu0  ;;  %v3957_v34 = vsel %vm3841_vm1, %v3953_v39, %v9948_v3  ;;  %v3695_v22 = vsel %vm3530_vm2, %v3192_v19, %v3294_v45  ;;  %v3968_v19 = vshrl.u32 %v9892_v36, 16 }
 0x243   : > { %3112 = vrot.lane.b32.xlu0 %v9818_v15, %s6894_s19  ;;  %v3961_v37 = vshll.u32 %v9934_v21, 16  ;;  %v3184_v43 = vsel %vm2835_vm0, %v9796_v9, %v3183_v54  ;;  %v3975_v35 = vshrl.u32 %v9934_v21, 16  ;;  %s6825_s19 = scalar_lea.vmem %s10550_s13, 4096 }
 0x244   : > { %v3692_v39 = vsel %vm3530_vm2, %v3184_v43, %v9702_v33  ;;  %v3970_v36 = vor.u32 %v3968_v19, %v9948_v3  ;;  %p6826_p11 = scmp.ne.s32.totalorder %s10550_s13, %s6825_s19  ;;  %p6833_p1 = scmp.lt.s32.totalorder %s6831_s17, %s6825_s19 }
 0x245   : > { %v3963_v12 = vrot.slane %v3961_v37, 1  ;;  %v3511_v42 = vpop.permute.xlu0 %3510  ;;  %v11320_v37 = vld [vmem:[#allocation68_spill] sm:$0xff] }
 0x246   : > { %v9946_v58 = vpop.permute.xlu1 %3056  ;;  %v1570_v46 = vcombine.low %v11320_v37, %v11319_v31  ;;  %p6827_p12 = pnand %p6826_p11, %p6976_p5  ;;  %p6834_p2 = por %p6833_p1, %p6832_p0 }
 0x247   : > { %v3964_v56 = vsel %vm3841_vm1, %v3960_v16, %v3963_v12  ;;  %v11323_v16 = vld [vmem:[#allocation57_spill] sm:$0xff] }
 0x248   : > { %4435 = vmatprep.mubr.bf16.mxu1 %v3964_v56  ;;  %v1913_v56 = vpack.c.bf16 %v1587_v30, %v1570_v46  ;;  %p6828_p13 = pneg %p6827_p12 }
 0x249   : > { %4436 = vmatmul.mubr.bf16.gmra.mrb[24].mxu1 %v3957_v34  ;;  %v9966_v57 = vpop.permute.xlu0 %3333  ;;  %v11327_v34 = vld [vmem:[#allocation18_spill] sm:$0xff] }
 0x24a   : > { %v2996_v17 = vpop.permute.xlu1 %2995  ;;  %p6835_p3 = pnand %p6834_p2, %p6828_p13 }
 0x24b   : > { %v3557_v41 = vsel %vm3530_vm2, %v1912_v13, %v2996_v17  ;;  %v3742_v13 = vsel %vm3588_vm3, %v3695_v22, %v9789_v14  ;;  %v11326_v17 = vld [vmem:[#allocation71_spill] sm:$0xff]  ;;  %v3197_v14 = vshll.u32 %v11323_v16, 16 }
 0x24c   : > { %v3606_v26 = vsel %vm3588_vm3, %v3557_v41, %v9831_v4  ;;  %v3194_v4 = vshrl.u32 %v11323_v16, 16  ;;  %v9988_v45 = vsel %vm3627_vm4, %v3742_v13, %v3511_v42  ;;  %v1621_v40 = vcombine.low %v11327_v34, %v11326_v17 }
 0x24d   : > { %v3645_v32 = vsel %vm3627_vm4, %v3606_v26, %v9766_v53  ;;  %v9978_v60 = vpop.permute.xlu0 %3297  ;;  %v11325_v53 = vld [vmem:[#allocation88_spill] sm:$0xff]  ;;  %v3740_v41 = vsel %vm3588_vm3, %v3692_v39, %v9861_v51  ;;  %v9996_v26 = vpop.f32.mrb[40].mxu0  ;;  %v3560_v42 = vsel %vm3530_vm2, %v1913_v56, %v9881_v6  ;;  %v3995_v51 = vshll.u32 %v9988_v45, 16 }
 0x24e   : > { %v3097_v0 = vpop.permute.xlu1 %3096  ;;  %v1604_v50 = vcombine.low %v11325_v53, %v11324_v24  ;;  %v3971_v9 = vshll.u32 %v3645_v32, 16  ;;  %v9998_v33 = vrot.slane %v3194_v4, 7  ;;  %v10006_v46 = vpop.f32.mrb[41].mxu0  ;;  %v3608_v6 = vsel %vm3588_vm3, %v3560_v42, %v9780_v18  ;;  %v11328_v42 = vld [vmem:[#allocation115_spill] sm:$0xff] }
 0x24f   : > { %v10010_v30 = vpop.f32.mrb[42].mxu0  ;;  %v3977_v4 = vor.u32 %v3975_v35, %v3963_v12  ;;  %v3647_v24 = vsel %vm3627_vm4, %v3608_v6, %v9919_v27  ;;  %v11329_v6 = vld [vmem:[#allocation85_spill] sm:$0xff] }
 0x250   : > { %v1914_v22 = vpack.c.bf16 %v1621_v40, %v1604_v50  ;;  %v10013_v43 = vpop.f32.mrb[43].mxu0  ;;  %v3973_v16 = vrot.slane %v3971_v9, 1  ;;  %v3199_v21 = vor.u32 %v3197_v14, %v9998_v33  ;;  %v3997_v50 = vrot.slane %v3995_v51, 1 }
 0x251   : > { %v3509_v54 = vpop.permute.xlu0 %3508 }
 0x252   : > { %v10003_v31 = vpop.permute.xlu1 %3058  ;;  %v3777_v37 = vsel %vm3627_vm4, %v3740_v41, %v3509_v54  ;;  %v3974_v18 = vsel %vm3841_vm1, %v3970_v36, %v3973_v16  ;;  %v3988_v41 = vshll.u32 %v3647_v24, 16  ;;  %v3985_v54 = vshrl.u32 %v3645_v32, 16 }
 0x253   : > { %v3978_v11 = vshll.u32 %v3777_v37, 16  ;;  %v3992_v56 = vshrl.u32 %v3777_v37, 16  ;;  %v3200_v14 = vsel %vm2835_vm0, %v9952_v2, %v3199_v21  ;;  %v3202_v37 = vshrl.u32 %v11328_v42, 16  ;;  %v11331_v2 = vld [vmem:[#allocation39_spill] sm:$0xff] }
 0x254   : > { %v3698_v51 = vsel %vm3530_vm2, %v3200_v14, %v9814_v55  ;;  %v3990_v36 = vrot.slane %v3988_v41, 1 }
 0x255   : > { %v3980_v39 = vrot.slane %v3978_v11, 1  ;;  %v10034_v35 = vpop.f32.mrb[44].mxu0  ;;  %v3987_v11 = vor.u32 %v3985_v54, %v3973_v16  ;;  %v3744_v32 = vsel %vm3588_vm3, %v3698_v51, %v9966_v57  ;;  %v4009_v57 = vshrl.u32 %v9988_v45, 16 }
 0x256   : > { %v10017_v13 = vpop.permute.xlu0 %3335  ;;  %v3000_v53 = vpop.permute.xlu1 %2999 }
 0x257   : > { %v3994_v17 = vor.u32 %v3992_v56, %v3980_v39  ;;  %v3563_v34 = vsel %vm3530_vm2, %v1914_v22, %v3000_v53  ;;  %v3981_v40 = vsel %vm3841_vm1, %v3977_v4, %v3980_v39  ;;  %v10038_v19 = vpop.f32.mrb[45].mxu0  ;;  %v11330_v4 = vld [vmem:[#allocation67_spill] sm:$0xff]  ;;  %v11332_v56 = vld [vmem:[#allocation78_spill] sm:$0xff]  ;;  %v4011_v54 = vor.u32 %v4009_v57, %v3997_v50 }
 0x258   : > { %4443 = vmatprep.mubr.bf16.mxu1 %v3981_v40  ;;  %v3610_v27 = vsel %vm3588_vm3, %v3563_v34, %v9946_v58  ;;  %v1638_v39 = vcombine.low %v11330_v4, %v11329_v6  ;;  %v1655_v21 = vcombine.low %v11332_v56, %v11331_v2  ;;  %v10047_v53 = vpop.f32.mrb[46].mxu0  ;;  %v10055_v34 = vrot.slane %v3202_v37, 7 }
 0x259   : > { %4444 = vmatmul.mubr.bf16.gmra.mrb[28].mxu1 %v3974_v18  ;;  %v3998_v9 = vsel %vm3841_vm1, %v3994_v17, %v3997_v50  ;;  %v3649_v58 = vsel %vm3627_vm4, %v3610_v27, %v3097_v0  ;;  %v10052_v16 = vpop.f32.mrb[47].mxu0  ;;  %v3205_v0 = vshll.u32 %v11328_v42, 16  ;;  %v3991_v18 = vsel %vm3841_vm1, %v3987_v11, %v3990_v36 }
 0x25a   : > { %v10026_v12 = vpop.permute.xlu0 %3299  ;;  %v3099_v3 = vpop.permute.xlu1 %3098  ;;  %4451 = vmatprep.mubr.bf16.mxu1 %v3998_v9  ;;  %v4005_v9 = vshll.u32 %v3649_v58, 16  ;;  %v1915_v14 = vpack.c.bf16 %v1655_v21, %v1638_v39  ;;  %v4002_v37 = vshrl.u32 %v3647_v24, 16 }
 0x25c   : > { %v4007_v11 = vrot.slane %v4005_v9, 1  ;;  %v4004_v4 = vor.u32 %v4002_v37, %v3990_v36 }
 0x25e   : > { %v3513_v22 = vpop.permute.xlu0 %3512  ;;  %v4008_v24 = vsel %vm3841_vm1, %v4004_v4, %v4007_v11 }
 0x25f   : > { %v10049_v17 = vpop.permute.xlu1 %3060  ;;  %v3781_v55 = vsel %vm3627_vm4, %v3744_v32, %v3513_v22  ;;  %v3207_v32 = vor.u32 %v3205_v0, %v10055_v34 }
 0x260   : > { %v4012_v40 = vshll.u32 %v3781_v55, 16  ;;  %v4026_v36 = vshrl.u32 %v3781_v55, 16  ;;  %v11335_v55 = vld [vmem:[#allocation97_spill] sm:$0xff] }
 0x261   : > { %4452 = vmatmul.mubr.bf16.gmra.mrb[32].mxu1 %v3991_v18  ;;  %v3208_v2 = vsel %vm2835_vm0, %v9998_v33, %v3207_v32  ;;  %v4019_v18 = vshrl.u32 %v3649_v58, 16  ;;  %v11333_v32 = vld [vmem:[#allocation55_spill] sm:$0xff]  ;;  %v11336_v58 = vld [vmem:[#allocation32_spill] sm:$0xff] }
 0x262   : > { %v4014_v27 = vrot.slane %v4012_v40, 1  ;;  %v3701_v56 = vsel %vm3530_vm2, %v3208_v2, %v9978_v60  ;;  %v11337_v2 = vld [vmem:[#allocation15_spill] sm:$0xff] }
 0x263   : > { %v3002_v51 = vpop.permute.xlu1 %3001 }
 0x264   : > { %v3566_v22 = vsel %vm3530_vm2, %v1915_v14, %v3002_v51  ;;  %v4015_v45 = vsel %vm3841_vm1, %v4011_v54, %v4014_v27  ;;  %v4028_v33 = vor.u32 %v4026_v36, %v4014_v27  ;;  %v4021_v51 = vor.u32 %v4019_v18, %v4007_v11  ;;  %v11339_v36 = vld [vmem:[#allocation70_spill] sm:$0xff]  ;;  %v11340_v18 = vld [vmem:[#allocation33_spill] sm:$0xff] }
 0x265   : > { %v10059_v41 = vpop.permute.xlu0 %3337  ;;  %v3612_v42 = vsel %vm3588_vm3, %v3566_v22, %v10003_v31  ;;  %4459 = vmatprep.mubr.bf16.mxu1 %v4015_v45  ;;  %v3746_v31 = vsel %vm3588_vm3, %v3701_v56, %v10017_v13  ;;  %v3210_v22 = vshrl.u32 %v11333_v32, 16  ;;  %v1689_v27 = vcombine.low %v11337_v2, %v11336_v58 }
 0x266   : > { %v10067_v50 = vsel %vm3627_vm4, %v3612_v42, %v3099_v3  ;;  %v11334_v42 = vld [vmem:[#allocation106_spill] sm:$0xff]  ;;  %v3213_v11 = vshll.u32 %v11333_v32, 16 }
 0x267   : > { %v4022_v21 = vshll.u32 %v10067_v50, 16  ;;  %v1672_v4 = vcombine.low %v11335_v55, %v11334_v42  ;;  %v3221_v42 = vshll.u32 %v9307_v23, 16 }
 0x268   : > { %v3101_v39 = vpop.permute.xlu1 %3100 }
 0x269   : > { %v10069_v6 = vpop.permute.xlu0 %3301  ;;  %4460 = vmatmul.mubr.bf16.gmra.mrb[36].mxu1 %v4008_v24  ;;  %v4024_v9 = vrot.slane %v4022_v21, 1  ;;  %v3212_v24 = vrot.slane %v3210_v22, 7  ;;  %v1916_v21 = vpack.c.bf16 %v1689_v27, %v1672_v4 }
 0x26b   : > { %v4025_v13 = vsel %vm3841_vm1, %v4021_v51, %v4024_v9 }
 0x26c   : > { %v3063_v3 = vpop.permute.xlu1 %3062 }
 0x26d   : > { %v3515_v57 = vpop.permute.xlu0 %3514 }
 0x26e   : > { %v3783_v0 = vsel %vm3627_vm4, %v3746_v31, %v3515_v57  ;;  %v11338_v57 = vld [vmem:[#allocation80_spill] sm:$0xff] }
 0x26f   : > { %v4029_v40 = vshll.u32 %v3783_v0, 16 }
 0x270   : > { %v3103_v60 = vpop.permute.xlu1 %3102 }
 0x271   : > { %v4031_v54 = vrot.slane %v4029_v40, 1  ;;  %v3340_v14 = vpop.permute.xlu0 %3339  ;;  %v1706_v40 = vcombine.low %v11339_v36, %v11338_v57  ;;  %v3223_v57 = vor.u32 %v3221_v42, %v9833_v47  ;;  %v4036_v42 = vshrl.u32 %v10067_v50, 16  ;;  %v6788_v50 = vld [vmem:[%s10603_s5 + $0x8] sm:$0xff]  }
 0x273   : > { %v4032_v45 = vsel %vm3841_vm1, %v4028_v33, %v4031_v54  ;;  %v11341_v33 = vld [vmem:[#allocation94_spill] sm:$0xff] }
 0x274   : > { %4467 = vmatprep.mubr.bf16.mxu1 %v4032_v45  ;;  %v10089_v56 = vpop.permute.xlu1 %3064  ;;  %v1723_v51 = vcombine.low %v11341_v33, %v11340_v18 }
 0x275   : > { %v10083_v37 = vpop.permute.xlu0 %3303  ;;  %4468 = vmatmul.mubr.bf16.gmra.mrb[40].mxu1 %v4025_v13  ;;  %v3215_v13 = vor.u32 %v3213_v11, %v3212_v24 }
 0x276   : > { %v1917_v4 = vpack.c.bf16 %v1723_v51, %v1706_v40 }
 0x277   : > { %v3216_v27 = vsel %vm2835_vm0, %v10055_v34, %v3215_v13  ;;  %v10109_v36 = vpop.f32.mrb[48].mxu0  ;;  %v4043_v13 = vshrl.u32 %v3783_v0, 16 }
 0x278   : > { %v3004_v45 = vpop.permute.xlu1 %3003  ;;  %v3704_v23 = vsel %vm3530_vm2, %v3216_v27, %v10026_v12 }
 0x279   : > { %v10092_v31 = vpop.permute.xlu0 %3341  ;;  %v3569_v55 = vsel %vm3530_vm2, %v1916_v21, %v3004_v45  ;;  %v3224_v45 = vsel %vm2835_vm0, %v3212_v24, %v3223_v57  ;;  %v4038_v57 = vor.u32 %v4036_v42, %v4024_v9  ;;  %v11343_v9 = vld [vmem:[#allocation93_spill] sm:$0xff] }
 0x27a   : > { %v3614_v22 = vsel %vm3588_vm3, %v3569_v55, %v10049_v17  ;;  %v10113_v17 = vpop.f32.mrb[49].mxu0  ;;  %v3707_v55 = vsel %vm3530_vm2, %v3224_v45, %v10069_v6 }
 0x27b   : > { %v3653_v32 = vsel %vm3627_vm4, %v3614_v22, %v3101_v39  ;;  %v3748_v39 = vsel %vm3588_vm3, %v3704_v23, %v10059_v41  ;;  %v10117_v18 = vpop.f32.mrb[50].mxu0  ;;  %v6787_v22 = vld [vmem:[%s10603_s5] sm:$0xff]  }
 0x27c   : > { %v3006_v2 = vpop.permute.xlu1 %3005  ;;  %v4039_v21 = vshll.u32 %v3653_v32, 16  ;;  %11342 = vst [vmem:[#allocation66_spill] sm:$0xff] %v10117_v18  ;;  %v10121_v51 = vpop.f32.mrb[51].mxu0  ;;  %6658 = vmatprep.subr.bf16.mxu0 %v6787_v22 }
 0x27d   : > { %v10103_v58 = vpop.permute.xlu0 %3305  ;;  %v3572_v11 = vsel %vm3530_vm2, %v1917_v4, %v3006_v2  ;;  %v3750_v4 = vsel %vm3588_vm3, %v3707_v55, %v3340_v14  ;;  %6659 = vmatpush3.bf16.msra.mxu0 %v6787_v22  ;;  %v4053_v22 = vshrl.u32 %v3653_v32, 16 }
 0x27e   : > { %v3616_v34 = vsel %vm3588_vm3, %v3572_v11, %v3063_v3  ;;  %v4041_v41 = vrot.slane %v4039_v21, 1  ;;  %v4045_v3 = vor.u32 %v4043_v13, %v4031_v54  ;;  %6660 = vmatprep.subr.bf16.mxu0 %v6788_v50  ;;  %v11345_v13 = vld [vmem:[#allocation48_spill] sm:$0xff] }
 0x27f   : > { %v3655_v2 = vsel %vm3627_vm4, %v3616_v34, %v3103_v60  ;;  %v11344_v34 = vld [vmem:[#allocation56_spill] sm:$0xff] }
 0x280   : > { %v3105_v33 = vpop.permute.xlu1 %3104  ;;  %v4042_v54 = vsel %vm3841_vm1, %v4038_v57, %v4041_v41  ;;  %v4056_v14 = vshll.u32 %v3655_v2, 16  ;;  %v1740_v45 = vcombine.low %v11344_v34, %v11343_v9  ;;  %v11347_v57 = vld [vmem:[#allocation76_spill] sm:$0xff]  ;;  %v4055_v9 = vor.u32 %v4053_v22, %v4041_v41 }
 0x281   : > { %v3517_v40 = vpop.permute.xlu0 %3516  ;;  %6661 = vmatpush3.bf16.msra.mxu0 %v6788_v50  ;;  %v4070_v22 = vshrl.u32 %v3655_v2, 16 }
 0x282   : > { %v3785_v47 = vsel %vm3627_vm4, %v3748_v39, %v3517_v40 }
 0x283   : > { %v4046_v12 = vshll.u32 %v3785_v47, 16  ;;  %v4060_v6 = vshrl.u32 %v3785_v47, 16 }
 0x284   : > { %v3067_v24 = vpop.permute.xlu1 %3066 }
 0x285   : > { %v4048_v27 = vrot.slane %v4046_v12, 1  ;;  %v3519_v11 = vpop.permute.xlu0 %3518  ;;  %v11346_v12 = vld [vmem:[#allocation41_spill] sm:$0xff] }
 0x286   : > { %v3787_v0 = vsel %vm3627_vm4, %v3750_v4, %v3519_v11  ;;  %v1757_v42 = vcombine.low %v11346_v12, %v11345_v13 }
 0x287   : > { %v4063_v23 = vshll.u32 %v3787_v0, 16  ;;  %v4049_v21 = vsel %vm3841_vm1, %v4045_v3, %v4048_v27  ;;  %v4062_v60 = vor.u32 %v4060_v6, %v4048_v27  ;;  %v4058_v3 = vrot.slane %v4056_v14, 1  ;;  %v11348_v27 = vld [vmem:[#allocation16_spill] sm:$0xff] }
 0x288   : > { %4475 = vmatprep.mubr.bf16.mxu1 %v4049_v21  ;;  %v3107_v47 = vpop.permute.xlu1 %3106  ;;  %v1918_v4 = vpack.c.bf16 %v1757_v42, %v1740_v45  ;;  %v1774_v6 = vcombine.low %v11348_v27, %v11347_v57  ;;  %v11350_v21 = vld [vmem:[#allocation7_spill] sm:$0xff] }
 0x289   : > { %v4065_v39 = vrot.slane %v4063_v23, 1  ;;  %v3344_v40 = vpop.permute.xlu0 %3343  ;;  %4476 = vmatmul.mubr.bf16.gmra.mrb[44].mxu1 %v4042_v54  ;;  %v11349_v23 = vld [vmem:[#allocation28_spill] sm:$0xff]  ;;  %v4059_v50 = vsel %vm3841_vm1, %v4055_v9, %v4058_v3 }
 0x28a   : > { %v1791_v54 = vcombine.low %v11350_v21, %v11349_v23  ;;  %v4072_v23 = vor.u32 %v4070_v22, %v4058_v3 }
 0x28b   : > { %v4066_v55 = vsel %vm3841_vm1, %v4062_v60, %v4065_v39  ;;  %v3710_v60 = vsel %vm3530_vm2, %v9848_v20, %v10083_v37 }
 0x28c   : > { %4483 = vmatprep.mubr.bf16.mxu1 %v4066_v55  ;;  %v3008_v18 = vpop.permute.xlu1 %3007  ;;  %v3752_v14 = vsel %vm3588_vm3, %v3710_v60, %v10092_v31  ;;  %v1919_v13 = vpack.c.bf16 %v1791_v54, %v1774_v6  ;;  %v4077_v55 = vshrl.u32 %v3787_v0, 16  ;;  %v3713_v0 = vsel %vm3530_vm2, %v9864_v62, %v10103_v58 }
 0x28d   : > { %v3308_v11 = vpop.permute.xlu0 %3307  ;;  %v3575_v34 = vsel %vm3530_vm2, %v1918_v4, %v3008_v18  ;;  %v3754_v2 = vsel %vm3588_vm3, %v3713_v0, %v3344_v40 }
 0x28e   : > { %v3618_v32 = vsel %vm3588_vm3, %v3575_v34, %v10089_v56  ;;  %v4079_v57 = vor.u32 %v4077_v55, %v4065_v39  ;;  %v3716_v3 = vsel %vm3530_vm2, %v9877_v28, %v3308_v11 }
 0x28f   : > { %v3657_v45 = vsel %vm3627_vm4, %v3618_v32, %v3105_v33 }
 0x290   : > { %v3010_v41 = vpop.permute.xlu1 %3009  ;;  %v4073_v42 = vshll.u32 %v3657_v45, 16  ;;  %v4087_v60 = vshrl.u32 %v3657_v45, 16 }
 0x291   : > { %v3521_v12 = vpop.permute.xlu0 %3520  ;;  %4484 = vmatmul.mubr.bf16.gmra.mrb[48].mxu1 %v4059_v50  ;;  %v3578_v20 = vsel %vm3530_vm2, %v1919_v13, %v3010_v41 }
 0x292   : > { %v3789_v18 = vsel %vm3627_vm4, %v3752_v14, %v3521_v12  ;;  %v3620_v56 = vsel %vm3588_vm3, %v3578_v20, %v3067_v24  ;;  %v4075_v4 = vrot.slane %v4073_v42, 1 }
 0x293   : > { %v4080_v37 = vshll.u32 %v3789_v18, 16  ;;  %v3659_v33 = vsel %vm3627_vm4, %v3620_v56, %v3107_v47  ;;  %v4094_v32 = vshrl.u32 %v3789_v18, 16 }
 0x294   : > { %v3012_v6 = vpop.permute.xlu1 %3011  ;;  %v4076_v54 = vsel %vm3841_vm1, %v4072_v23, %v4075_v4  ;;  %v4090_v39 = vshll.u32 %v3659_v33, 16  ;;  %v4089_v28 = vor.u32 %v4087_v60, %v4075_v4  ;;  %v4104_v11 = vshrl.u32 %v3659_v33, 16 }
 0x295   : > { %v4082_v27 = vrot.slane %v4080_v37, 1  ;;  %v3346_v31 = vpop.permute.xlu0 %3345  ;;  %v3581_v62 = vsel %vm3530_vm2, %v9871_v52, %v3012_v6 }
 0x296   : > { %v3756_v58 = vsel %vm3588_vm3, %v3716_v3, %v3346_v31  ;;  %v4092_v40 = vrot.slane %v4090_v39, 1 }
 0x297   : > { %v4083_v21 = vsel %vm3841_vm1, %v4079_v57, %v4082_v27  ;;  %v4096_v13 = vor.u32 %v4094_v32, %v4082_v27 }
 0x298   : > { %4491 = vmatprep.mubr.bf16.mxu1 %v4083_v21  ;;  %v3069_v9 = vpop.permute.xlu1 %3068  ;;  %v4093_v57 = vsel %vm3841_vm1, %v4089_v28, %v4092_v40  ;;  %v4106_v23 = vor.u32 %v4104_v11, %v4092_v40  ;;  %v11351_v21 = vld [vmem:[#allocation6_spill] sm:$0xff] }
 0x299   : > { %v3523_v24 = vpop.permute.xlu0 %3522  ;;  %4492 = vmatmul.mubr.bf16.gmra.mrb[52].mxu1 %v4076_v54  ;;  %v3622_v12 = vsel %vm3588_vm3, %v3581_v62, %v3069_v9 }
 0x29a   : > { %v3791_v34 = vsel %vm3627_vm4, %v3754_v2, %v3523_v24 }
 0x29b   : > { %v4097_v47 = vshll.u32 %v3791_v34, 16  ;;  %v4111_v55 = vshrl.u32 %v3791_v34, 16 }
 0x29c   : > { %v3109_v41 = vpop.permute.xlu1 %3108 }
 0x29d   : > { %v4099_v50 = vrot.slane %v4097_v47, 1  ;;  %v3525_v14 = vpop.permute.xlu0 %3524  ;;  %v3661_v45 = vsel %vm3627_vm4, %v3622_v12, %v3109_v41 }
 0x29e   : > { %v3793_v42 = vsel %vm3627_vm4, %v3756_v58, %v3525_v14  ;;  %v4107_v18 = vshll.u32 %v3661_v45, 16  ;;  %v4121_v12 = vshrl.u32 %v3661_v45, 16 }
 0x29f   : > { %v4114_v20 = vshll.u32 %v3793_v42, 16  ;;  %v4100_v52 = vsel %vm3841_vm1, %v4096_v13, %v4099_v50  ;;  %v4113_v37 = vor.u32 %v4111_v55, %v4099_v50  ;;  %v4128_v2 = vshrl.u32 %v3793_v42, 16 }
 0x2a0   : > { %4499 = vmatprep.mubr.bf16.mxu1 %v4100_v52  ;;  %v4109_v27 = vrot.slane %v4107_v18, 1  ;;  %v3527_v31 = vpop.permute.xlu1 %3526  ;;  %v10185_v9 = vpop.f32.mrb[52].mxu0 }
 0x2a1   : > { %v4116_v22 = vrot.slane %v4114_v20, 1  ;;  %v3310_v56 = vpop.permute.xlu0 %3309  ;;  %4500 = vmatmul.mubr.bf16.gmra.mrb[56].mxu1 %v4093_v57  ;;  %v10187_v47 = vpop.f32.mrb[53].mxu0 }
 0x2a2   : > { %v3719_v6 = vsel %vm3530_vm2, %v9923_v61, %v3310_v56  ;;  %v4110_v54 = vsel %vm3841_vm1, %v4106_v23, %v4109_v27  ;;  %v10191_v32 = vpop.f32.mrb[54].mxu0  ;;  %v4123_v42 = vor.u32 %v4121_v12, %v4109_v27 }
 0x2a3   : > { %v3757_v4 = vsel %vm3588_vm3, %v3719_v6, %v11351_v21  ;;  %v4117_v33 = vsel %vm3841_vm1, %v4113_v37, %v4116_v22  ;;  %v4130_v61 = vor.u32 %v4128_v2, %v4116_v22  ;;  %v10193_v62 = vpop.f32.mrb[55].mxu0 }
 0x2a4   : > { %v3795_v0 = vsel %vm3627_vm4, %v3757_v4, %v3527_v31  ;;  %4507 = vmatprep.mubr.bf16.mxu1 %v4117_v33  ;;  %v3014_v34 = vpop.permute.xlu1 %3013 }
 0x2a5   : > { %v3071_v24 = vpop.permute.xlu0 %3070  ;;  %v4131_v39 = vshll.u32 %v3795_v0, 16  ;;  %v3584_v60 = vsel %vm3530_vm2, %v9910_v8, %v3014_v34  ;;  %v4145_v56 = vshrl.u32 %v3795_v0, 16  ;;  %v4153_v0 = vshll.u32 %v9818_v15, 16 }
 0x2a6   : > { %v3624_v58 = vsel %vm3588_vm3, %v3584_v60, %v3071_v24 }
 0x2a7   : > { %v4133_v3 = vrot.slane %v4131_v39, 1  ;;  %v4155_v39 = vrot.slane %v4153_v0, 1 }
 0x2a8   : > { %v3312_v40 = vpop.permute.xlu1 %3311 }
 0x2a9   : > { %v3111_v50 = vpop.permute.xlu0 %3110  ;;  %v4134_v14 = vsel %vm3841_vm1, %v4130_v61, %v4133_v3  ;;  %4508 = vmatmul.mubr.bf16.gmra.mrb[60].mxu1 %v4110_v54  ;;  %v3722_v11 = vsel %vm3530_vm2, %v9887_v49, %v3312_v40  ;;  %v4147_v21 = vor.u32 %v4145_v56, %v4133_v3  ;;  %v4156_v60 = vsel %vm3841_vm1, %v9917_v10, %v4155_v39 }
 0x2aa   : > { %v3663_v13 = vsel %vm3627_vm4, %v3624_v58, %v3111_v50  ;;  %4515 = vmatprep.mubr.bf16.mxu1 %v4134_v14 }
 0x2ab   : > { %v4124_v41 = vshll.u32 %v3663_v13, 16  ;;  %v4138_v49 = vshrl.u32 %v3663_v13, 16 }
 0x2ac   : > { %v3348_v20 = vpop.permute.xlu1 %3347 }
 0x2ad   : > { %v4126_v55 = vrot.slane %v4124_v41, 1  ;;  %v3016_v8 = vpop.permute.xlu0 %3015  ;;  %v3759_v52 = vsel %vm3588_vm3, %v3722_v11, %v3348_v20 }
 0x2ae   : > { %v3587_v45 = vsel %vm3530_vm2, %v9818_v15, %v3016_v8  ;;  %v10226_v15 = vld [vmem:[%s10602_s4] ss:$0 sm:$0xff] }
 0x2af   : > { %v4127_v28 = vsel %vm3841_vm1, %v4123_v42, %v4126_v55  ;;  %v4140_v54 = vor.u32 %v4138_v49, %v4126_v55 }
 0x2b0   : > { %v3529_v37 = vpop.permute.xlu1 %3528 }
 0x2b1   : > { %v3073_v18 = vpop.permute.xlu0 %3072  ;;  %4516 = vmatmul.mubr.bf16.gmra.mrb[64].mxu1 %v4127_v28  ;;  %v3797_v22 = vsel %vm3627_vm4, %v3759_v52, %v3529_v37 }
 0x2b2   : > { %v4148_v57 = vshll.u32 %v3797_v22, 16  ;;  %v3626_v27 = vsel %vm3588_vm3, %v3587_v45, %v3073_v18 }
 0x2b4   : > { %v4150_v6 = vrot.slane %v4148_v57, 1 }
 0x2b5   : > { %v3113_v31 = vpop.permute.xlu0 %3112 }
 0x2b6   : > { %v3665_v23 = vsel %vm3627_vm4, %v3626_v27, %v3113_v31  ;;  %v4151_v33 = vsel %vm3841_vm1, %v4147_v21, %v4150_v6 }
 0x2b7   : > { %v4141_v4 = vshll.u32 %v3665_v23, 16  ;;  %4523 = vmatprep.mubr.bf16.mxu1 %v4151_v33 }
 0x2b9   : > { %v4143_v2 = vrot.slane %v4141_v4, 1 }
 0x2bb   : > { %v4144_v24 = vsel %vm3841_vm1, %v4140_v54, %v4143_v2 }
 0x2bc   : > { %4524 = vmatmul.mubr.bf16.gmra.mrb[68].mxu1 %v4144_v24 }
 0x2bd   : > { %6654 = vmatprep.mubr.msk.bf16.mxu1 %vm3530_vm2, %v9931_v44  ;;  %v10212_v34 = vpop.f32.mrb[56].mxu0 }
 0x2be   : > { %v10214_v61 = vpop.f32.mrb[57].mxu0 }
 0x2bf   : > { %v10218_v3 = vpop.f32.mrb[58].mxu0 }
 0x2c0   : > { %v10220_v58 = vpop.f32.mrb[59].mxu0 }
 0x2c4   : > { %6655 = vmatmul.mubr.msk.bf16.vlgmr.msra.gmra.mrb[72].mxu1 %vm3530_vm2, %v4156_v60 }
 0x2c8   : > { %v4389_v44 = vpop.f32.mrb[0].mxu1 }
 0x2c9   : > { %v4390_v50 = vadd.f32 %v10226_v15, %v4389_v44  ;;  %v4391_v14 = vpop.f32.mrb[1].mxu1 }
 0x2ca   : > { %v4392_v40 = vpop.f32.mrb[2].mxu1 }
 0x2cb   : > { %v4567_v13 = vadd.f32 %v9885_v63, %v4390_v50  ;;  %v4393_v10 = vadd.f32 %v10226_v15, %v4392_v40  ;;  %v4394_v12 = vpop.f32.mrb[3].mxu1 }
 0x2cd   : > { %v4709_v41 = vmax.f32 %v4567_v13, 0.0  ;;  %v4570_v42 = vadd.f32 %v9907_v59, %v4393_v10 }
 0x2cf   : > { %v4781_v55 = vcombine.high %v4709_v41, %v4709_v41  ;;  %v4788_v8 = vrot.slane %v4709_v41, %v7033_v29  ;;  %v4710_v20 = vmax.f32 %v4570_v42, 0.0 }
 0x2d0   : > { %v10233_v28 = vpop.f32.mrb[60].mxu0 }
 0x2d1   : > { %v10235_v11 = vpop.f32.mrb[61].mxu0  ;;  %v4795_v18 = vrot.slane %v4781_v55, %v7033_v29  ;;  %v4796_v52 = vcombine.high %v4788_v8, %v4788_v8  ;;  %v4798_v37 = vcombine.high %v4710_v20, %v4710_v20  ;;  %v4805_v63 = vrot.slane %v4710_v20, %v7033_v29 }
 0x2d2   : > { %v10239_v22 = vpop.f32.mrb[62].mxu0 }
 0x2d3   : > { %v10241_v56 = vpop.f32.mrb[63].mxu0  ;;  %v4797_v45 = vcombine.high %v4795_v18, %v4795_v18  ;;  %v4812_v59 = vrot.slane %v4798_v37, %v7033_v29  ;;  %v4813_v57 = vcombine.high %v4805_v63, %v4805_v63  ;;  %v5385_v27 = vcombine.low %v4788_v8, %v4796_v52 }
 0x2d5   : > { %v5386_v31 = vcombine.low %v4795_v18, %v4797_v45  ;;  %v4814_v6 = vcombine.high %v4812_v59, %v4812_v59  ;;  %v5402_v23 = vcombine.low %v4805_v63, %v4813_v57  ;;  %v5393_v33 = vrot.slane %v5385_v27, %v7033_v29 }
 0x2d7   : > { %v5400_v21 = vrot.slane %v5386_v31, %v7033_v29  ;;  %v5403_v49 = vcombine.low %v4812_v59, %v4814_v6  ;;  %v5410_v54 = vrot.slane %v5402_v23, %v7033_v29 }
 0x2d9   : > { %v4397_v4 = vpop.f32.mrb[4].mxu1  ;;  %v5417_v2 = vrot.slane %v5403_v49, %v7033_v29  ;;  %v5401_v14 = vcombine.low %v5393_v33, %v5400_v21 }
 0x2da   : > { %v4398_v0 = vadd.f32 %v10226_v15, %v4397_v4  ;;  %v4399_v24 = vpop.f32.mrb[5].mxu1 }
 0x2db   : > { %v4400_v39 = vpop.f32.mrb[6].mxu1  ;;  %v5418_v40 = vcombine.low %v5410_v54, %v5417_v2 }
 0x2dc   : > { %v4575_v60 = vadd.f32 %v9874_v25, %v4398_v0  ;;  %v4401_v44 = vadd.f32 %v10226_v15, %v4400_v39  ;;  %v4402_v50 = vpop.f32.mrb[7].mxu1 }
 0x2dd   : > { %v5961_v12 = vpack.c.bf16 %v5418_v40, %v5401_v14 }
 0x2de   : > { %v4711_v13 = vmax.f32 %v4575_v60, 0.0  ;;  %v4578_v10 = vadd.f32 %v9895_v1, %v4401_v44 }
 0x2df   : > { %6662 = vmatprep.mubr.msk.bf16.mxu0 %vm3530_vm2, %v5961_v12 }
 0x2e0   : > { %v4815_v41 = vcombine.high %v4711_v13, %v4711_v13  ;;  %v4822_v42 = vrot.slane %v4711_v13, %v7033_v29  ;;  %v4712_v55 = vmax.f32 %v4578_v10, 0.0 }
 0x2e2   : > { %v4829_v8 = vrot.slane %v4815_v41, %v7033_v29  ;;  %v4830_v20 = vcombine.high %v4822_v42, %v4822_v42  ;;  %v4839_v52 = vrot.slane %v4712_v55, %v7033_v29  ;;  %v4832_v59 = vcombine.high %v4712_v55, %v4712_v55 }
 0x2e4   : > { %v5419_v18 = vcombine.low %v4830_v20, %v4829_v8  ;;  %v4831_v25 = vcombine.high %v4829_v8, %v4829_v8  ;;  %v4846_v6 = vrot.slane %v4832_v59, %v7033_v29  ;;  %v4847_v23 = vcombine.high %v4839_v52, %v4839_v52 }
 0x2e6   : > { %v5420_v37 = vcombine.low %v4831_v25, %v4839_v52  ;;  %v5427_v63 = vrot.slane %v5419_v18, %v7033_v29  ;;  %v5436_v0 = vcombine.low %v4847_v23, %v4846_v6  ;;  %v4848_v24 = vcombine.high %v4846_v6, %v4846_v6 }
 0x2e8   : > { %v5434_v45 = vrot.slane %v5420_v37, %v7033_v29  ;;  %v5444_v12 = vrot.slane %v5436_v0, %v7033_v29 }
 0x2ea   : > { %v5435_v1 = vcombine.low %v5427_v63, %v5434_v45 }
 0x2ef   : > { %v4405_v57 = vpop.f32.mrb[8].mxu1 }
 0x2f0   : > { %v4406_v27 = vadd.f32 %v10226_v15, %v4405_v57  ;;  %v4407_v31 = vpop.f32.mrb[9].mxu1 }
 0x2f1   : > { %v4408_v21 = vpop.f32.mrb[10].mxu1 }
 0x2f2   : > { %v4583_v49 = vadd.f32 %v9950_v7, %v4406_v27  ;;  %v4409_v4 = vadd.f32 %v10226_v15, %v4408_v21  ;;  %v4410_v33 = vpop.f32.mrb[11].mxu1 }
 0x2f4   : > { %v4713_v54 = vmax.f32 %v4583_v49, 0.0  ;;  %v4586_v2 = vadd.f32 %v9958_v48, %v4409_v4 }
 0x2f6   : > { %v4849_v39 = vcombine.high %v4713_v54, %v4713_v54  ;;  %v4856_v60 = vrot.slane %v4713_v54, %v7033_v29  ;;  %v4714_v44 = vmax.f32 %v4586_v2, 0.0 }
 0x2f7   : > { %v4413_v50 = vpop.f32.mrb[12].mxu1 }
 0x2f8   : > { %v4863_v14 = vrot.slane %v4849_v39, %v7033_v29  ;;  %v5437_v40 = vcombine.low %v4848_v24, %v4856_v60  ;;  %v4865_v13 = vcombine.high %v4714_v44, %v4714_v44  ;;  %v4872_v10 = vrot.slane %v4714_v44, %v7033_v29  ;;  %v4415_v7 = vpop.f32.mrb[13].mxu1 }
 0x2f9   : > { %v4414_v41 = vadd.f32 %v10226_v15, %v4413_v50  ;;  %v4416_v42 = vpop.f32.mrb[14].mxu1 }
 0x2fa   : > { %v4864_v48 = vcombine.high %v4863_v14, %v4863_v14  ;;  %v5451_v55 = vrot.slane %v5437_v40, %v7033_v29  ;;  %v4879_v8 = vrot.slane %v4865_v13, %v7033_v29  ;;  %v4880_v20 = vcombine.high %v4872_v10, %v4872_v10  ;;  %v4418_v18 = vpop.f32.mrb[15].mxu1 }
 0x2fb   : > { %v4591_v25 = vadd.f32 %v9942_v38, %v4414_v41  ;;  %v4417_v52 = vadd.f32 %v10226_v15, %v4416_v42 }
 0x2fc   : > { %v5452_v37 = vcombine.low %v5444_v12, %v5451_v55  ;;  %v5453_v63 = vcombine.low %v4863_v14, %v4864_v48  ;;  %v4881_v45 = vcombine.high %v4879_v8, %v4879_v8  ;;  %v5454_v59 = vcombine.low %v4872_v10, %v4880_v20 }
 0x2fd   : > { %v4715_v57 = vmax.f32 %v4591_v25, 0.0  ;;  %v4594_v27 = vadd.f32 %v9955_v5, %v4417_v52 }
 0x2fe   : > { %v5461_v31 = vrot.slane %v5453_v63, %v7033_v29  ;;  %v5962_v6 = vpack.c.bf16 %v5452_v37, %v5435_v1  ;;  %v5468_v23 = vrot.slane %v5454_v59, %v7033_v29  ;;  %v5470_v33 = vcombine.low %v4879_v8, %v4881_v45 }
 0x2ff   : > { %v4882_v21 = vcombine.high %v4715_v57, %v4715_v57  ;;  %v4889_v49 = vrot.slane %v4715_v57, %v7033_v29  ;;  %v4716_v4 = vmax.f32 %v4594_v27, 0.0 }
 0x300   : > { %6663 = vmatmul.mubr.msk.bf16.vlgmr.msra.gmra.mrb[64].mxu0 %vm3530_vm2, %v5962_v6  ;;  %v5469_v38 = vcombine.low %v5461_v31, %v5468_v23  ;;  %v5478_v44 = vrot.slane %v5470_v33, %v7033_v29 }
 0x301   : > { %v4896_v54 = vrot.slane %v4882_v21, %v7033_v29  ;;  %v4897_v2 = vcombine.high %v4889_v49, %v4889_v49  ;;  %v4899_v0 = vcombine.high %v4716_v4, %v4716_v4  ;;  %v4906_v24 = vrot.slane %v4716_v4, %v7033_v29 }
 0x303   : > { %v4898_v5 = vcombine.high %v4896_v54, %v4896_v54  ;;  %v5471_v39 = vcombine.low %v4889_v49, %v4897_v2  ;;  %v4913_v1 = vrot.slane %v4899_v0, %v7033_v29  ;;  %v4914_v60 = vcombine.high %v4906_v24, %v4906_v24 }
 0x304   : > { %v4421_v7 = vpop.f32.mrb[16].mxu1 }
 0x305   : > { %v5485_v50 = vrot.slane %v5471_v39, %v7033_v29  ;;  %v5487_v14 = vcombine.low %v4898_v5, %v4906_v24  ;;  %v5488_v40 = vcombine.low %v4914_v60, %v4913_v1  ;;  %v4422_v41 = vadd.f32 %v10226_v15, %v4421_v7  ;;  %v4423_v42 = vpop.f32.mrb[17].mxu1 }
 0x306   : > { %v4424_v48 = vpop.f32.mrb[18].mxu1  ;;  %v4915_v63 = vcombine.high %v4913_v1, %v4913_v1 }
 0x307   : > { %v5495_v13 = vrot.slane %v5487_v14, %v7033_v29  ;;  %v5502_v10 = vrot.slane %v5488_v40, %v7033_v29  ;;  %v5486_v12 = vcombine.low %v5478_v44, %v5485_v50  ;;  %v4599_v20 = vadd.f32 %v10006_v46, %v4422_v41  ;;  %v4426_v25 = vpop.f32.mrb[19].mxu1 }
 0x308   : > { %v4425_v18 = vadd.f32 %v10226_v15, %v4424_v48 }
 0x309   : > { %v5963_v55 = vpack.c.bf16 %v5486_v12, %v5469_v38  ;;  %v5503_v8 = vcombine.low %v5495_v13, %v5502_v10  ;;  %v4717_v52 = vmax.f32 %v4599_v20, 0.0 }
 0x30a   : > { %v4602_v37 = vadd.f32 %v10013_v43, %v4425_v18 }
 0x30b   : > { %6666 = vmatprep.mubr.msk.bf16.mxu0 %vm3530_vm2, %v5963_v55  ;;  %v4916_v45 = vcombine.high %v4717_v52, %v4717_v52  ;;  %v4923_v59 = vrot.slane %v4717_v52, %v7033_v29 }
 0x30c   : > { %v4718_v57 = vmax.f32 %v4602_v37, 0.0 }
 0x30d   : > { %v4930_v27 = vrot.slane %v4916_v45, %v7033_v29  ;;  %v4931_v31 = vcombine.high %v4923_v59, %v4923_v59  ;;  %v5504_v6 = vcombine.low %v4915_v63, %v4923_v59 }
 0x30e   : > { %v4932_v23 = vcombine.high %v4718_v57, %v4718_v57  ;;  %v4939_v54 = vrot.slane %v4718_v57, %v7033_v29 }
 0x30f   : > { %v5505_v21 = vcombine.low %v4931_v31, %v4930_v27  ;;  %v5512_v49 = vrot.slane %v5504_v6, %v7033_v29 }
 0x310   : > { %v4429_v46 = vpop.f32.mrb[20].mxu1  ;;  %v4946_v33 = vrot.slane %v4932_v23, %v7033_v29  ;;  %v4947_v14 = vcombine.high %v4939_v54, %v4939_v54 }
 0x311   : > { %v5519_v4 = vrot.slane %v5505_v21, %v7033_v29  ;;  %v4430_v43 = vadd.f32 %v10226_v15, %v4429_v46  ;;  %v4431_v38 = vpop.f32.mrb[21].mxu1 }
 0x312   : > { %v4432_v2 = vpop.f32.mrb[22].mxu1  ;;  %v4948_v1 = vcombine.high %v4946_v33, %v4946_v33  ;;  %v5521_v41 = vcombine.low %v4939_v54, %v4947_v14 }
 0x313   : > { %v4607_v0 = vadd.f32 %v9996_v26, %v4430_v43  ;;  %v4433_v24 = vadd.f32 %v10226_v15, %v4432_v2  ;;  %v4434_v5 = vpop.f32.mrb[23].mxu1  ;;  %v5520_v39 = vcombine.low %v5512_v49, %v5519_v4 }
 0x314   : > { %v5522_v7 = vcombine.low %v4946_v33, %v4948_v1  ;;  %v5529_v37 = vrot.slane %v5521_v41, %v7033_v29 }
 0x315   : > { %v4719_v60 = vmax.f32 %v4607_v0, 0.0  ;;  %v4610_v44 = vadd.f32 %v10010_v30, %v4433_v24  ;;  %v5964_v50 = vpack.c.bf16 %v5520_v39, %v5503_v8 }
 0x316   : > { %v5536_v30 = vrot.slane %v5522_v7, %v7033_v29 }
 0x317   : > { %v4949_v40 = vcombine.high %v4719_v60, %v4719_v60  ;;  %v4956_v13 = vrot.slane %v4719_v60, %v7033_v29  ;;  %v4720_v10 = vmax.f32 %v4610_v44, 0.0  ;;  %6667 = vmatmul.mubr.msk.bf16.gmra.mrb[68].mxu0 %vm3530_vm2, %v5964_v50 }
 0x318   : > { %v5537_v49 = vcombine.low %v5529_v37, %v5536_v30 }
 0x319   : > { %v4963_v12 = vrot.slane %v4949_v40, %v7033_v29  ;;  %v4964_v26 = vcombine.high %v4956_v13, %v4956_v13  ;;  %v4966_v42 = vcombine.high %v4720_v10, %v4720_v10  ;;  %v4973_v48 = vrot.slane %v4720_v10, %v7033_v29 }
 0x31b   : > { %v4965_v55 = vcombine.high %v4963_v12, %v4963_v12  ;;  %v5538_v20 = vcombine.low %v4956_v13, %v4964_v26  ;;  %v4980_v63 = vrot.slane %v4966_v42, %v7033_v29  ;;  %v4981_v45 = vcombine.high %v4973_v48, %v4973_v48 }
 0x31c   : > { %v4437_v18 = vpop.f32.mrb[24].mxu1 }
 0x31d   : > { %v5539_v8 = vcombine.low %v4963_v12, %v4965_v55  ;;  %v4438_v25 = vadd.f32 %v10226_v15, %v4437_v18  ;;  %v4439_v52 = vpop.f32.mrb[25].mxu1  ;;  %v5546_v57 = vrot.slane %v5538_v20, %v7033_v29  ;;  %v5555_v33 = vcombine.low %v4981_v45, %v4980_v63 }
 0x31e   : > { %v4440_v59 = vpop.f32.mrb[26].mxu1  ;;  %v4982_v43 = vcombine.high %v4980_v63, %v4980_v63 }
 0x31f   : > { %v5553_v27 = vrot.slane %v5539_v8, %v7033_v29  ;;  %v4615_v31 = vadd.f32 %v10038_v19, %v4438_v25  ;;  %v4441_v6 = vadd.f32 %v10226_v15, %v4440_v59  ;;  %v4442_v23 = vpop.f32.mrb[27].mxu1  ;;  %v5563_v19 = vrot.slane %v5555_v33, %v7033_v29 }
 0x321   : > { %v4721_v21 = vmax.f32 %v4615_v31, 0.0  ;;  %v4618_v46 = vadd.f32 %v10052_v16, %v4441_v6  ;;  %v5554_v4 = vcombine.low %v5546_v57, %v5553_v27 }
 0x323   : > { %v4983_v38 = vcombine.high %v4721_v21, %v4721_v21  ;;  %v4990_v54 = vrot.slane %v4721_v21, %v7033_v29  ;;  %v4722_v2 = vmax.f32 %v4618_v46, 0.0  ;;  %v5965_v0 = vpack.c.bf16 %v5554_v4, %v5537_v49 }
 0x325   : > { %v4997_v24 = vrot.slane %v4983_v38, %v7033_v29  ;;  %v4998_v5 = vcombine.high %v4990_v54, %v4990_v54  ;;  %v5556_v39 = vcombine.low %v4982_v43, %v4990_v54  ;;  %6670 = vmatprep.mubr.msk.bf16.mxu0 %vm3530_vm2, %v5965_v0  ;;  %v5007_v44 = vrot.slane %v4722_v2, %v7033_v29 }
 0x326   : > { %v5000_v40 = vcombine.high %v4722_v2, %v4722_v2 }
 0x327   : > { %v5570_v1 = vrot.slane %v5556_v39, %v7033_v29  ;;  %v5572_v16 = vcombine.low %v4998_v5, %v4997_v24  ;;  %v4999_v60 = vcombine.high %v4997_v24, %v4997_v24 }
 0x328   : > { %v5014_v12 = vrot.slane %v5000_v40, %v7033_v29 }
 0x329   : > { %v5573_v50 = vcombine.low %v4999_v60, %v5007_v44  ;;  %v5571_v14 = vcombine.low %v5563_v19, %v5570_v1  ;;  %v5580_v13 = vrot.slane %v5572_v16, %v7033_v29 }
 0x32a   : > { %v5015_v8 = vcombine.high %v5014_v12, %v5014_v12 }
 0x32b   : > { %v5587_v10 = vrot.slane %v5573_v50, %v7033_v29 }
 0x32c   : > { %v4445_v26 = vpop.f32.mrb[28].mxu1  ;;  %v5589_v59 = vcombine.low %v5014_v12, %v5015_v8 }
 0x32d   : > { %v5588_v7 = vcombine.low %v5580_v13, %v5587_v10  ;;  %v4446_v41 = vadd.f32 %v10226_v15, %v4445_v26  ;;  %v4447_v42 = vpop.f32.mrb[29].mxu1 }
 0x32e   : > { %v4448_v55 = vpop.f32.mrb[30].mxu1  ;;  %v5597_v2 = vrot.slane %v5589_v59, %v7033_v29 }
 0x32f   : > { %v5966_v48 = vpack.c.bf16 %v5588_v7, %v5571_v14  ;;  %v4623_v20 = vadd.f32 %v10034_v35, %v4446_v41  ;;  %v4449_v18 = vadd.f32 %v10226_v15, %v4448_v55  ;;  %v4450_v30 = vpop.f32.mrb[31].mxu1 }
 0x331   : > { %6671 = vmatmul.mubr.msk.bf16.gmra.mrb[72].mxu0 %vm3530_vm2, %v5966_v48  ;;  %v4723_v25 = vmax.f32 %v4623_v20, 0.0  ;;  %v4626_v52 = vadd.f32 %v10047_v53, %v4449_v18 }
 0x333   : > { %v5016_v37 = vcombine.high %v4723_v25, %v4723_v25  ;;  %v5023_v63 = vrot.slane %v4723_v25, %v7033_v29  ;;  %v4724_v45 = vmax.f32 %v4626_v52, 0.0 }
 0x334   : > { %v4453_v57 = vpop.f32.mrb[32].mxu1 }
 0x335   : > { %v5030_v27 = vrot.slane %v5016_v37, %v7033_v29  ;;  %v5031_v31 = vcombine.high %v5023_v63, %v5023_v63  ;;  %v5033_v6 = vcombine.high %v4724_v45, %v4724_v45  ;;  %v5040_v35 = vrot.slane %v4724_v45, %v7033_v29  ;;  %v4455_v23 = vpop.f32.mrb[33].mxu1  ;;  %v11352_v45 = vld [vmem:[#allocation66_spill] sm:$0xff] }
 0x336   : > { %v4454_v21 = vadd.f32 %v10226_v15, %v4453_v57  ;;  %v4456_v46 = vpop.f32.mrb[34].mxu1 }
 0x337   : > { %v5032_v49 = vcombine.high %v5030_v27, %v5030_v27  ;;  %v5590_v4 = vcombine.low %v5023_v63, %v5031_v31  ;;  %v5048_v33 = vcombine.high %v5040_v35, %v5040_v35  ;;  %v4458_v53 = vpop.f32.mrb[35].mxu1  ;;  %v5047_v43 = vrot.slane %v5033_v6, %v7033_v29 }
 0x338   : > { %v4631_v38 = vadd.f32 %v10113_v17, %v4454_v21  ;;  %v4457_v54 = vadd.f32 %v10226_v15, %v4456_v46 }
 0x339   : > { %v5604_v0 = vrot.slane %v5590_v4, %v7033_v29  ;;  %v5606_v24 = vcombine.low %v5030_v27, %v5032_v49  ;;  %v5607_v5 = vcombine.low %v5040_v35, %v5048_v33  ;;  %v5049_v44 = vcombine.high %v5047_v43, %v5047_v43 }
 0x33a   : > { %v4725_v39 = vmax.f32 %v4631_v38, 0.0  ;;  %v4634_v19 = vadd.f32 %v10121_v51, %v4457_v54 }
 0x33b   : > { %v5614_v1 = vrot.slane %v5606_v24, %v7033_v29  ;;  %v5621_v16 = vrot.slane %v5607_v5, %v7033_v29  ;;  %v5605_v60 = vcombine.low %v5597_v2, %v5604_v0 }
 0x33c   : > { %v5050_v50 = vcombine.high %v4725_v39, %v4725_v39  ;;  %v5057_v17 = vrot.slane %v4725_v39, %v7033_v29  ;;  %v4726_v14 = vmax.f32 %v4634_v19, 0.0  ;;  %v4461_v40 = vpop.f32.mrb[36].mxu1 }
 0x33d   : > { %v4462_v13 = vadd.f32 %v10226_v15, %v4461_v40  ;;  %v4463_v10 = vpop.f32.mrb[37].mxu1  ;;  %v5622_v7 = vcombine.low %v5614_v1, %v5621_v16 }
 0x33e   : > { %v5064_v12 = vrot.slane %v5050_v50, %v7033_v29  ;;  %v5065_v26 = vcombine.high %v5057_v17, %v5057_v17  ;;  %v5623_v41 = vcombine.low %v5049_v44, %v5057_v17  ;;  %v5067_v51 = vcombine.high %v4726_v14, %v4726_v14  ;;  %v4464_v42 = vpop.f32.mrb[38].mxu1 }
 0x33f   : > { %v5074_v48 = vrot.slane %v4726_v14, %v7033_v29  ;;  %v4639_v55 = vadd.f32 %v10109_v36, %v4462_v13  ;;  %v4465_v20 = vadd.f32 %v10226_v15, %v4464_v42  ;;  %v4466_v18 = vpop.f32.mrb[39].mxu1  ;;  %v5967_v30 = vpack.c.bf16 %v5622_v7, %v5605_v60 }
 0x340   : > { %v5624_v8 = vcombine.low %v5065_v26, %v5064_v12  ;;  %v5066_v25 = vcombine.high %v5064_v12, %v5064_v12  ;;  %v5081_v52 = vrot.slane %v5067_v51, %v7033_v29  ;;  %v5631_v57 = vrot.slane %v5623_v41, %v7033_v29 }
 0x341   : > { %v5082_v37 = vcombine.high %v5074_v48, %v5074_v48  ;;  %v4727_v63 = vmax.f32 %v4639_v55, 0.0  ;;  %v4642_v59 = vadd.f32 %v11352_v45, %v4465_v20  ;;  %6674 = vmatprep.mubr.msk.bf16.mxu0 %vm3530_vm2, %v5967_v30 }
 0x342   : > { %v5638_v27 = vrot.slane %v5624_v8, %v7033_v29  ;;  %v5640_v31 = vcombine.low %v5066_v25, %v5074_v48 }
 0x343   : > { %v5641_v36 = vcombine.low %v5082_v37, %v5081_v52  ;;  %v5083_v6 = vcombine.high %v4727_v63, %v4727_v63  ;;  %v5090_v35 = vrot.slane %v4727_v63, %v7033_v29  ;;  %v4728_v23 = vmax.f32 %v4642_v59, 0.0 }
 0x344   : > { %v5648_v21 = vrot.slane %v5640_v31, %v7033_v29  ;;  %v5639_v49 = vcombine.low %v5631_v57, %v5638_v27 }
 0x345   : > { %v5655_v4 = vrot.slane %v5641_v36, %v7033_v29  ;;  %v5097_v33 = vrot.slane %v5083_v6, %v7033_v29  ;;  %v5098_v53 = vcombine.high %v5090_v35, %v5090_v35  ;;  %v5100_v43 = vcombine.high %v4728_v23, %v4728_v23 }
 0x346   : > { %v5107_v54 = vrot.slane %v4728_v23, %v7033_v29 }
 0x347   : > { %v5099_v24 = vcombine.high %v5097_v33, %v5097_v33  ;;  %v5114_v5 = vrot.slane %v5100_v43, %v7033_v29  ;;  %v5656_v60 = vcombine.low %v5648_v21, %v5655_v4  ;;  %v5657_v44 = vcombine.low %v5090_v35, %v5098_v53 }
 0x348   : > { %v4469_v46 = vpop.f32.mrb[40].mxu1  ;;  %v5115_v1 = vcombine.high %v5107_v54, %v5107_v54 }
 0x349   : > { %v4471_v38 = vpop.f32.mrb[41].mxu1  ;;  %v4470_v2 = vadd.f32 %v10226_v15, %v4469_v46  ;;  %v5658_v50 = vcombine.low %v5097_v33, %v5099_v24  ;;  %v5116_v17 = vcombine.high %v5114_v5, %v5114_v5  ;;  %v5968_v10 = vpack.c.bf16 %v5656_v60, %v5639_v49 }
 0x34a   : > { %v4472_v0 = vpop.f32.mrb[42].mxu1  ;;  %v5674_v40 = vcombine.low %v5107_v54, %v5115_v1 }
 0x34b   : > { %v4473_v39 = vadd.f32 %v10226_v15, %v4472_v0  ;;  %v4474_v19 = vpop.f32.mrb[43].mxu1  ;;  %v4647_v16 = vadd.f32 %v10187_v47, %v4470_v2  ;;  %v5672_v7 = vrot.slane %v5658_v50, %v7033_v29  ;;  %v5675_v12 = vcombine.low %v5114_v5, %v5116_v17  ;;  %6675 = vmatmul.mubr.msk.bf16.gmra.mrb[76].mxu0 %vm3530_vm2, %v5968_v10 }
 0x34c   : > { %v5665_v47 = vrot.slane %v5657_v44, %v7033_v29  ;;  %v5682_v42 = vrot.slane %v5674_v40, %v7033_v29 }
 0x34d   : > { %v4650_v14 = vadd.f32 %v10193_v62, %v4473_v39  ;;  %v4729_v13 = vmax.f32 %v4647_v16, 0.0  ;;  %v5689_v48 = vrot.slane %v5675_v12, %v7033_v29 }
 0x34e   : > { %v5673_v20 = vcombine.low %v5665_v47, %v5672_v7 }
 0x34f   : > { %v5117_v26 = vcombine.high %v4729_v13, %v4729_v13  ;;  %v5124_v41 = vrot.slane %v4729_v13, %v7033_v29  ;;  %v4730_v51 = vmax.f32 %v4650_v14, 0.0  ;;  %v5690_v18 = vcombine.low %v5682_v42, %v5689_v48 }
 0x351   : > { %v5131_v62 = vrot.slane %v5117_v26, %v7033_v29  ;;  %v5132_v55 = vcombine.high %v5124_v41, %v5124_v41  ;;  %v5141_v25 = vrot.slane %v4730_v51, %v7033_v29  ;;  %v5969_v52 = vpack.c.bf16 %v5690_v18, %v5673_v20 }
 0x352   : > { %v5134_v59 = vcombine.high %v4730_v51, %v4730_v51 }
 0x353   : > { %v5691_v30 = vcombine.low %v5132_v55, %v5131_v62  ;;  %v5133_v8 = vcombine.high %v5131_v62, %v5131_v62  ;;  %6678 = vmatprep.mubr.msk.bf16.mxu0 %vm3530_vm2, %v5969_v52  ;;  %v5149_v35 = vcombine.high %v5141_v25, %v5141_v25 }
 0x354   : > { %v5148_v6 = vrot.slane %v5134_v59, %v7033_v29 }
 0x355   : > { %v5692_v37 = vcombine.low %v5133_v8, %v5141_v25  ;;  %v5699_v63 = vrot.slane %v5691_v30, %v7033_v29 }
 0x356   : > { %v5708_v53 = vcombine.low %v5149_v35, %v5148_v6  ;;  %v5150_v43 = vcombine.high %v5148_v6, %v5148_v6 }
 0x357   : > { %v5706_v45 = vrot.slane %v5692_v37, %v7033_v29 }
 0x358   : > { %v5716_v1 = vrot.slane %v5708_v53, %v7033_v29 }
 0x359   : > { %v5707_v57 = vcombine.low %v5699_v63, %v5706_v45 }
 0x35c   : > { %v4477_v27 = vpop.f32.mrb[44].mxu1 }
 0x35d   : > { %v4478_v31 = vadd.f32 %v10226_v15, %v4477_v27  ;;  %v4479_v36 = vpop.f32.mrb[45].mxu1 }
 0x35e   : > { %v4480_v23 = vpop.f32.mrb[46].mxu1 }
 0x35f   : > { %v4655_v21 = vadd.f32 %v10185_v9, %v4478_v31  ;;  %v4481_v46 = vadd.f32 %v10226_v15, %v4480_v23  ;;  %v4482_v49 = vpop.f32.mrb[47].mxu1 }
 0x361   : > { %v4731_v4 = vmax.f32 %v4655_v21, 0.0  ;;  %v4658_v33 = vadd.f32 %v10191_v32, %v4481_v46 }
 0x363   : > { %v5151_v38 = vcombine.high %v4731_v4, %v4731_v4  ;;  %v5158_v54 = vrot.slane %v4731_v4, %v7033_v29  ;;  %v4732_v2 = vmax.f32 %v4658_v33, 0.0 }
 0x364   : > { %v4485_v0 = vpop.f32.mrb[48].mxu1 }
 0x365   : > { %v5165_v24 = vrot.slane %v5151_v38, %v7033_v29  ;;  %v5709_v5 = vcombine.low %v5150_v43, %v5158_v54  ;;  %v5167_v39 = vcombine.high %v4732_v2, %v4732_v2  ;;  %v5174_v19 = vrot.slane %v4732_v2, %v7033_v29  ;;  %v4487_v9 = vpop.f32.mrb[49].mxu1 }
 0x366   : > { %v4486_v16 = vadd.f32 %v10226_v15, %v4485_v0  ;;  %v4488_v60 = vpop.f32.mrb[50].mxu1 }
 0x367   : > { %v5166_v32 = vcombine.high %v5165_v24, %v5165_v24  ;;  %v5723_v44 = vrot.slane %v5709_v5, %v7033_v29  ;;  %v5181_v50 = vrot.slane %v5167_v39, %v7033_v29  ;;  %v5182_v17 = vcombine.high %v5174_v19, %v5174_v19  ;;  %v4490_v14 = vpop.f32.mrb[51].mxu1 }
 0x368   : > { %v4663_v40 = vadd.f32 %v10214_v61, %v4486_v16  ;;  %v4489_v13 = vadd.f32 %v10226_v15, %v4488_v60 }
 0x369   : > { %v5725_v10 = vcombine.low %v5165_v24, %v5166_v32  ;;  %v5183_v7 = vcombine.high %v5181_v50, %v5181_v50  ;;  %v5726_v12 = vcombine.low %v5174_v19, %v5182_v17  ;;  %v5724_v26 = vcombine.low %v5716_v1, %v5723_v44 }
 0x36a   : > { %v4733_v41 = vmax.f32 %v4663_v40, 0.0  ;;  %v4666_v51 = vadd.f32 %v10220_v58, %v4489_v13 }
 0x36b   : > { %v5733_v47 = vrot.slane %v5725_v10, %v7033_v29  ;;  %v5740_v42 = vrot.slane %v5726_v12, %v7033_v29  ;;  %v5970_v48 = vpack.c.bf16 %v5724_v26, %v5707_v57  ;;  %v5742_v61 = vcombine.low %v5181_v50, %v5183_v7 }
 0x36c   : > { %v5184_v62 = vcombine.high %v4733_v41, %v4733_v41  ;;  %v5191_v55 = vrot.slane %v4733_v41, %v7033_v29  ;;  %v4734_v20 = vmax.f32 %v4666_v51, 0.0  ;;  %v4493_v18 = vpop.f32.mrb[52].mxu1 }
 0x36d   : > { %v4494_v30 = vadd.f32 %v10226_v15, %v4493_v18  ;;  %v4495_v8 = vpop.f32.mrb[53].mxu1  ;;  %6679 = vmatmul.mubr.msk.bf16.gmra.mrb[80].mxu0 %vm3530_vm2, %v5970_v48  ;;  %v5741_v25 = vcombine.low %v5733_v47, %v5740_v42  ;;  %v5750_v46 = vrot.slane %v5742_v61, %v7033_v29 }
 0x36e   : > { %v5198_v52 = vrot.slane %v5184_v62, %v7033_v29  ;;  %v5199_v58 = vcombine.high %v5191_v55, %v5191_v55  ;;  %v5201_v37 = vcombine.high %v4734_v20, %v4734_v20  ;;  %v5208_v63 = vrot.slane %v4734_v20, %v7033_v29  ;;  %v4496_v45 = vpop.f32.mrb[54].mxu1 }
 0x36f   : > { %v4671_v59 = vadd.f32 %v10212_v34, %v4494_v30  ;;  %v4497_v57 = vadd.f32 %v10226_v15, %v4496_v45  ;;  %v4498_v27 = vpop.f32.mrb[55].mxu1 }
 0x370   : > { %v5200_v31 = vcombine.high %v5198_v52, %v5198_v52  ;;  %v5743_v36 = vcombine.low %v5191_v55, %v5199_v58  ;;  %v5215_v6 = vrot.slane %v5201_v37, %v7033_v29  ;;  %v5216_v35 = vcombine.high %v5208_v63, %v5208_v63 }
 0x371   : > { %v4735_v23 = vmax.f32 %v4671_v59, 0.0  ;;  %v4674_v21 = vadd.f32 %v10218_v3, %v4497_v57 }
 0x372   : > { %v5757_v49 = vrot.slane %v5743_v36, %v7033_v29  ;;  %v5759_v4 = vcombine.low %v5200_v31, %v5208_v63  ;;  %v5760_v33 = vcombine.low %v5216_v35, %v5215_v6  ;;  %v5217_v53 = vcombine.high %v5215_v6, %v5215_v6 }
 0x373   : > { %v5218_v43 = vcombine.high %v4735_v23, %v4735_v23  ;;  %v5225_v34 = vrot.slane %v4735_v23, %v7033_v29  ;;  %v4736_v38 = vmax.f32 %v4674_v21, 0.0 }
 0x374   : > { %v5767_v54 = vrot.slane %v5759_v4, %v7033_v29  ;;  %v5774_v2 = vrot.slane %v5760_v33, %v7033_v29  ;;  %v5758_v0 = vcombine.low %v5750_v46, %v5757_v49  ;;  %v4501_v19 = vpop.f32.mrb[56].mxu1 }
 0x375   : > { %v5232_v24 = vrot.slane %v5218_v43, %v7033_v29  ;;  %v5233_v5 = vcombine.high %v5225_v34, %v5225_v34  ;;  %v5776_v3 = vcombine.low %v5217_v53, %v5225_v34  ;;  %v5234_v39 = vcombine.high %v4736_v38, %v4736_v38  ;;  %v4503_v1 = vpop.f32.mrb[57].mxu1 }
 0x376   : > { %v4502_v9 = vadd.f32 %v10226_v15, %v4501_v19  ;;  %v5971_v16 = vpack.c.bf16 %v5758_v0, %v5741_v25  ;;  %v5775_v60 = vcombine.low %v5767_v54, %v5774_v2  ;;  %v5241_v44 = vrot.slane %v4736_v38, %v7033_v29  ;;  %v4504_v17 = vpop.f32.mrb[58].mxu1 }
 0x377   : > { %v5777_v32 = vcombine.low %v5233_v5, %v5232_v24  ;;  %v5248_v50 = vrot.slane %v5234_v39, %v7033_v29  ;;  %v4505_v40 = vadd.f32 %v10226_v15, %v4504_v17  ;;  %v4506_v13 = vpop.f32.mrb[59].mxu1  ;;  %v5784_v10 = vrot.slane %v5776_v3, %v7033_v29 }
 0x378   : > { %v4679_v14 = vadd.f32 %v10235_v11, %v4502_v9  ;;  %6682 = vmatprep.mubr.msk.bf16.mxu0 %vm3530_vm2, %v5971_v16  ;;  %v5249_v51 = vcombine.high %v5241_v44, %v5241_v44 }
 0x379   : > { %v5791_v7 = vrot.slane %v5777_v32, %v7033_v29  ;;  %v5250_v12 = vcombine.high %v5248_v50, %v5248_v50  ;;  %v4682_v41 = vadd.f32 %v10241_v56, %v4505_v40 }
 0x37a   : > { %v4737_v26 = vmax.f32 %v4679_v14, 0.0  ;;  %v5793_v52 = vcombine.low %v5241_v44, %v5249_v51 }
 0x37b   : > { %v5792_v47 = vcombine.low %v5784_v10, %v5791_v7  ;;  %v4738_v62 = vmax.f32 %v4682_v41, 0.0  ;;  %v5794_v11 = vcombine.low %v5248_v50, %v5250_v12 }
 0x37c   : > { %v5251_v42 = vcombine.high %v4737_v26, %v4737_v26  ;;  %v5258_v48 = vrot.slane %v4737_v26, %v7033_v29  ;;  %v4509_v55 = vpop.f32.mrb[60].mxu1  ;;  %v5801_v21 = vrot.slane %v5793_v52, %v7033_v29 }
 0x37d   : > { %v5972_v20 = vpack.c.bf16 %v5792_v47, %v5775_v60  ;;  %v5268_v30 = vcombine.high %v4738_v62, %v4738_v62  ;;  %v5275_v8 = vrot.slane %v4738_v62, %v7033_v29  ;;  %v4511_v25 = vpop.f32.mrb[61].mxu1  ;;  %v4510_v58 = vadd.f32 %v10226_v15, %v4509_v55 }
 0x37e   : > { %v5265_v18 = vrot.slane %v5251_v42, %v7033_v29  ;;  %v5266_v61 = vcombine.high %v5258_v48, %v5258_v48  ;;  %v4512_v56 = vpop.f32.mrb[62].mxu1  ;;  %v5808_v36 = vrot.slane %v5794_v11, %v7033_v29 }
 0x37f   : > { %6683 = vmatmul.mubr.msk.bf16.gmra.mrb[84].mxu0 %vm3530_vm2, %v5972_v20  ;;  %v5282_v45 = vrot.slane %v5268_v30, %v7033_v29  ;;  %v5283_v59 = vcombine.high %v5275_v8, %v5275_v8  ;;  %v4514_v57 = vpop.f32.mrb[63].mxu1  ;;  %v4687_v27 = vadd.f32 %v10233_v28, %v4510_v58  ;;  %v4513_v31 = vadd.f32 %v10226_v15, %v4512_v56 }
 0x380   : > { %v5267_v37 = vcombine.high %v5265_v18, %v5265_v18  ;;  %v5810_v63 = vcombine.low %v5258_v48, %v5266_v61  ;;  %v5809_v54 = vcombine.low %v5801_v21, %v5808_v36 }
 0x381   : > { %v4739_v35 = vmax.f32 %v4687_v27, 0.0  ;;  %v4690_v23 = vadd.f32 %v10239_v22, %v4513_v31  ;;  %v5827_v4 = vcombine.low %v5283_v59, %v5282_v45  ;;  %v5284_v33 = vcombine.high %v5282_v45, %v5282_v45 }
 0x382   : > { %v5811_v6 = vcombine.low %v5265_v18, %v5267_v37  ;;  %v5818_v46 = vrot.slane %v5810_v63, %v7033_v29 }
 0x383   : > { %v5285_v53 = vcombine.high %v4739_v35, %v4739_v35  ;;  %v5292_v43 = vrot.slane %v4739_v35, %v7033_v29  ;;  %v4740_v28 = vmax.f32 %v4690_v23, 0.0  ;;  %v5835_v3 = vrot.slane %v5827_v4, %v7033_v29 }
 0x384   : > { %v5825_v49 = vrot.slane %v5811_v6, %v7033_v29  ;;  %v4517_v34 = vpop.f32.mrb[64].mxu1 }
 0x385   : > { %v4519_v38 = vpop.f32.mrb[65].mxu1  ;;  %v5299_v0 = vrot.slane %v5285_v53, %v7033_v29  ;;  %v5300_v24 = vcombine.high %v5292_v43, %v5292_v43  ;;  %v5828_v22 = vcombine.low %v5284_v33, %v5292_v43  ;;  %v5309_v60 = vrot.slane %v4740_v28, %v7033_v29 }
 0x386   : > { %v5826_v2 = vcombine.low %v5818_v46, %v5825_v49  ;;  %v4520_v5 = vpop.f32.mrb[66].mxu1  ;;  %v5302_v10 = vcombine.high %v4740_v28, %v4740_v28  ;;  %v4518_v47 = vadd.f32 %v10226_v15, %v4517_v34 }
 0x387   : > { %v4522_v39 = vpop.f32.mrb[67].mxu1  ;;  %v5842_v9 = vrot.slane %v5828_v22, %v7033_v29  ;;  %v5844_v1 = vcombine.low %v5300_v24, %v5299_v0  ;;  %v5301_v16 = vcombine.high %v5299_v0, %v5299_v0  ;;  %v4521_v20 = vadd.f32 %v10226_v15, %v4520_v5 }
 0x388   : > { %v5973_v19 = vpack.c.bf16 %v5826_v2, %v5809_v54  ;;  %v5316_v41 = vrot.slane %v5302_v10, %v7033_v29  ;;  %v10460_v10 = vld [vmem:[%s10604_s6] ss:$0 sm:$0xff] }
 0x389   : > { %v5845_v32 = vcombine.low %v5301_v16, %v5309_v60  ;;  %v5843_v44 = vcombine.low %v5835_v3, %v5842_v9  ;;  %v5852_v50 = vrot.slane %v5844_v1, %v7033_v29 }
 0x38a   : > { %6686 = vmatprep.mubr.msk.bf16.mxu0 %vm3530_vm2, %v5973_v19  ;;  %v5317_v55 = vcombine.high %v5316_v41, %v5316_v41 }
 0x38b   : > { %v5859_v17 = vrot.slane %v5845_v32, %v7033_v29 }
 0x38c   : > { %v5861_v45 = vcombine.low %v5316_v41, %v5317_v55 }
 0x38d   : > { %v5860_v40 = vcombine.low %v5852_v50, %v5859_v17 }
 0x38e   : > { %v5869_v54 = vrot.slane %v5861_v45, %v7033_v29 }
 0x38f   : > { %v4525_v14 = vpop.f32.mrb[68].mxu1  ;;  %v5974_v12 = vpack.c.bf16 %v5860_v40, %v5843_v44 }
 0x390   : > { %v4527_v13 = vpop.f32.mrb[69].mxu1  ;;  %v4526_v51 = vadd.f32 %v10226_v15, %v4525_v14 }
 0x391   : > { %v4528_v7 = vpop.f32.mrb[70].mxu1  ;;  %6687 = vmatmul.mubr.msk.bf16.gmra.mrb[88].mxu0 %vm3530_vm2, %v5974_v12 }
 0x392   : > { %v4530_v26 = vpop.f32.mrb[71].mxu1  ;;  %v4529_v48 = vadd.f32 %v10226_v15, %v4528_v7  ;;  %v6809_v7 = vld [vmem:[%s7000_s23 + $0x8] sm:$0xff]  }
 0x393   : > { %v6211_v12 = vunpack.c.l.bf16 %v6809_v7  ;;  %v6810_v26 = vld [vmem:[%s7000_s23] sm:$0xff]  }
 0x394   : > { %v6209_v41 = vunpack.c.l.bf16 %v6810_v26 }
 0x397   : > { %v6656_v42 = vpop.f32.mrb[72].mxu1 }
 0x398   : > { %v4703_v62 = vadd.f32 %v6656_v42, %v4526_v51  ;;  %v4694_v11 = vpop.f32.mrb[73].mxu1  ;;  %v6212_v42 = vunpack.c.h.bf16 %v6809_v7 }
 0x399   : > { %v4695_v18 = vadd.f32 %v4694_v11, %v4518_v47  ;;  %v6657_v61 = vpop.f32.mrb[74].mxu1 }
 0x39a   : > { %v4743_v30 = vmax.f32 %v4703_v62, 0.0  ;;  %v4706_v8 = vadd.f32 %v6657_v61, %v4529_v48  ;;  %v4697_v25 = vpop.f32.mrb[75].mxu1  ;;  %v6210_v48 = vunpack.c.h.bf16 %v6810_v26 }
 0x39b   : > { %v4741_v52 = vmax.f32 %v4695_v18, 0.0  ;;  %v4698_v58 = vadd.f32 %v4697_v25, %v4521_v20 }
 0x39c   : > { %v5352_v56 = vcombine.high %v4743_v30, %v4743_v30  ;;  %v5359_v37 = vrot.slane %v4743_v30, %v7033_v29  ;;  %v4744_v63 = vmax.f32 %v4706_v8, 0.0 }
 0x39d   : > { %v5318_v59 = vcombine.high %v4741_v52, %v4741_v52  ;;  %v5325_v57 = vrot.slane %v4741_v52, %v7033_v29  ;;  %v4742_v27 = vmax.f32 %v4698_v58, 0.0 }
 0x39e   : > { %v5366_v31 = vrot.slane %v5352_v56, %v7033_v29  ;;  %v5367_v36 = vcombine.high %v5359_v37, %v5359_v37  ;;  %v5369_v15 = vcombine.high %v4744_v63, %v4744_v63  ;;  %v5376_v6 = vrot.slane %v4744_v63, %v7033_v29  ;;  %v6811_v63 = vld [vmem:[%s7000_s23 + $0x18] sm:$0xff]  }
 0x39f   : > { %v5332_v35 = vrot.slane %v5318_v59, %v7033_v29  ;;  %v5333_v23 = vcombine.high %v5325_v57, %v5325_v57  ;;  %v5335_v21 = vcombine.high %v4742_v27, %v4742_v27  ;;  %v5342_v46 = vrot.slane %v4742_v27, %v7033_v29 }
 0x3a0   : > { %v5368_v49 = vcombine.high %v5366_v31, %v5366_v31  ;;  %v5383_v4 = vrot.slane %v5369_v15, %v7033_v29  ;;  %v5384_v33 = vcombine.high %v5376_v6, %v5376_v6  ;;  %v5896_v38 = vcombine.low %v5367_v36, %v5366_v31 }
 0x3a1   : > { %v5334_v53 = vcombine.high %v5332_v35, %v5332_v35  ;;  %v5862_v43 = vcombine.low %v5325_v57, %v5333_v23  ;;  %v5349_v28 = vrot.slane %v5335_v21, %v7033_v29  ;;  %v5350_v34 = vcombine.high %v5342_v46, %v5342_v46  ;;  %v6812_v57 = vld [vmem:[%s7000_s23 + $0x10] sm:$0xff]  }
 0x3a2   : > { %v5912_v2 = vcombine.low %v5368_v49, %v5376_v6  ;;  %v5913_v0 = vcombine.low %v5384_v33, %v5383_v4  ;;  %v5910_v44 = vrot.slane %v5896_v38, %v7033_v29  ;;  %v6215_v45 = vunpack.c.l.bf16 %v6811_v63 }
 0x3a3   : > { %v5876_v24 = vrot.slane %v5862_v43, %v7033_v29  ;;  %v5878_v22 = vcombine.low %v5332_v35, %v5334_v53  ;;  %v5351_v5 = vcombine.high %v5349_v28, %v5349_v28  ;;  %v5879_v3 = vcombine.low %v5342_v46, %v5350_v34 }
 0x3a4   : > { %v5920_v39 = vrot.slane %v5912_v2, %v7033_v29  ;;  %v5927_v19 = vrot.slane %v5913_v0, %v7033_v29  ;;  %v6213_v27 = vunpack.c.l.bf16 %v6812_v57  ;;  %v6216_v15 = vunpack.c.h.bf16 %v6811_v63  ;;  %v6813_v2 = vld [vmem:[%s7000_s23 + $0x28] sm:$0xff]  }
 0x3a5   : > { %v5877_v9 = vcombine.low %v5869_v54, %v5876_v24  ;;  %v5886_v1 = vrot.slane %v5878_v22, %v7033_v29  ;;  %v5893_v16 = vrot.slane %v5879_v3, %v7033_v29  ;;  %v5895_v60 = vcombine.low %v5351_v5, %v5359_v37  ;;  %v6814_v22 = vld [vmem:[%s7000_s23 + $0x20] sm:$0xff]  }
 0x3a6   : > { %v5928_v32 = vcombine.low %v5920_v39, %v5927_v19  ;;  %v6214_v23 = vunpack.c.h.bf16 %v6812_v57  ;;  %v6219_v0 = vunpack.c.l.bf16 %v6813_v2  ;;  %v6217_v5 = vunpack.c.l.bf16 %v6814_v22  ;;  %v6817_v57 = vld [vmem:[%s7000_s23 + $0x48] sm:$0xff]  }
 0x3a7   : > { %v5894_v50 = vcombine.low %v5886_v1, %v5893_v16  ;;  %v5903_v17 = vrot.slane %v5895_v60, %v7033_v29  ;;  %v6220_v19 = vunpack.c.h.bf16 %v6813_v2  ;;  %v6218_v16 = vunpack.c.h.bf16 %v6814_v22  ;;  %v6819_v22 = vld [vmem:[%s7000_s23 + $0x58] sm:$0xff]  }
 0x3a9   : > { %v5975_v14 = vpack.c.bf16 %v5894_v50, %v5877_v9  ;;  %v5911_v40 = vcombine.low %v5903_v17, %v5910_v44 }
 0x3ab   : > { %6690 = vmatprep.mubr.msk.bf16.mxu0 %vm3530_vm2, %v5975_v14  ;;  %v5976_v13 = vpack.c.bf16 %v5928_v32, %v5911_v40 }
 0x3ad   : > { %6691 = vmatmul.mubr.msk.bf16.gmra.mrb[92].mxu0 %vm3530_vm2, %v5976_v13 }
 0x3d3   : > { %v6664_v51 = vpop.f32.mrb[64].mxu0 }
 0x3d4   : > { %v6091_v29 = vadd.f32 %v6664_v51, %v10460_v10  ;;  %v6082_v47 = vpop.f32.mrb[65].mxu0 }
 0x3d5   : > { %v6083_v62 = vadd.f32 %v10460_v10, %v6082_v47  ;;  %v6665_v11 = vpop.f32.mrb[66].mxu0  ;;  %v6816_v47 = vld [vmem:[%s7000_s23 + $0x30] sm:$0xff]  }
 0x3d6   : > { %v6243_v55 = vadd.f32 %v6211_v12, %v6091_v29  ;;  %v6094_v20 = vadd.f32 %v6665_v11, %v10460_v10  ;;  %v6085_v18 = vpop.f32.mrb[67].mxu0 }
 0x3d7   : > { %v6241_v61 = vadd.f32 %v6209_v41, %v6083_v62  ;;  %v6086_v30 = vadd.f32 %v10460_v10, %v6085_v18  ;;  %v6815_v41 = vld [vmem:[%s7000_s23 + $0x38] sm:$0xff]   ;;  %v6222_v18 = vunpack.c.h.bf16 %v6816_v47 }
 0x3d8   : > { %v6275_v8 = vmax.f32 %v6243_v55, 0.0  ;;  %v6244_v25 = vadd.f32 %v6212_v42, %v6094_v20  ;;  %v6223_v51 = vunpack.c.l.bf16 %v6815_v41  ;;  %v6221_v42 = vunpack.c.l.bf16 %v6816_v47  ;;  %v6821_v47 = vld [vmem:[%s7000_s23 + $0x68] sm:$0xff]  }
 0x3d9   : > { %v6273_v52 = vmax.f32 %v6241_v61, 0.0  ;;  %v6242_v58 = vadd.f32 %v6210_v48, %v6086_v30  ;;  %v6224_v11 = vunpack.c.h.bf16 %v6815_v41 }
 0x3da   : > { %6307 = vst [vmem:[%s10470_s9 + $0x10] sm:$0xff] %v6275_v8  ;;  %v6276_v56 = vmax.f32 %v6244_v25, 0.0 }
 0x3db   : > { %6305 = vst [vmem:[%s10470_s9] sm:$0xff] %v6273_v52  ;;  %v6274_v37 = vmax.f32 %v6242_v58, 0.0 }
 0x3dc   : > { %6308 = vst [vmem:[%s10470_s9 + $0x18] sm:$0xff] %v6276_v56 }
 0x3dd   : > { %6306 = vst [vmem:[%s10470_s9 + $0x8] sm:$0xff] %v6274_v37 }
 0x3ea   : > { %v6668_v59 = vpop.f32.mrb[68].mxu0 }
 0x3eb   : > { %v6107_v31 = vadd.f32 %v6668_v59, %v10460_v10  ;;  %v6098_v36 = vpop.f32.mrb[69].mxu0 }
 0x3ec   : > { %v6099_v6 = vadd.f32 %v10460_v10, %v6098_v36  ;;  %v6669_v35 = vpop.f32.mrb[70].mxu0  ;;  %v6818_v36 = vld [vmem:[%s7000_s23 + $0x40] sm:$0xff]  }
 0x3ed   : > { %v6247_v21 = vadd.f32 %v6215_v45, %v6107_v31  ;;  %v6110_v46 = vadd.f32 %v6669_v35, %v10460_v10  ;;  %v6101_v49 = vpop.f32.mrb[71].mxu0 }
 0x3ee   : > { %v6245_v4 = vadd.f32 %v6213_v27, %v6099_v6  ;;  %v6102_v33 = vadd.f32 %v10460_v10, %v6101_v49  ;;  %v6227_v27 = vunpack.c.l.bf16 %v6817_v57  ;;  %v6226_v49 = vunpack.c.h.bf16 %v6818_v36 }
 0x3ef   : > { %v6279_v53 = vmax.f32 %v6247_v21, 0.0  ;;  %v6248_v43 = vadd.f32 %v6216_v15, %v6110_v46  ;;  %v6225_v15 = vunpack.c.l.bf16 %v6818_v36  ;;  %v6823_v36 = vld [vmem:[%s7000_s23 + $0x78] sm:$0xff]  }
 0x3f0   : > { %v6277_v28 = vmax.f32 %v6245_v4, 0.0  ;;  %v6246_v34 = vadd.f32 %v6214_v23, %v6102_v33  ;;  %v6228_v23 = vunpack.c.h.bf16 %v6817_v57 }
 0x3f1   : > { %6311 = vst [vmem:[%s10470_s9 + $0x30] sm:$0xff] %v6279_v53  ;;  %v6280_v38 = vmax.f32 %v6248_v43, 0.0 }
 0x3f2   : > { %6309 = vst [vmem:[%s10470_s9 + $0x20] sm:$0xff] %v6277_v28  ;;  %v6278_v54 = vmax.f32 %v6246_v34, 0.0 }
 0x3f3   : > { %6312 = vst [vmem:[%s10470_s9 + $0x38] sm:$0xff] %v6280_v38 }
 0x3f4   : > { %6310 = vst [vmem:[%s10470_s9 + $0x28] sm:$0xff] %v6278_v54 }
 0x404   : > { %v6672_v24 = vpop.f32.mrb[72].mxu0 }
 0x405   : > { %v6123_v3 = vadd.f32 %v6672_v24, %v10460_v10  ;;  %v6114_v39 = vpop.f32.mrb[73].mxu0 }
 0x406   : > { %v6115_v9 = vadd.f32 %v10460_v10, %v6114_v39  ;;  %v6673_v1 = vpop.f32.mrb[74].mxu0  ;;  %v6820_v39 = vld [vmem:[%s7000_s23 + $0x50] sm:$0xff]  }
 0x407   : > { %v6251_v60 = vadd.f32 %v6219_v0, %v6123_v3  ;;  %v6126_v32 = vadd.f32 %v6673_v1, %v10460_v10  ;;  %v6117_v44 = vpop.f32.mrb[75].mxu0 }
 0x408   : > { %v6249_v50 = vadd.f32 %v6217_v5, %v6115_v9  ;;  %v6118_v17 = vadd.f32 %v10460_v10, %v6117_v44  ;;  %v6231_v5 = vunpack.c.l.bf16 %v6819_v22  ;;  %v6230_v44 = vunpack.c.h.bf16 %v6820_v39 }
 0x409   : > { %v6283_v14 = vmax.f32 %v6251_v60, 0.0  ;;  %v6252_v40 = vadd.f32 %v6220_v19, %v6126_v32  ;;  %v6229_v19 = vunpack.c.l.bf16 %v6820_v39 }
 0x40a   : > { %v6281_v13 = vmax.f32 %v6249_v50, 0.0  ;;  %v6250_v7 = vadd.f32 %v6218_v16, %v6118_v17  ;;  %v6232_v16 = vunpack.c.h.bf16 %v6819_v22 }
 0x40b   : > { %6315 = vst [vmem:[%s10470_s9 + $0x50] sm:$0xff] %v6283_v14  ;;  %v6284_v12 = vmax.f32 %v6252_v40, 0.0 }
 0x40c   : > { %6313 = vst [vmem:[%s10470_s9 + $0x40] sm:$0xff] %v6281_v13  ;;  %v6282_v26 = vmax.f32 %v6250_v7, 0.0 }
 0x40d   : > { %6316 = vst [vmem:[%s10470_s9 + $0x58] sm:$0xff] %v6284_v12 }
 0x40e   : > { %6314 = vst [vmem:[%s10470_s9 + $0x48] sm:$0xff] %v6282_v26 }
 0x41e   : > { %v6676_v29 = vpop.f32.mrb[76].mxu0 }
 0x41f   : > { %v6139_v48 = vadd.f32 %v6676_v29, %v10460_v10  ;;  %v6130_v62 = vpop.f32.mrb[77].mxu0 }
 0x420   : > { %v6131_v55 = vadd.f32 %v10460_v10, %v6130_v62  ;;  %v6677_v20 = vpop.f32.mrb[78].mxu0  ;;  %v6822_v62 = vld [vmem:[%s7000_s23 + $0x60] sm:$0xff]  }
 0x421   : > { %v6255_v61 = vadd.f32 %v6223_v51, %v6139_v48  ;;  %v6142_v30 = vadd.f32 %v6677_v20, %v10460_v10  ;;  %v6133_v8 = vpop.f32.mrb[79].mxu0 }
 0x422   : > { %v6253_v25 = vadd.f32 %v6221_v42, %v6131_v55  ;;  %v6134_v52 = vadd.f32 %v10460_v10, %v6133_v8  ;;  %v6235_v42 = vunpack.c.l.bf16 %v6821_v47  ;;  %v6234_v8 = vunpack.c.h.bf16 %v6822_v62 }
 0x423   : > { %v6287_v58 = vmax.f32 %v6255_v61, 0.0  ;;  %v6256_v56 = vadd.f32 %v6224_v11, %v6142_v30  ;;  %v6233_v11 = vunpack.c.l.bf16 %v6822_v62 }
 0x424   : > { %v6285_v37 = vmax.f32 %v6253_v25, 0.0  ;;  %v6254_v63 = vadd.f32 %v6222_v18, %v6134_v52  ;;  %v6236_v18 = vunpack.c.h.bf16 %v6821_v47 }
 0x425   : > { %6319 = vst [vmem:[%s10470_s9 + $0x70] sm:$0xff] %v6287_v58  ;;  %v6288_v45 = vmax.f32 %v6256_v56, 0.0 }
 0x426   : > { %6317 = vst [vmem:[%s10470_s9 + $0x60] sm:$0xff] %v6285_v37  ;;  %v6286_v59 = vmax.f32 %v6254_v63, 0.0 }
 0x427   : > { %6320 = vst [vmem:[%s10470_s9 + $0x78] sm:$0xff] %v6288_v45 }
 0x428   : > { %6318 = vst [vmem:[%s10470_s9 + $0x68] sm:$0xff] %v6286_v59 }
 0x440   : > { %v6680_v31 = vpop.f32.mrb[80].mxu0 }
 0x441   : > { %v6155_v6 = vadd.f32 %v6680_v31, %v10460_v10  ;;  %v6146_v35 = vpop.f32.mrb[81].mxu0 }
 0x442   : > { %v6147_v21 = vadd.f32 %v10460_v10, %v6146_v35  ;;  %v6681_v46 = vpop.f32.mrb[82].mxu0  ;;  %v6824_v35 = vld [vmem:[%s7000_s23 + $0x70] sm:$0xff]   ;;  %s6507_s23 = sshll.u32 %s6959_s28, 12  ;;  %s10557_s28 = scalar_lea.sflag [#allocation3], %s269_s18 }
 0x443   : > { %v6259_v4 = vadd.f32 %v6227_v27, %v6155_v6  ;;  %v6158_v33 = vadd.f32 %v6681_v46, %v10460_v10  ;;  %v6149_v53 = vpop.f32.mrb[83].mxu0  ;;  %s10548_s21 = scalar_lea.hbm %s10605_s7, %s6507_s23 }
 0x444   : > { %v6257_v43 = vadd.f32 %v6225_v15, %v6147_v21  ;;  %v6150_v28 = vadd.f32 %v10460_v10, %v6149_v53  ;;  %v6239_v15 = vunpack.c.l.bf16 %v6823_v36  ;;  %v6238_v53 = vunpack.c.h.bf16 %v6824_v35 }
 0x445   : > { %v6291_v34 = vmax.f32 %v6259_v4, 0.0  ;;  %v6260_v38 = vadd.f32 %v6228_v23, %v6158_v33  ;;  %v6237_v23 = vunpack.c.l.bf16 %v6824_v35 }
 0x446   : > { %v6289_v54 = vmax.f32 %v6257_v43, 0.0  ;;  %v6258_v2 = vadd.f32 %v6226_v49, %v6150_v28  ;;  %v6240_v49 = vunpack.c.h.bf16 %v6823_v36 }
 0x447   : > { %6323 = vst [vmem:[%s10470_s9 + $0x90] sm:$0xff] %v6291_v34  ;;  %v6292_v0 = vmax.f32 %v6260_v38, 0.0 }
 0x448   : > { %6321 = vst [vmem:[%s10470_s9 + $0x80] sm:$0xff] %v6289_v54  ;;  %v6290_v24 = vmax.f32 %v6258_v2, 0.0 }
 0x449   : > { %6324 = vst [vmem:[%s10470_s9 + $0x98] sm:$0xff] %v6292_v0 }
 0x44a   : > { %6322 = vst [vmem:[%s10470_s9 + $0x88] sm:$0xff] %v6290_v24 }
 0x452   : > { %v6684_v3 = vpop.f32.mrb[84].mxu0 }
 0x453   : > { %v6171_v9 = vadd.f32 %v6684_v3, %v10460_v10  ;;  %v6162_v1 = vpop.f32.mrb[85].mxu0 }
 0x454   : > { %v6163_v60 = vadd.f32 %v10460_v10, %v6162_v1  ;;  %v6685_v32 = vpop.f32.mrb[86].mxu0 }
 0x455   : > { %v6263_v50 = vadd.f32 %v6231_v5, %v6171_v9  ;;  %v6174_v17 = vadd.f32 %v6685_v32, %v10460_v10  ;;  %v6165_v14 = vpop.f32.mrb[87].mxu0 }
 0x456   : > { %v6261_v40 = vadd.f32 %v6229_v19, %v6163_v60  ;;  %v6166_v13 = vadd.f32 %v10460_v10, %v6165_v14 }
 0x457   : > { %v6295_v7 = vmax.f32 %v6263_v50, 0.0  ;;  %v6264_v12 = vadd.f32 %v6232_v16, %v6174_v17 }
 0x458   : > { %v6293_v26 = vmax.f32 %v6261_v40, 0.0  ;;  %v6262_v41 = vadd.f32 %v6230_v44, %v6166_v13 }
 0x459   : > { %6327 = vst [vmem:[%s10470_s9 + $0xb0] sm:$0xff] %v6295_v7  ;;  %v6296_v51 = vmax.f32 %v6264_v12, 0.0 }
 0x45a   : > { %6325 = vst [vmem:[%s10470_s9 + $0xa0] sm:$0xff] %v6293_v26  ;;  %v6294_v29 = vmax.f32 %v6262_v41, 0.0 }
 0x45b   : > { %6328 = vst [vmem:[%s10470_s9 + $0xb8] sm:$0xff] %v6296_v51 }
 0x45c   : > { %6326 = vst [vmem:[%s10470_s9 + $0xa8] sm:$0xff] %v6294_v29 }
 0x464   : > { %v6688_v48 = vpop.f32.mrb[88].mxu0 }
 0x465   : > { %v6187_v55 = vadd.f32 %v6688_v48, %v10460_v10  ;;  %v6178_v20 = vpop.f32.mrb[89].mxu0 }
 0x466   : > { %v6179_v61 = vadd.f32 %v10460_v10, %v6178_v20  ;;  %v6689_v30 = vpop.f32.mrb[90].mxu0 }
 0x467   : > { %v6267_v25 = vadd.f32 %v6235_v42, %v6187_v55  ;;  %v6190_v52 = vadd.f32 %v6689_v30, %v10460_v10  ;;  %v6181_v58 = vpop.f32.mrb[91].mxu0 }
 0x468   : > { %v6265_v56 = vadd.f32 %v6233_v11, %v6179_v61  ;;  %v6182_v37 = vadd.f32 %v10460_v10, %v6181_v58 }
 0x469   : > { %v6299_v63 = vmax.f32 %v6267_v25, 0.0  ;;  %v6268_v45 = vadd.f32 %v6236_v18, %v6190_v52 }
 0x46a   : > { %v6297_v59 = vmax.f32 %v6265_v56, 0.0  ;;  %v6266_v57 = vadd.f32 %v6234_v8, %v6182_v37 }
 0x46b   : > { %6331 = vst [vmem:[%s10470_s9 + $0xd0] sm:$0xff] %v6299_v63  ;;  %v6300_v27 = vmax.f32 %v6268_v45, 0.0 }
 0x46c   : > { %6329 = vst [vmem:[%s10470_s9 + $0xc0] sm:$0xff] %v6297_v59  ;;  %v6298_v31 = vmax.f32 %v6266_v57, 0.0 }
 0x46d   : > { %6332 = vst [vmem:[%s10470_s9 + $0xd8] sm:$0xff] %v6300_v27 }
 0x46e   : > { %6330 = vst [vmem:[%s10470_s9 + $0xc8] sm:$0xff] %v6298_v31 }
 0x480   : > { %v6692_v6 = vpop.f32.mrb[92].mxu0 }
 0x481   : > { %v6203_v21 = vadd.f32 %v6692_v6, %v10460_v10  ;;  %v6194_v46 = vpop.f32.mrb[93].mxu0 }
 0x482   : > { %v6195_v4 = vadd.f32 %v10460_v10, %v6194_v46  ;;  %v6693_v33 = vpop.f32.mrb[94].mxu0 }
 0x483   : > { %v6271_v43 = vadd.f32 %v6239_v15, %v6203_v21  ;;  %v6206_v28 = vadd.f32 %v6693_v33, %v10460_v10  ;;  %v6197_v34 = vpop.f32.mrb[95].mxu0 }
 0x484   : > { %v6269_v38 = vadd.f32 %v6237_v23, %v6195_v4  ;;  %v6198_v54 = vadd.f32 %v10460_v10, %v6197_v34 }
 0x485   : > { %v6303_v2 = vmax.f32 %v6271_v43, 0.0  ;;  %v6272_v0 = vadd.f32 %v6240_v49, %v6206_v28 }
 0x486   : > { %v6301_v24 = vmax.f32 %v6269_v38, 0.0  ;;  %v6270_v22 = vadd.f32 %v6238_v53, %v6198_v54 }
 0x487   : > { %6335 = vst [vmem:[%s10470_s9 + $0xf0] sm:$0xff] %v6303_v2  ;;  %v6304_v5 = vmax.f32 %v6272_v0, 0.0 }
 0x488   : > { %6333 = vst [vmem:[%s10470_s9 + $0xe0] sm:$0xff] %v6301_v24  ;;  %v6302_v10 = vmax.f32 %v6270_v22, 0.0 }
 0x489   : > { %6336 = vst [vmem:[%s10470_s9 + $0xf8] sm:$0xff] %v6304_v5 }
 0x48a   : > { %6334 = vst [vmem:[%s10470_s9 + $0xe8] sm:$0xff] %v6302_v10 }
 0x48b   : > { %6838 = shalt.err (!%p6835_p3)
}
 0x48c   : > { %s6839_s18 = scalar_lea.hbm %s10548_s21, 4096  ;;  %s6843_s8 = scalar_lea.hbm %s10605_s7, 8192 }
 0x48d   : > { %p6840_p4 = scmp.ne.s32.totalorder %s10548_s21, %s6839_s18  ;;  %p6844_p9 = scmp.lt.u32.totalorder %s10548_s21, %s10605_s7 }
 0x48e   : > { %p6845_p10 = scmp.lt.u32.totalorder %s6843_s8, %s6839_s18  ;;  %p6847_p12 = scmp.lt.u32.totalorder %s6839_s18, %s10548_s21 }
 0x48f   : > { %p6841_p7 = pnand %p6840_p4, %p6976_p5 }
 0x490   : > { %p6846_p11 = por %p6845_p10, %p6844_p9 }
 0x491   : > { %p6842_p8 = pneg %p6841_p7 }
 0x492   : > { %p6848_p13 = por %p6847_p12, %p6846_p11 }
 0x494   : > { %p6849_p0 = pnand %p6848_p13, %p6842_p8 }
 0x496   : > { %6852 = shalt.err (!%p6849_p0)
}
 0x497   : > { %s6896_s14 = smov 128   ;;  %s6897_s20 = smov 8  }
 0x498   : > { %6698 = dma.vmem_to_hbm [thread:$0]  (%p6976_p5), %s10550_s13, 4096, %s10548_s21, %s10557_s28, %s6896_s14, %s6896_s14, %s6897_s20  }
 0x499 PF: > { %p6704_p1 = scmp.ge.s32.totalorder %s6887_s27, 2  ;;  %s6366_s19 = sand.u32 1, %s6875_s24  }
 0x49a   : > { %s6367_s15 = scalar_lea.sflag [#allocation3], %s6366_s19 }
 0x49b   : > { %p6701_p2 = pnand %p6704_p1, %p6980_p6 }
 0x49d   : > { %6870 = dma.done.wait (!%p6701_p2), %s6367_s15, 4096  }
 0x49e   : > { %6872 = vsyncadd (!%p6701_p2), %s6367_s15, 4294963200  ;;  %p17_p3 = scmp.ge.s32.totalorder %s6963_s30, 4   ;;  %s11353_s24 = smov %s6879_s25 }
 0x49f   : > { %s11354_s25 = smov %s6883_s26  ;;  %s11355_s26 = smov %s6974_s10 }
 0x4a0   : > { %s11356_s27 = smov %s6963_s30  ;;  %19 = sbr.rel (!%p17_p3) target bundleno = 3 (0x3), region = 83 }
 0x4a7   :  { %6372 = vsyncpa [#allocation3], 1 }
 0x4a8   :  { %6374 = vsyncpa [#allocation3 + $0x1], 1 }

</bundles_post_ra>
